<compile_context>
chip_gen: v7x
topology: tpu7x:2x2x1
jax: 0.10.0
libtpu: 0.0.40
codegen_flags: <defaults>
</compile_context>

<pallas_src>
import functools

import jax
import jax.numpy as jnp
from jax.experimental import pallas as pl
from jax.experimental.pallas import tpu as pltpu

NEG_SLOPE = 0.2
KW = 4                      # kernel_size of every conv in the module
BN_EPS = 1e-5

TM_TARGET = 2048            # M tile target (feedback: >= 1024)
VMEM_CAP = 48 * 2 ** 20     # v7x has only 64 MiB physical VMEM per core


def _round_up(x, m):
    return (x + m - 1) // m * m


# ----------------------------------------------------------------------------
# Pallas kernel: tiled bf16 matmul, f32 accumulation, fused bias / LeakyReLU
# epilogue, optional fused per-column sum / sum-of-squares (BN batch stats).
# ----------------------------------------------------------------------------
def _mm_kernel(a_ref, b_ref, bias_ref, *rest, apply_bias, apply_leaky,
               emit_stats, mask_partial, m_total, tm):
    if emit_stats:
        o_ref, stats_ref, acc_ref = rest
    else:
        o_ref, acc_ref = rest

    # All program_id / num_programs binds stay at the kernel top level (never
    # inside a pl.when body); their values are closed over by the bodies.
    i = pl.program_id(0)
    k = pl.program_id(2)
    nk = pl.num_programs(2)

    @pl.when(k == 0)
    def _init():
        acc_ref[...] = jnp.zeros_like(acc_ref)

    acc_ref[...] += jnp.dot(a_ref[...], b_ref[...],
                            preferred_element_type=jnp.float32)

    @pl.when(k == nk - 1)
    def _epilogue():
        r = acc_ref[...]                                 # f32 (tm, tn)
        if apply_bias:
            r = r + bias_ref[...]
        if apply_leaky:
            r = jnp.where(r >= 0, r, NEG_SLOPE * r)
        o_ref[...] = r.astype(o_ref.dtype)               # lane-dense full tile
        if emit_stats:
            rs = r
            if mask_partial:                             # zero rows beyond M
                row = i * tm + jax.lax.broadcasted_iota(jnp.int32, (tm, 1), 0)
                rs = jnp.where(row < m_total, r, 0.0)
            stats_ref[:, 0, :] = jnp.sum(rs, axis=0, keepdims=True)
            stats_ref[:, 1, :] = jnp.sum(rs * rs, axis=0, keepdims=True)


def conv_matmul(patches, w2d, bias_row, *, apply_bias, apply_leaky,
                emit_stats, out_dtype):
    """patches: (M, K) bf16, K = KW^3 * cin_p.  w2d: (K, n_p) bf16 (prepared).
    bias_row: (1, n_p) f32.  Returns ((M8, n_p) out, stats-or-None)."""
    m_true, K = patches.shape
    if m_true % 8:                       # keep the M dim sublane-aligned
        patches = jnp.pad(patches, ((0, 8 - m_true % 8), (0, 0)))
    M = patches.shape[0]
    K2, n_p = w2d.shape
    assert K == K2 and n_p % 128 == 0

    # Large MXU tiles bounded by the actual problem size.
    tm = min(TM_TARGET, _round_up(m_true, 8))
    tk = 1024 if K % 1024 == 0 else 512
    assert K % tk == 0
    tn = 512 if n_p % 512 == 0 else (256 if n_p % 256 == 0 else 128)
    tn = min(tn, n_p)
    m_blocks = pl.cdiv(M, tm)
    n_blocks = n_p // tn
    # v7x has 2 TensorCores: give tiny layers >= 2 parallel blocks if possible.
    if m_blocks == 1 and n_blocks == 1 and n_p % 256 == 0:
        tn = n_p // 2
        n_blocks = 2
    k_blocks = K // tk
    grid = (m_blocks, n_blocks, k_blocks)

    out_isz = jnp.dtype(out_dtype).itemsize
    vmem_need = (2 * (tm * tk + tk * tn) * 2       # bf16 A/B, double buffered
                 + tm * tn * 4                      # f32 accumulator scratch
                 + 2 * tm * tn * out_isz            # output, double buffered
                 + 2 * tn * 4                       # bias block
                 + 2 * 2 * tn * 4)                  # stats blocks
    vmem_limit = int(min(VMEM_CAP, max(32 * 2 ** 20, int(vmem_need * 1.5))))

    kern = functools.partial(
        _mm_kernel, apply_bias=apply_bias, apply_leaky=apply_leaky,
        emit_stats=emit_stats,
        mask_partial=(emit_stats and m_true % tm != 0),
        m_total=m_true, tm=tm)

    in_specs = [pl.BlockSpec((tm, tk), lambda i, j, k: (i, k)),
                pl.BlockSpec((tk, tn), lambda i, j, k: (k, j)),
                pl.BlockSpec((1, tn), lambda i, j, k: (0, j))]
    if emit_stats:
        out_shape = (jax.ShapeDtypeStruct((M, n_p), out_dtype),
                     jax.ShapeDtypeStruct((m_blocks, 2, n_p), jnp.float32))
        out_specs = (pl.BlockSpec((tm, tn), lambda i, j, k: (i, j)),
                     pl.BlockSpec((1, 2, tn), lambda i, j, k: (i, 0, j)))
    else:
        out_shape = jax.ShapeDtypeStruct((M, n_p), out_dtype)
        out_specs = pl.BlockSpec((tm, tn), lambda i, j, k: (i, j))

    res = pl.pallas_call(
        kern,
        out_shape=out_shape,
        grid=grid,
        in_specs=in_specs,
        out_specs=out_specs,
        scratch_shapes=[pltpu.VMEM((tm, tn), jnp.float32)],
        compiler_params=pltpu.CompilerParams(
            dimension_semantics=("parallel", "parallel", "arbitrary"),
            vmem_limit_bytes=vmem_limit),
    )(patches, w2d, bias_row)
    if emit_stats:
        return res[0], res[1]
    return res, None


# ----------------------------------------------------------------------------
# XLA-side glue: coord channels, bf16 im2col, BN finalize (applied in jnp so
# it fuses into the next layer's patch gather — no extra Pallas pass).
# ----------------------------------------------------------------------------
def add_coords_3d(x):
    # x: (N, D, H, W, C) -> (N, D, H, W, C+3), coords normalized to [-1, 1]
    N, D, H, W, _ = x.shape
    lin = lambda n: (jnp.linspace(-1.0, 1.0, n) if n > 1
                     else jnp.zeros((n,), jnp.float32))
    dd = jnp.broadcast_to(lin(D)[None, :, None, None, None], (N, D, H, W, 1))
    hh = jnp.broadcast_to(lin(H)[None, None, :, None, None], (N, D, H, W, 1))
    ww = jnp.broadcast_to(lin(W)[None, None, None, :, None], (N, D, H, W, 1))
    return jnp.concatenate([x, dd, hh, ww], axis=-1).astype(jnp.float32)


def extract_patches(x, k, stride, pad_before, pad_after):
    # x: (N, D, H, W, C) bf16 (C already padded to a multiple of 8)
    x = jnp.pad(x, ((0, 0),
                    (pad_before, pad_after),
                    (pad_before, pad_after),
                    (pad_before, pad_after),
                    (0, 0)))
    N, D, H, W, C = x.shape
    Do = (D - k) // stride + 1
    Ho = (H - k) // stride + 1
    Wo = (W - k) // stride + 1
    pieces = []
    for kd in range(k):
        for kh in range(k):
            for kw_ in range(k):
                sl = x[:,
                       kd:kd + (Do - 1) * stride + 1:stride,
                       kh:kh + (Ho - 1) * stride + 1:stride,
                       kw_:kw_ + (Wo - 1) * stride + 1:stride, :]
                pieces.append(sl)
    patches = jnp.concatenate(pieces, axis=-1)       # (N,Do,Ho,Wo, k^3*C)
    return patches.reshape(N * Do * Ho * Wo, k * k * k * C), (N, Do, Ho, Wo)


def bn_from_stats(stats, cout, m_rows, gamma, beta):
    # training-mode BatchNorm3d: biased batch stats from fused matmul sums
    ssum = jnp.sum(stats[:, 0, :cout], axis=0)
    ssq = jnp.sum(stats[:, 1, :cout], axis=0)
    mean = ssum / m_rows
    var = jnp.maximum(ssq / m_rows - mean * mean, 0.0)
    scale = gamma / jnp.sqrt(var + BN_EPS)
    shift = beta - mean * scale
    return scale, shift


# ----------------------------------------------------------------------------
# Model definition (mirrors the PyTorch __init__ sequence)
# ----------------------------------------------------------------------------
def build_layer_specs(input_nc, ndf=64, n_layers=3, n_out_channels=1):
    # use_bias = (norm_layer == nn.InstanceNorm2d) -> False for BatchNorm3d
    specs = []
    # CoordConv3D(input_nc, ndf, k=4, s=2, p=1) + LeakyReLU(0.2)
    specs.append(dict(cin=input_nc + 3, cout=ndf, stride=2, pad=(1, 1),
                      bias=True, bn=False, leaky=True))
    nf_mult = 1
    for n in range(1, n_layers):
        nf_mult_prev = nf_mult
        nf_mult = min(2 ** n, 8)
        specs.append(dict(cin=ndf * nf_mult_prev, cout=ndf * nf_mult,
                          stride=2, pad=(1, 1),
                          bias=False, bn=True, leaky=True))
    nf_mult_prev = nf_mult
    nf_mult = min(2 ** n_layers, 8)
    # padding='same' with k=4, stride=1 in PyTorch => pad (before=1, after=2)
    specs.append(dict(cin=ndf * nf_mult_prev, cout=ndf * nf_mult,
                      stride=1, pad=(1, 2),
                      bias=False, bn=True, leaky=True))
    specs.append(dict(cin=ndf * nf_mult, cout=n_out_channels,
                      stride=1, pad=(1, 2),
                      bias=True, bn=False, leaky=False))
    return specs


def init_params(key, specs):
    params = []
    for s in specs:
        key, wk, bk = jax.random.split(key, 3)
        fan_in = KW ** 3 * s["cin"]
        w = (jax.random.normal(wk, (KW, KW, KW, s["cin"], s["cout"]),
                               jnp.float32) / jnp.sqrt(float(fan_in)))
        if s["bias"]:
            b = jax.random.normal(bk, (s["cout"],), jnp.float32) * 0.01
        else:
            b = jnp.zeros((s["cout"],), jnp.float32)
        p = dict(w=w, b=b)
        if s["bn"]:
            p["gamma"] = jnp.ones((s["cout"],), jnp.float32)
            p["beta"] = jnp.zeros((s["cout"],), jnp.float32)
        params.append(p)
    return params


def prepare_params(params, specs):
    """One-time weight preprocessing, hoisted out of the forward path:
    pad cin -> multiple of 8, flatten (kd,kh,kw,cin) -> K, pad cout -> multiple
    of 128 (lane-dense outputs), cast weights to bf16, bias stays f32."""
    prepped = []
    for s, p in zip(specs, params):
        cin, cout = s["cin"], s["cout"]
        cin_p = _round_up(cin, 8)
        n_p = _round_up(cout, 128)
        w = jnp.pad(p["w"], ((0, 0), (0, 0), (0, 0),
                             (0, cin_p - cin), (0, n_p - cout)))
        w2d = w.reshape(KW ** 3 * cin_p, n_p).astype(jnp.bfloat16)
        b = jnp.pad(p["b"], (0, n_p - cout)).reshape(1, n_p).astype(jnp.float32)
        q = dict(w2d=w2d, bias=b)
        if s["bn"]:
            q["gamma"] = p["gamma"]
            q["beta"] = p["beta"]
        prepped.append(q)
    return prepped


def discriminator_forward(x_ncdhw, prepped, specs):
    # NCDHW -> NDHWC
    x = jnp.transpose(x_ncdhw, (0, 2, 3, 4, 1)).astype(jnp.float32)
    total = len(specs)
    for idx, (s, p) in enumerate(zip(specs, prepped)):
        if idx == 0:
            x = add_coords_3d(x)          # CoordConv3D coordinate channels
        last = (idx == total - 1)

        cin = x.shape[-1]
        cin_p = _round_up(cin, 8)
        xb = x.astype(jnp.bfloat16)
        if cin_p != cin:
            xb = jnp.pad(xb, ((0, 0),) * 4 + ((0, cin_p - cin),))

        patches, (N, Do, Ho, Wo) = extract_patches(
            xb, KW, s["stride"], s["pad"][0], s["pad"][1])
        assert patches.shape[1] == p["w2d"].shape[0]

        out, stats = conv_matmul(
            patches, p["w2d"], p["bias"],
            apply_bias=s["bias"],
            apply_leaky=(s["leaky"] and not s["bn"]),
            emit_stats=s["bn"],
            out_dtype=jnp.float32 if last else jnp.bfloat16)

        M = N * Do * Ho * Wo
        y = out[:M, :s["cout"]]           # drop lane padding (fused by XLA)
        if s["bn"]:
            scale, shift = bn_from_stats(stats, s["cout"], M,
                                         p["gamma"], p["beta"])
            yf = y.astype(jnp.float32) * scale + shift
            y = jnp.where(yf >= 0, yf, NEG_SLOPE * yf)   # LeakyReLU after BN

        x = y.reshape(N, Do, Ho, Wo, s["cout"])
    out = jnp.transpose(x, (0, 4, 1, 2, 3)).astype(jnp.float32)  # NCDHW
    return [out]                          # getIntermFeat=False -> [output]


if __name__ == "__main__":
    key = jax.random.PRNGKey(0)
    k_in, k_par = jax.random.split(key)

    # small deterministic example: batch=2, input_nc=4, spatial 16^3, ndf=16
    N, C, S = 2, 4, 16
    x = jax.random.normal(k_in, (N, C, S, S, S), jnp.float32)

    specs = build_layer_specs(input_nc=C, ndf=16, n_layers=3, n_out_channels=1)
    params = init_params(k_par, specs)
    prepped = prepare_params(params, specs)   # one-time weight prep (hoisted)

    fwd = jax.jit(lambda inp, par: discriminator_forward(inp, par, specs))
    outs = fwd(x, prepped)
    jax.block_until_ready(outs)

    # sanity: final patch map shape (N, 1, S/8, S/8, S/8), finite values
    assert outs[0].shape == (N, 1, S // 8, S // 8, S // 8)
    assert outs[0].dtype == jnp.float32
    assert bool(jnp.all(jnp.isfinite(outs[0])))
    print("KERNEL_OK")
</pallas_src>

<mosaic_0001>
module attributes {stable_mosaic.version = 11 : i64} {
  func.func @_mm_kernel(%arg0: i32, %arg1: i32, %arg2: i32, %arg3: memref<1024x512xbf16, #tpu.memory_space<vmem>>, %arg4: memref<512x128xbf16, #tpu.memory_space<vmem>>, %arg5: memref<1x128xf32, #tpu.memory_space<vmem>>, %arg6: memref<1024x128xbf16, #tpu.memory_space<vmem>>, %arg7: memref<1024x128xf32, #tpu.memory_space<vmem>>) attributes {dimension_semantics = [#tpu.dimension_semantics<parallel>, #tpu.dimension_semantics<parallel>, #tpu.dimension_semantics<arbitrary>], iteration_bounds = array<i64: 1, 1, 1>, scalar_prefetch = 0 : i64, scratch_operands = 1 : i64, tpu.core_type = #tpu.core_type<tc>, window_params = [{transform_indices = @transform_0, window_bounds = array<i64: 1024, 512>}, {transform_indices = @transform_1, window_bounds = array<i64: 512, 128>}, {transform_indices = @transform_2, window_bounds = array<i64: 1, 128>}, {transform_indices = @transform_3, window_bounds = array<i64: 1024, 128>}]} {
    %c0_i32 = arith.constant 0 : i32
    %0 = arith.cmpi eq, %arg2, %c0_i32 : i32
    %1 = arith.extui %0 : i1 to i32
    %c0_i32_0 = arith.constant 0 : i32
    %2 = arith.cmpi ne, %1, %c0_i32_0 : i32
    scf.if %2 {
      %cst_10 = arith.constant 0.000000e+00 : f32
      %12 = vector.broadcast %cst_10 : f32 to vector<1024x128xf32>
      %c0_11 = arith.constant 0 : index
      %c0_12 = arith.constant 0 : index
      %13 = vector.load %arg7[%c0_11, %c0_12] : memref<1024x128xf32, #tpu.memory_space<vmem>>, vector<1024x128xf32>
      tpu.vector_store %arg7[%c0_11, %c0_12], %12 {strides = array<i32>} : memref<1024x128xf32, #tpu.memory_space<vmem>>, vector<1024x128xf32>,
    } else {
    }
    %c0 = arith.constant 0 : index
    %c0_1 = arith.constant 0 : index
    %3 = vector.load %arg7[%c0, %c0_1] : memref<1024x128xf32, #tpu.memory_space<vmem>>, vector<1024x128xf32>
    %c0_2 = arith.constant 0 : index
    %c0_3 = arith.constant 0 : index
    %4 = vector.load %arg3[%c0_2, %c0_3] : memref<1024x512xbf16, #tpu.memory_space<vmem>>, vector<1024x512xbf16>
    %c0_4 = arith.constant 0 : index
    %c0_5 = arith.constant 0 : index
    %5 = vector.load %arg4[%c0_4, %c0_5] : memref<512x128xbf16, #tpu.memory_space<vmem>>, vector<512x128xbf16>
    %cst = arith.constant dense<0.000000e+00> : vector<1024x128xf32>
    %6 = tpu.matmul %4, %5, %cst {dimension_numbers = #tpu.dot_dimension_numbers<[1], [0], [0], [1], [0, 0, 1, 1], [], []>} : vector<1024x512xbf16>, vector<512x128xbf16>, vector<1024x128xf32> -> vector<1024x128xf32>
    %7 = arith.addf %3, %6 : vector<1024x128xf32>
    %c0_6 = arith.constant 0 : index
    %c0_7 = arith.constant 0 : index
    %8 = vector.load %arg7[%c0_6, %c0_7] : memref<1024x128xf32, #tpu.memory_space<vmem>>, vector<1024x128xf32>
    tpu.vector_store %arg7[%c0_6, %c0_7], %7 {strides = array<i32>} : memref<1024x128xf32, #tpu.memory_space<vmem>>, vector<1024x128xf32>,
    %c0_i32_8 = arith.constant 0 : i32
    %9 = arith.cmpi eq, %arg2, %c0_i32_8 : i32
    %10 = arith.extui %9 : i1 to i32
    %c0_i32_9 = arith.constant 0 : i32
    %11 = arith.cmpi ne, %10, %c0_i32_9 : i32
    scf.if %11 {
      %c0_10 = arith.constant 0 : index
      %c0_11 = arith.constant 0 : index
      %12 = vector.load %arg7[%c0_10, %c0_11] : memref<1024x128xf32, #tpu.memory_space<vmem>>, vector<1024x128xf32>
      %c0_12 = arith.constant 0 : index
      %c0_13 = arith.constant 0 : index
      %13 = vector.load %arg5[%c0_12, %c0_13] : memref<1x128xf32, #tpu.memory_space<vmem>>, vector<1x128xf32>
      %14 = vector.broadcast %13 : vector<1x128xf32> to vector<1024x128xf32>
      %15 = arith.addf %12, %14 : vector<1024x128xf32>
      %cst_14 = arith.constant 0.000000e+00 : f32
      %16 = vector.broadcast %cst_14 : f32 to vector<1024x128xf32>
      %17 = arith.cmpf oge, %15, %16 : vector<1024x128xf32>
      %cst_15 = arith.constant 2.000000e-01 : f32
      %18 = vector.broadcast %cst_15 : f32 to vector<1024x128xf32>
      %19 = arith.mulf %18, %15 : vector<1024x128xf32>
      %20 = arith.select %17, %15, %19 : vector<1024x128xi1>, vector<1024x128xf32>
      %21 = arith.truncf %20 : vector<1024x128xf32> to vector<1024x128xbf16>
      %c0_16 = arith.constant 0 : index
      %c0_17 = arith.constant 0 : index
      %22 = vector.load %arg6[%c0_16, %c0_17] : memref<1024x128xbf16, #tpu.memory_space<vmem>>, vector<1024x128xbf16>
      tpu.vector_store %arg6[%c0_16, %c0_17], %21 {strides = array<i32>} : memref<1024x128xbf16, #tpu.memory_space<vmem>>, vector<1024x128xbf16>,
    } else {
    }
    return
  }
  func.func @transform_0(%arg0: i32, %arg1: i32, %arg2: i32) -> (i32, i32) {
    %c0_i32 = arith.constant 0 : i32
    return %arg0, %arg2 : i32, i32
  }
  func.func @transform_1(%arg0: i32, %arg1: i32, %arg2: i32) -> (i32, i32) {
    %c0_i32 = arith.constant 0 : i32
    return %arg2, %arg1 : i32, i32
  }
  func.func @transform_2(%arg0: i32, %arg1: i32, %arg2: i32) -> (i32, i32) {
    %c0_i32 = arith.constant 0 : i32
    %c0_i32_0 = arith.constant 0 : i32
    return %c0_i32, %arg1 : i32, i32
  }
  func.func @transform_3(%arg0: i32, %arg1: i32, %arg2: i32) -> (i32, i32) {
    %c0_i32 = arith.constant 0 : i32
    return %arg0, %arg1 : i32, i32
  }
}

module attributes {stable_mosaic.version = 11 : i64} {
  func.func @_mm_kernel(%arg0: i32, %arg1: i32, %arg2: i32, %arg3: memref<128x1024xbf16, #tpu.memory_space<vmem>>, %arg4: memref<1024x128xbf16, #tpu.memory_space<vmem>>, %arg5: memref<1x128xf32, #tpu.memory_space<vmem>>, %arg6: memref<128x128xbf16, #tpu.memory_space<vmem>>, %arg7: memref<1x2x128xf32, #tpu.memory_space<vmem>>, %arg8: memref<128x128xf32, #tpu.memory_space<vmem>>) attributes {dimension_semantics = [#tpu.dimension_semantics<parallel>, #tpu.dimension_semantics<parallel>, #tpu.dimension_semantics<arbitrary>], iteration_bounds = array<i64: 1, 1, 1>, scalar_prefetch = 0 : i64, scratch_operands = 1 : i64, tpu.core_type = #tpu.core_type<tc>, window_params = [{transform_indices = @transform_0, window_bounds = array<i64: 128, 1024>}, {transform_indices = @transform_1, window_bounds = array<i64: 1024, 128>}, {transform_indices = @transform_2, window_bounds = array<i64: 1, 128>}, {transform_indices = @transform_3, window_bounds = array<i64: 128, 128>}, {transform_indices = @transform_4, window_bounds = array<i64: 1, 2, 128>}]} {
    %c0_i32 = arith.constant 0 : i32
    %0 = arith.cmpi eq, %arg2, %c0_i32 : i32
    %1 = arith.extui %0 : i1 to i32
    %c0_i32_0 = arith.constant 0 : i32
    %2 = arith.cmpi ne, %1, %c0_i32_0 : i32
    scf.if %2 {
      %cst_10 = arith.constant 0.000000e+00 : f32
      %12 = vector.broadcast %cst_10 : f32 to vector<128x128xf32>
      %c0_11 = arith.constant 0 : index
      %c0_12 = arith.constant 0 : index
      %13 = vector.load %arg8[%c0_11, %c0_12] : memref<128x128xf32, #tpu.memory_space<vmem>>, vector<128x128xf32>
      tpu.vector_store %arg8[%c0_11, %c0_12], %12 {strides = array<i32>} : memref<128x128xf32, #tpu.memory_space<vmem>>, vector<128x128xf32>,
    } else {
    }
    %c0 = arith.constant 0 : index
    %c0_1 = arith.constant 0 : index
    %3 = vector.load %arg8[%c0, %c0_1] : memref<128x128xf32, #tpu.memory_space<vmem>>, vector<128x128xf32>
    %c0_2 = arith.constant 0 : index
    %c0_3 = arith.constant 0 : index
    %4 = vector.load %arg3[%c0_2, %c0_3] : memref<128x1024xbf16, #tpu.memory_space<vmem>>, vector<128x1024xbf16>
    %c0_4 = arith.constant 0 : index
    %c0_5 = arith.constant 0 : index
    %5 = vector.load %arg4[%c0_4, %c0_5] : memref<1024x128xbf16, #tpu.memory_space<vmem>>, vector<1024x128xbf16>
    %cst = arith.constant dense<0.000000e+00> : vector<128x128xf32>
    %6 = tpu.matmul %4, %5, %cst {dimension_numbers = #tpu.dot_dimension_numbers<[1], [0], [0], [1], [0, 0, 1, 1], [], []>} : vector<128x1024xbf16>, vector<1024x128xbf16>, vector<128x128xf32> -> vector<128x128xf32>
    %7 = arith.addf %3, %6 : vector<128x128xf32>
    %c0_6 = arith.constant 0 : index
    %c0_7 = arith.constant 0 : index
    %8 = vector.load %arg8[%c0_6, %c0_7] : memref<128x128xf32, #tpu.memory_space<vmem>>, vector<128x128xf32>
    tpu.vector_store %arg8[%c0_6, %c0_7], %7 {strides = array<i32>} : memref<128x128xf32, #tpu.memory_space<vmem>>, vector<128x128xf32>,
    %c0_i32_8 = arith.constant 0 : i32
    %9 = arith.cmpi eq, %arg2, %c0_i32_8 : i32
    %10 = arith.extui %9 : i1 to i32
    %c0_i32_9 = arith.constant 0 : i32
    %11 = arith.cmpi ne, %10, %c0_i32_9 : i32
    scf.if %11 {
      %c0_10 = arith.constant 0 : index
      %c0_11 = arith.constant 0 : index
      %12 = vector.load %arg8[%c0_10, %c0_11] : memref<128x128xf32, #tpu.memory_space<vmem>>, vector<128x128xf32>
      %13 = arith.truncf %12 : vector<128x128xf32> to vector<128x128xbf16>
      %c0_12 = arith.constant 0 : index
      %c0_13 = arith.constant 0 : index
      %14 = vector.load %arg6[%c0_12, %c0_13] : memref<128x128xbf16, #tpu.memory_space<vmem>>, vector<128x128xbf16>
      tpu.vector_store %arg6[%c0_12, %c0_13], %13 {strides = array<i32>} : memref<128x128xbf16, #tpu.memory_space<vmem>>, vector<128x128xbf16>,
      %cst_14 = arith.constant dense<0.000000e+00> : vector<128xf32>
      %15 = vector.multi_reduction <add>, %12, %cst_14 [0] : vector<128x128xf32> to vector<128xf32>
      %16 = vector.shape_cast %15 : vector<128xf32> to vector<1x128xf32>
      %c0_15 = arith.constant 0 : index
      %c0_16 = arith.constant 0 : index
      %c0_17 = arith.constant 0 : index
      %17 = vector.load %arg7[%c0_15, %c0_16, %c0_17] : memref<1x2x128xf32, #tpu.memory_space<vmem>>, vector<1x1x128xf32>
      %18 = vector.shape_cast %17 : vector<1x1x128xf32> to vector<1x128xf32>
      %19 = vector.shape_cast %16 : vector<1x128xf32> to vector<1x1x128xf32>
      tpu.vector_store %arg7[%c0_15, %c0_16, %c0_17], %19 {strides = array<i32>} : memref<1x2x128xf32, #tpu.memory_space<vmem>>, vector<1x1x128xf32>,
      %20 = arith.mulf %12, %12 : vector<128x128xf32>
      %cst_18 = arith.constant dense<0.000000e+00> : vector<128xf32>
      %21 = vector.multi_reduction <add>, %20, %cst_18 [0] : vector<128x128xf32> to vector<128xf32>
      %22 = vector.shape_cast %21 : vector<128xf32> to vector<1x128xf32>
      %c0_19 = arith.constant 0 : index
      %c1 = arith.constant 1 : index
      %c0_20 = arith.constant 0 : index
      %23 = vector.load %arg7[%c0_19, %c1, %c0_20] : memref<1x2x128xf32, #tpu.memory_space<vmem>>, vector<1x1x128xf32>
      %24 = vector.shape_cast %23 : vector<1x1x128xf32> to vector<1x128xf32>
      %25 = vector.shape_cast %22 : vector<1x128xf32> to vector<1x1x128xf32>
      tpu.vector_store %arg7[%c0_19, %c1, %c0_20], %25 {strides = array<i32>} : memref<1x2x128xf32, #tpu.memory_space<vmem>>, vector<1x1x128xf32>,
    } else {
    }
    return
  }
  func.func @transform_0(%arg0: i32, %arg1: i32, %arg2: i32) -> (i32, i32) {
    %c0_i32 = arith.constant 0 : i32
    return %arg0, %arg2 : i32, i32
  }
  func.func @transform_1(%arg0: i32, %arg1: i32, %arg2: i32) -> (i32, i32) {
    %c0_i32 = arith.constant 0 : i32
    return %arg2, %arg1 : i32, i32
  }
  func.func @transform_2(%arg0: i32, %arg1: i32, %arg2: i32) -> (i32, i32) {
    %c0_i32 = arith.constant 0 : i32
    %c0_i32_0 = arith.constant 0 : i32
    return %c0_i32, %arg1 : i32, i32
  }
  func.func @transform_3(%arg0: i32, %arg1: i32, %arg2: i32) -> (i32, i32) {
    %c0_i32 = arith.constant 0 : i32
    return %arg0, %arg1 : i32, i32
  }
  func.func @transform_4(%arg0: i32, %arg1: i32, %arg2: i32) -> (i32, i32, i32) {
    %c0_i32 = arith.constant 0 : i32
    %c0_i32_0 = arith.constant 0 : i32
    return %arg0, %c0_i32, %arg1 : i32, i32, i32
  }
}

module attributes {stable_mosaic.version = 11 : i64} {
  func.func @_mm_kernel(%arg0: i32, %arg1: i32, %arg2: i32, %arg3: memref<16x1024xbf16, #tpu.memory_space<vmem>>, %arg4: memref<1024x128xbf16, #tpu.memory_space<vmem>>, %arg5: memref<1x128xf32, #tpu.memory_space<vmem>>, %arg6: memref<16x128xbf16, #tpu.memory_space<vmem>>, %arg7: memref<1x2x128xf32, #tpu.memory_space<vmem>>, %arg8: memref<16x128xf32, #tpu.memory_space<vmem>>) attributes {dimension_semantics = [#tpu.dimension_semantics<parallel>, #tpu.dimension_semantics<parallel>, #tpu.dimension_semantics<arbitrary>], iteration_bounds = array<i64: 1, 1, 2>, scalar_prefetch = 0 : i64, scratch_operands = 1 : i64, tpu.core_type = #tpu.core_type<tc>, window_params = [{transform_indices = @transform_0, window_bounds = array<i64: 16, 1024>}, {transform_indices = @transform_1, window_bounds = array<i64: 1024, 128>}, {transform_indices = @transform_2, window_bounds = array<i64: 1, 128>}, {transform_indices = @transform_3, window_bounds = array<i64: 16, 128>}, {transform_indices = @transform_4, window_bounds = array<i64: 1, 2, 128>}]} {
    %c0_i32 = arith.constant 0 : i32
    %0 = arith.cmpi eq, %arg2, %c0_i32 : i32
    %1 = arith.extui %0 : i1 to i32
    %c0_i32_0 = arith.constant 0 : i32
    %2 = arith.cmpi ne, %1, %c0_i32_0 : i32
    scf.if %2 {
      %cst_9 = arith.constant 0.000000e+00 : f32
      %12 = vector.broadcast %cst_9 : f32 to vector<16x128xf32>
      %c0_10 = arith.constant 0 : index
      %c0_11 = arith.constant 0 : index
      %13 = vector.load %arg8[%c0_10, %c0_11] : memref<16x128xf32, #tpu.memory_space<vmem>>, vector<16x128xf32>
      tpu.vector_store %arg8[%c0_10, %c0_11], %12 {strides = array<i32>} : memref<16x128xf32, #tpu.memory_space<vmem>>, vector<16x128xf32>,
    } else {
    }
    %c0 = arith.constant 0 : index
    %c0_1 = arith.constant 0 : index
    %3 = vector.load %arg8[%c0, %c0_1] : memref<16x128xf32, #tpu.memory_space<vmem>>, vector<16x128xf32>
    %c0_2 = arith.constant 0 : index
    %c0_3 = arith.constant 0 : index
    %4 = vector.load %arg3[%c0_2, %c0_3] : memref<16x1024xbf16, #tpu.memory_space<vmem>>, vector<16x1024xbf16>
    %c0_4 = arith.constant 0 : index
    %c0_5 = arith.constant 0 : index
    %5 = vector.load %arg4[%c0_4, %c0_5] : memref<1024x128xbf16, #tpu.memory_space<vmem>>, vector<1024x128xbf16>
    %cst = arith.constant dense<0.000000e+00> : vector<16x128xf32>
    %6 = tpu.matmul %4, %5, %cst {dimension_numbers = #tpu.dot_dimension_numbers<[1], [0], [0], [1], [0, 0, 1, 1], [], []>} : vector<16x1024xbf16>, vector<1024x128xbf16>, vector<16x128xf32> -> vector<16x128xf32>
    %7 = arith.addf %3, %6 : vector<16x128xf32>
    %c0_6 = arith.constant 0 : index
    %c0_7 = arith.constant 0 : index
    %8 = vector.load %arg8[%c0_6, %c0_7] : memref<16x128xf32, #tpu.memory_space<vmem>>, vector<16x128xf32>
    tpu.vector_store %arg8[%c0_6, %c0_7], %7 {strides = array<i32>} : memref<16x128xf32, #tpu.memory_space<vmem>>, vector<16x128xf32>,
    %c1_i32 = arith.constant 1 : i32
    %9 = arith.cmpi eq, %arg2, %c1_i32 : i32
    %10 = arith.extui %9 : i1 to i32
    %c0_i32_8 = arith.constant 0 : i32
    %11 = arith.cmpi ne, %10, %c0_i32_8 : i32
    scf.if %11 {
      %c0_9 = arith.constant 0 : index
      %c0_10 = arith.constant 0 : index
      %12 = vector.load %arg8[%c0_9, %c0_10] : memref<16x128xf32, #tpu.memory_space<vmem>>, vector<16x128xf32>
      %13 = arith.truncf %12 : vector<16x128xf32> to vector<16x128xbf16>
      %c0_11 = arith.constant 0 : index
      %c0_12 = arith.constant 0 : index
      %14 = vector.load %arg6[%c0_11, %c0_12] : memref<16x128xbf16, #tpu.memory_space<vmem>>, vector<16x128xbf16>
      tpu.vector_store %arg6[%c0_11, %c0_12], %13 {strides = array<i32>} : memref<16x128xbf16, #tpu.memory_space<vmem>>, vector<16x128xbf16>,
      %cst_13 = arith.constant dense<0.000000e+00> : vector<128xf32>
      %15 = vector.multi_reduction <add>, %12, %cst_13 [0] : vector<16x128xf32> to vector<128xf32>
      %16 = vector.shape_cast %15 : vector<128xf32> to vector<1x128xf32>
      %c0_14 = arith.constant 0 : index
      %c0_15 = arith.constant 0 : index
      %c0_16 = arith.constant 0 : index
      %17 = vector.load %arg7[%c0_14, %c0_15, %c0_16] : memref<1x2x128xf32, #tpu.memory_space<vmem>>, vector<1x1x128xf32>
      %18 = vector.shape_cast %17 : vector<1x1x128xf32> to vector<1x128xf32>
      %19 = vector.shape_cast %16 : vector<1x128xf32> to vector<1x1x128xf32>
      tpu.vector_store %arg7[%c0_14, %c0_15, %c0_16], %19 {strides = array<i32>} : memref<1x2x128xf32, #tpu.memory_space<vmem>>, vector<1x1x128xf32>,
      %20 = arith.mulf %12, %12 : vector<16x128xf32>
      %cst_17 = arith.constant dense<0.000000e+00> : vector<128xf32>
      %21 = vector.multi_reduction <add>, %20, %cst_17 [0] : vector<16x128xf32> to vector<128xf32>
      %22 = vector.shape_cast %21 : vector<128xf32> to vector<1x128xf32>
      %c0_18 = arith.constant 0 : index
      %c1 = arith.constant 1 : index
      %c0_19 = arith.constant 0 : index
      %23 = vector.load %arg7[%c0_18, %c1, %c0_19] : memref<1x2x128xf32, #tpu.memory_space<vmem>>, vector<1x1x128xf32>
      %24 = vector.shape_cast %23 : vector<1x1x128xf32> to vector<1x128xf32>
      %25 = vector.shape_cast %22 : vector<1x128xf32> to vector<1x1x128xf32>
      tpu.vector_store %arg7[%c0_18, %c1, %c0_19], %25 {strides = array<i32>} : memref<1x2x128xf32, #tpu.memory_space<vmem>>, vector<1x1x128xf32>,
    } else {
    }
    return
  }
  func.func @transform_0(%arg0: i32, %arg1: i32, %arg2: i32) -> (i32, i32) {
    %c0_i32 = arith.constant 0 : i32
    return %arg0, %arg2 : i32, i32
  }
  func.func @transform_1(%arg0: i32, %arg1: i32, %arg2: i32) -> (i32, i32) {
    %c0_i32 = arith.constant 0 : i32
    return %arg2, %arg1 : i32, i32
  }
  func.func @transform_2(%arg0: i32, %arg1: i32, %arg2: i32) -> (i32, i32) {
    %c0_i32 = arith.constant 0 : i32
    %c0_i32_0 = arith.constant 0 : i32
    return %c0_i32, %arg1 : i32, i32
  }
  func.func @transform_3(%arg0: i32, %arg1: i32, %arg2: i32) -> (i32, i32) {
    %c0_i32 = arith.constant 0 : i32
    return %arg0, %arg1 : i32, i32
  }
  func.func @transform_4(%arg0: i32, %arg1: i32, %arg2: i32) -> (i32, i32, i32) {
    %c0_i32 = arith.constant 0 : i32
    %c0_i32_0 = arith.constant 0 : i32
    return %arg0, %c0_i32, %arg1 : i32, i32, i32
  }
}

module attributes {stable_mosaic.version = 11 : i64} {
  func.func @_mm_kernel(%arg0: i32, %arg1: i32, %arg2: i32, %arg3: memref<16x1024xbf16, #tpu.memory_space<vmem>>, %arg4: memref<1024x128xbf16, #tpu.memory_space<vmem>>, %arg5: memref<1x128xf32, #tpu.memory_space<vmem>>, %arg6: memref<16x128xbf16, #tpu.memory_space<vmem>>, %arg7: memref<1x2x128xf32, #tpu.memory_space<vmem>>, %arg8: memref<16x128xf32, #tpu.memory_space<vmem>>) attributes {dimension_semantics = [#tpu.dimension_semantics<parallel>, #tpu.dimension_semantics<parallel>, #tpu.dimension_semantics<arbitrary>], iteration_bounds = array<i64: 1, 1, 4>, scalar_prefetch = 0 : i64, scratch_operands = 1 : i64, tpu.core_type = #tpu.core_type<tc>, window_params = [{transform_indices = @transform_0, window_bounds = array<i64: 16, 1024>}, {transform_indices = @transform_1, window_bounds = array<i64: 1024, 128>}, {transform_indices = @transform_2, window_bounds = array<i64: 1, 128>}, {transform_indices = @transform_3, window_bounds = array<i64: 16, 128>}, {transform_indices = @transform_4, window_bounds = array<i64: 1, 2, 128>}]} {
    %c0_i32 = arith.constant 0 : i32
    %0 = arith.cmpi eq, %arg2, %c0_i32 : i32
    %1 = arith.extui %0 : i1 to i32
    %c0_i32_0 = arith.constant 0 : i32
    %2 = arith.cmpi ne, %1, %c0_i32_0 : i32
    scf.if %2 {
      %cst_9 = arith.constant 0.000000e+00 : f32
      %12 = vector.broadcast %cst_9 : f32 to vector<16x128xf32>
      %c0_10 = arith.constant 0 : index
      %c0_11 = arith.constant 0 : index
      %13 = vector.load %arg8[%c0_10, %c0_11] : memref<16x128xf32, #tpu.memory_space<vmem>>, vector<16x128xf32>
      tpu.vector_store %arg8[%c0_10, %c0_11], %12 {strides = array<i32>} : memref<16x128xf32, #tpu.memory_space<vmem>>, vector<16x128xf32>,
    } else {
    }
    %c0 = arith.constant 0 : index
    %c0_1 = arith.constant 0 : index
    %3 = vector.load %arg8[%c0, %c0_1] : memref<16x128xf32, #tpu.memory_space<vmem>>, vector<16x128xf32>
    %c0_2 = arith.constant 0 : index
    %c0_3 = arith.constant 0 : index
    %4 = vector.load %arg3[%c0_2, %c0_3] : memref<16x1024xbf16, #tpu.memory_space<vmem>>, vector<16x1024xbf16>
    %c0_4 = arith.constant 0 : index
    %c0_5 = arith.constant 0 : index
    %5 = vector.load %arg4[%c0_4, %c0_5] : memref<1024x128xbf16, #tpu.memory_space<vmem>>, vector<1024x128xbf16>
    %cst = arith.constant dense<0.000000e+00> : vector<16x128xf32>
    %6 = tpu.matmul %4, %5, %cst {dimension_numbers = #tpu.dot_dimension_numbers<[1], [0], [0], [1], [0, 0, 1, 1], [], []>} : vector<16x1024xbf16>, vector<1024x128xbf16>, vector<16x128xf32> -> vector<16x128xf32>
    %7 = arith.addf %3, %6 : vector<16x128xf32>
    %c0_6 = arith.constant 0 : index
    %c0_7 = arith.constant 0 : index
    %8 = vector.load %arg8[%c0_6, %c0_7] : memref<16x128xf32, #tpu.memory_space<vmem>>, vector<16x128xf32>
    tpu.vector_store %arg8[%c0_6, %c0_7], %7 {strides = array<i32>} : memref<16x128xf32, #tpu.memory_space<vmem>>, vector<16x128xf32>,
    %c3_i32 = arith.constant 3 : i32
    %9 = arith.cmpi eq, %arg2, %c3_i32 : i32
    %10 = arith.extui %9 : i1 to i32
    %c0_i32_8 = arith.constant 0 : i32
    %11 = arith.cmpi ne, %10, %c0_i32_8 : i32
    scf.if %11 {
      %c0_9 = arith.constant 0 : index
      %c0_10 = arith.constant 0 : index
      %12 = vector.load %arg8[%c0_9, %c0_10] : memref<16x128xf32, #tpu.memory_space<vmem>>, vector<16x128xf32>
      %13 = arith.truncf %12 : vector<16x128xf32> to vector<16x128xbf16>
      %c0_11 = arith.constant 0 : index
      %c0_12 = arith.constant 0 : index
      %14 = vector.load %arg6[%c0_11, %c0_12] : memref<16x128xbf16, #tpu.memory_space<vmem>>, vector<16x128xbf16>
      tpu.vector_store %arg6[%c0_11, %c0_12], %13 {strides = array<i32>} : memref<16x128xbf16, #tpu.memory_space<vmem>>, vector<16x128xbf16>,
      %cst_13 = arith.constant dense<0.000000e+00> : vector<128xf32>
      %15 = vector.multi_reduction <add>, %12, %cst_13 [0] : vector<16x128xf32> to vector<128xf32>
      %16 = vector.shape_cast %15 : vector<128xf32> to vector<1x128xf32>
      %c0_14 = arith.constant 0 : index
      %c0_15 = arith.constant 0 : index
      %c0_16 = arith.constant 0 : index
      %17 = vector.load %arg7[%c0_14, %c0_15, %c0_16] : memref<1x2x128xf32, #tpu.memory_space<vmem>>, vector<1x1x128xf32>
      %18 = vector.shape_cast %17 : vector<1x1x128xf32> to vector<1x128xf32>
      %19 = vector.shape_cast %16 : vector<1x128xf32> to vector<1x1x128xf32>
      tpu.vector_store %arg7[%c0_14, %c0_15, %c0_16], %19 {strides = array<i32>} : memref<1x2x128xf32, #tpu.memory_space<vmem>>, vector<1x1x128xf32>,
      %20 = arith.mulf %12, %12 : vector<16x128xf32>
      %cst_17 = arith.constant dense<0.000000e+00> : vector<128xf32>
      %21 = vector.multi_reduction <add>, %20, %cst_17 [0] : vector<16x128xf32> to vector<128xf32>
      %22 = vector.shape_cast %21 : vector<128xf32> to vector<1x128xf32>
      %c0_18 = arith.constant 0 : index
      %c1 = arith.constant 1 : index
      %c0_19 = arith.constant 0 : index
      %23 = vector.load %arg7[%c0_18, %c1, %c0_19] : memref<1x2x128xf32, #tpu.memory_space<vmem>>, vector<1x1x128xf32>
      %24 = vector.shape_cast %23 : vector<1x1x128xf32> to vector<1x128xf32>
      %25 = vector.shape_cast %22 : vector<1x128xf32> to vector<1x1x128xf32>
      tpu.vector_store %arg7[%c0_18, %c1, %c0_19], %25 {strides = array<i32>} : memref<1x2x128xf32, #tpu.memory_space<vmem>>, vector<1x1x128xf32>,
    } else {
    }
    return
  }
  func.func @transform_0(%arg0: i32, %arg1: i32, %arg2: i32) -> (i32, i32) {
    %c0_i32 = arith.constant 0 : i32
    return %arg0, %arg2 : i32, i32
  }
  func.func @transform_1(%arg0: i32, %arg1: i32, %arg2: i32) -> (i32, i32) {
    %c0_i32 = arith.constant 0 : i32
    return %arg2, %arg1 : i32, i32
  }
  func.func @transform_2(%arg0: i32, %arg1: i32, %arg2: i32) -> (i32, i32) {
    %c0_i32 = arith.constant 0 : i32
    %c0_i32_0 = arith.constant 0 : i32
    return %c0_i32, %arg1 : i32, i32
  }
  func.func @transform_3(%arg0: i32, %arg1: i32, %arg2: i32) -> (i32, i32) {
    %c0_i32 = arith.constant 0 : i32
    return %arg0, %arg1 : i32, i32
  }
  func.func @transform_4(%arg0: i32, %arg1: i32, %arg2: i32) -> (i32, i32, i32) {
    %c0_i32 = arith.constant 0 : i32
    %c0_i32_0 = arith.constant 0 : i32
    return %arg0, %c0_i32, %arg1 : i32, i32, i32
  }
}

module attributes {stable_mosaic.version = 11 : i64} {
  func.func @_mm_kernel(%arg0: i32, %arg1: i32, %arg2: i32, %arg3: memref<16x1024xbf16, #tpu.memory_space<vmem>>, %arg4: memref<1024x128xbf16, #tpu.memory_space<vmem>>, %arg5: memref<1x128xf32, #tpu.memory_space<vmem>>, %arg6: memref<16x128xf32, #tpu.memory_space<vmem>>, %arg7: memref<16x128xf32, #tpu.memory_space<vmem>>) attributes {dimension_semantics = [#tpu.dimension_semantics<parallel>, #tpu.dimension_semantics<parallel>, #tpu.dimension_semantics<arbitrary>], iteration_bounds = array<i64: 1, 1, 8>, scalar_prefetch = 0 : i64, scratch_operands = 1 : i64, tpu.core_type = #tpu.core_type<tc>, window_params = [{transform_indices = @transform_0, window_bounds = array<i64: 16, 1024>}, {transform_indices = @transform_1, window_bounds = array<i64: 1024, 128>}, {transform_indices = @transform_2, window_bounds = array<i64: 1, 128>}, {transform_indices = @transform_3, window_bounds = array<i64: 16, 128>}]} {
    %c0_i32 = arith.constant 0 : i32
    %0 = arith.cmpi eq, %arg2, %c0_i32 : i32
    %1 = arith.extui %0 : i1 to i32
    %c0_i32_0 = arith.constant 0 : i32
    %2 = arith.cmpi ne, %1, %c0_i32_0 : i32
    scf.if %2 {
      %cst_9 = arith.constant 0.000000e+00 : f32
      %12 = vector.broadcast %cst_9 : f32 to vector<16x128xf32>
      %c0_10 = arith.constant 0 : index
      %c0_11 = arith.constant 0 : index
      %13 = vector.load %arg7[%c0_10, %c0_11] : memref<16x128xf32, #tpu.memory_space<vmem>>, vector<16x128xf32>
      tpu.vector_store %arg7[%c0_10, %c0_11], %12 {strides = array<i32>} : memref<16x128xf32, #tpu.memory_space<vmem>>, vector<16x128xf32>,
    } else {
    }
    %c0 = arith.constant 0 : index
    %c0_1 = arith.constant 0 : index
    %3 = vector.load %arg7[%c0, %c0_1] : memref<16x128xf32, #tpu.memory_space<vmem>>, vector<16x128xf32>
    %c0_2 = arith.constant 0 : index
    %c0_3 = arith.constant 0 : index
    %4 = vector.load %arg3[%c0_2, %c0_3] : memref<16x1024xbf16, #tpu.memory_space<vmem>>, vector<16x1024xbf16>
    %c0_4 = arith.constant 0 : index
    %c0_5 = arith.constant 0 : index
    %5 = vector.load %arg4[%c0_4, %c0_5] : memref<1024x128xbf16, #tpu.memory_space<vmem>>, vector<1024x128xbf16>
    %cst = arith.constant dense<0.000000e+00> : vector<16x128xf32>
    %6 = tpu.matmul %4, %5, %cst {dimension_numbers = #tpu.dot_dimension_numbers<[1], [0], [0], [1], [0, 0, 1, 1], [], []>} : vector<16x1024xbf16>, vector<1024x128xbf16>, vector<16x128xf32> -> vector<16x128xf32>
    %7 = arith.addf %3, %6 : vector<16x128xf32>
    %c0_6 = arith.constant 0 : index
    %c0_7 = arith.constant 0 : index
    %8 = vector.load %arg7[%c0_6, %c0_7] : memref<16x128xf32, #tpu.memory_space<vmem>>, vector<16x128xf32>
    tpu.vector_store %arg7[%c0_6, %c0_7], %7 {strides = array<i32>} : memref<16x128xf32, #tpu.memory_space<vmem>>, vector<16x128xf32>,
    %c7_i32 = arith.constant 7 : i32
    %9 = arith.cmpi eq, %arg2, %c7_i32 : i32
    %10 = arith.extui %9 : i1 to i32
    %c0_i32_8 = arith.constant 0 : i32
    %11 = arith.cmpi ne, %10, %c0_i32_8 : i32
    scf.if %11 {
      %c0_9 = arith.constant 0 : index
      %c0_10 = arith.constant 0 : index
      %12 = vector.load %arg7[%c0_9, %c0_10] : memref<16x128xf32, #tpu.memory_space<vmem>>, vector<16x128xf32>
      %c0_11 = arith.constant 0 : index
      %c0_12 = arith.constant 0 : index
      %13 = vector.load %arg5[%c0_11, %c0_12] : memref<1x128xf32, #tpu.memory_space<vmem>>, vector<1x128xf32>
      %14 = vector.broadcast %13 : vector<1x128xf32> to vector<16x128xf32>
      %15 = arith.addf %12, %14 : vector<16x128xf32>
      %c0_13 = arith.constant 0 : index
      %c0_14 = arith.constant 0 : index
      %16 = vector.load %arg6[%c0_13, %c0_14] : memref<16x128xf32, #tpu.memory_space<vmem>>, vector<16x128xf32>
      tpu.vector_store %arg6[%c0_13, %c0_14], %15 {strides = array<i32>} : memref<16x128xf32, #tpu.memory_space<vmem>>, vector<16x128xf32>,
    } else {
    }
    return
  }
  func.func @transform_0(%arg0: i32, %arg1: i32, %arg2: i32) -> (i32, i32) {
    %c0_i32 = arith.constant 0 : i32
    return %arg0, %arg2 : i32, i32
  }
  func.func @transform_1(%arg0: i32, %arg1: i32, %arg2: i32) -> (i32, i32) {
    %c0_i32 = arith.constant 0 : i32
    return %arg2, %arg1 : i32, i32
  }
  func.func @transform_2(%arg0: i32, %arg1: i32, %arg2: i32) -> (i32, i32) {
    %c0_i32 = arith.constant 0 : i32
    %c0_i32_0 = arith.constant 0 : i32
    return %c0_i32, %arg1 : i32, i32
  }
  func.func @transform_3(%arg0: i32, %arg1: i32, %arg2: i32) -> (i32, i32) {
    %c0_i32 = arith.constant 0 : i32
    return %arg0, %arg1 : i32, i32
  }
}

</mosaic_0001>

<bundles_post_ra>
// kernel: _lambda_.5
= control target key start
LH: loop header
LB: loop body
LE: loop exit
PB: predicated region body
PF: predicated region fallthrough
CT: control target
= control target key end

     0   :  { %v6055_v0 = vmov 0   ;;  %s7308_s1 = inlined_call_operand.vmem [shape: bf16[512,128], index: 1, kind: input, shape index: {}]   ;;  %s7309_s0 = inlined_call_operand.vmem [shape: bf16[1024,512], index: 0, kind: input, shape index: {}]   ;;  %s7310_s2 = inlined_call_operand.vmem [shape: f32[1,128], index: 2, kind: input, shape index: {}]   ;;  %s7311_s3 = inlined_call_operand.vmem [shape: bf16[1024,128], index: 3, kind: output, shape index: {}]  }
   0x1   :  { %2067 = vmatprep.subr.bf16.mxu0 %v6055_v0  ;;  %2612 = vmatprep.subr.bf16.mxu1 %v6055_v0  ;;  %v5636_v1 = vld [vmem:[%s7308_s1] sm:$0xff]   ;;  %v5638_v3 = vld [vmem:[%s7308_s1 + $0x8] sm:$0xff]   ;;  %v5640_v5 = vld [vmem:[%s7308_s1 + $0x10] sm:$0xff]  }
   0x2   :  { %v5637_v2 = vld [vmem:[%s7308_s1 + $0x80] sm:$0xff]   ;;  %2068 = vmatpush1.bf16.msra.mxu0 %v5636_v1  ;;  %v5639_v4 = vld [vmem:[%s7308_s1 + $0x88] sm:$0xff]   ;;  %v5641_v6 = vld [vmem:[%s7308_s1 + $0x90] sm:$0xff]  }
   0x3   :  { %2613 = vmatpush1.bf16.msra.mxu1 %v5637_v2  ;;  %2069 = vmatprep.subr.bf16.mxu0 %v6055_v0  ;;  %v5642_v7 = vld [vmem:[%s7308_s1 + $0x18] sm:$0xff]   ;;  %v5644_v9 = vld [vmem:[%s7308_s1 + $0x20] sm:$0xff]   ;;  %v5646_v11 = vld [vmem:[%s7308_s1 + $0x28] sm:$0xff]  }
   0x4   :  { %2614 = vmatprep.subr.bf16.mxu1 %v6055_v0  ;;  %v5643_v8 = vld [vmem:[%s7308_s1 + $0x98] sm:$0xff]   ;;  %v5645_v10 = vld [vmem:[%s7308_s1 + $0xa0] sm:$0xff]   ;;  %v5647_v12 = vld [vmem:[%s7308_s1 + $0xa8] sm:$0xff]  }
   0x5   :  { %v5648_v13 = vld [vmem:[%s7308_s1 + $0x30] sm:$0xff]   ;;  %v5650_v15 = vld [vmem:[%s7308_s1 + $0x38] sm:$0xff]   ;;  %v5652_v17 = vld [vmem:[%s7308_s1 + $0x40] sm:$0xff]  }
   0x6   :  { %2070 = vmatpush1.bf16.msra.mxu0 %v5638_v3  ;;  %v5649_v14 = vld [vmem:[%s7308_s1 + $0xb0] sm:$0xff]   ;;  %v5651_v16 = vld [vmem:[%s7308_s1 + $0xb8] sm:$0xff]   ;;  %v5653_v18 = vld [vmem:[%s7308_s1 + $0xc0] sm:$0xff]  }
   0x7   :  { %2615 = vmatpush1.bf16.msra.mxu1 %v5639_v4  ;;  %2071 = vmatprep.subr.bf16.mxu0 %v6055_v0  ;;  %v5670_v19 = vld [vmem:[%s7309_s0 + $0x4] ss:$16 sps:$4 sm:$0xff]   ;;  %v5654_v20 = vld [vmem:[%s7308_s1 + $0x48] sm:$0xff]   ;;  %v5658_v25 = vld [vmem:[%s7308_s1 + $0x58] sm:$0xff]  }
   0x8   :  { %2616 = vmatprep.subr.bf16.mxu1 %v6055_v0  ;;  %v5673_v21 = vld [vmem:[%s7309_s0 + $0xc] ss:$16 sps:$4 sm:$0xff]   ;;  %2099 = vmatprep.mubr.bf16.mxu0 %v5670_v19  ;;  %v5656_v23 = vld [vmem:[%s7308_s1 + $0x50] sm:$0xff]   ;;  %v5660_v27 = vld [vmem:[%s7308_s1 + $0x60] sm:$0xff]  }
   0x9   :  { %v5655_v22 = vld [vmem:[%s7308_s1 + $0xc8] sm:$0xff]   ;;  %2644 = vmatprep.mubr.bf16.mxu1 %v5673_v21  ;;  %v5657_v24 = vld [vmem:[%s7308_s1 + $0xd0] sm:$0xff]   ;;  %v5659_v26 = vld [vmem:[%s7308_s1 + $0xd8] sm:$0xff]  }
   0xa   :  { %2072 = vmatpush1.bf16.msra.mxu0 %v5640_v5  ;;  %v5661_v28 = vld [vmem:[%s7308_s1 + $0xe0] sm:$0xff]   ;;  %v5662_v29 = vld [vmem:[%s7308_s1 + $0x68] sm:$0xff]   ;;  %v5664_v31 = vld [vmem:[%s7308_s1 + $0x70] sm:$0xff]  }
   0xb   :  { %2617 = vmatpush1.bf16.msra.mxu1 %v5641_v6  ;;  %2073 = vmatprep.subr.bf16.mxu0 %v6055_v0  ;;  %v5663_v30 = vld [vmem:[%s7308_s1 + $0xe8] sm:$0xff]   ;;  %v5665_v32 = vld [vmem:[%s7308_s1 + $0xf0] sm:$0xff]   ;;  %v5666_v33 = vld [vmem:[%s7308_s1 + $0x78] sm:$0xff]  }
   0xc   :  { %2618 = vmatprep.subr.bf16.mxu1 %v6055_v0  ;;  %v5667_v34 = vld [vmem:[%s7308_s1 + $0xf8] sm:$0xff]   ;;  %v5668_v35 = vld [vmem:[%s7309_s0] ss:$16 sps:$4 sm:$0xff]   ;;  %v5674_v37 = vld [vmem:[%s7309_s0 + $0x24] ss:$16 sps:$4 sm:$0xff]  }
   0xd   :  { %v5671_v36 = vld [vmem:[%s7309_s0 + $0x8] ss:$16 sps:$4 sm:$0xff]   ;;  %v5676_v38 = vld [vmem:[%s7309_s0 + $0x2c] ss:$16 sps:$4 sm:$0xff]   ;;  %v5678_v39 = vld [vmem:[%s7309_s0 + $0x20] ss:$16 sps:$4 sm:$0xff]  }
   0xe   :  { %2074 = vmatpush1.bf16.msra.mxu0 %v5642_v7  ;;  %v5679_v40 = vld [vmem:[%s7309_s0 + $0x28] ss:$16 sps:$4 sm:$0xff]   ;;  %v5680_v41 = vld [vmem:[%s7309_s0 + $0x44] ss:$16 sps:$4 sm:$0xff]   ;;  %v5682_v42 = vld [vmem:[%s7309_s0 + $0x4c] ss:$16 sps:$4 sm:$0xff]  }
   0xf   :  { %2619 = vmatpush1.bf16.msra.mxu1 %v5643_v8  ;;  %2075 = vmatprep.subr.bf16.mxu0 %v6055_v0  ;;  %v5684_v43 = vld [vmem:[%s7309_s0 + $0x40] ss:$16 sps:$4 sm:$0xff]   ;;  %v5685_v44 = vld [vmem:[%s7309_s0 + $0x48] ss:$16 sps:$4 sm:$0xff]   ;;  %v5686_v45 = vld [vmem:[%s7309_s0 + $0x64] ss:$16 sps:$4 sm:$0xff]  }
  0x10   :  { %2620 = vmatprep.subr.bf16.mxu1 %v6055_v0  ;;  %v5688_v46 = vld [vmem:[%s7309_s0 + $0x6c] ss:$16 sps:$4 sm:$0xff]   ;;  %v5690_v47 = vld [vmem:[%s7309_s0 + $0x60] ss:$16 sps:$4 sm:$0xff]   ;;  %v5691_v48 = vld [vmem:[%s7309_s0 + $0x68] ss:$16 sps:$4 sm:$0xff]  }
  0x11   :  { %v5692_v49 = vld [vmem:[%s7309_s0 + $0x84] ss:$16 sps:$4 sm:$0xff]   ;;  %v5694_v50 = vld [vmem:[%s7309_s0 + $0x8c] ss:$16 sps:$4 sm:$0xff]   ;;  %v5696_v51 = vld [vmem:[%s7309_s0 + $0x80] ss:$16 sps:$4 sm:$0xff]  }
  0x12   :  { %2076 = vmatpush1.bf16.msra.mxu0 %v5644_v9  ;;  %v5697_v52 = vld [vmem:[%s7309_s0 + $0x88] ss:$16 sps:$4 sm:$0xff]   ;;  %v5698_v53 = vld [vmem:[%s7309_s0 + $0xa4] ss:$16 sps:$4 sm:$0xff]   ;;  %v5700_v54 = vld [vmem:[%s7309_s0 + $0xac] ss:$16 sps:$4 sm:$0xff]  }
  0x13   :  { %2621 = vmatpush1.bf16.msra.mxu1 %v5645_v10  ;;  %2077 = vmatprep.subr.bf16.mxu0 %v6055_v0  ;;  %v5702_v55 = vld [vmem:[%s7309_s0 + $0xa0] ss:$16 sps:$4 sm:$0xff]   ;;  %v5703_v56 = vld [vmem:[%s7309_s0 + $0xa8] ss:$16 sps:$4 sm:$0xff]   ;;  %v5704_v57 = vld [vmem:[%s7309_s0 + $0xc4] ss:$16 sps:$4 sm:$0xff]  }
  0x14   :  { %2622 = vmatprep.subr.bf16.mxu1 %v6055_v0  ;;  %v5706_v58 = vld [vmem:[%s7309_s0 + $0xcc] ss:$16 sps:$4 sm:$0xff]   ;;  %v5708_v59 = vld [vmem:[%s7309_s0 + $0xc0] ss:$16 sps:$4 sm:$0xff]   ;;  %v5709_v60 = vld [vmem:[%s7309_s0 + $0xc8] ss:$16 sps:$4 sm:$0xff]  }
  0x15   :  { %v5710_v61 = vld [vmem:[%s7309_s0 + $0xe4] ss:$16 sps:$4 sm:$0xff]   ;;  %v5712_v62 = vld [vmem:[%s7309_s0 + $0xec] ss:$16 sps:$4 sm:$0xff]   ;;  %v5714_v63 = vld [vmem:[%s7309_s0 + $0xe0] ss:$16 sps:$4 sm:$0xff]  }
  0x16   :  { %2078 = vmatpush1.bf16.msra.mxu0 %v5646_v11  ;;  %v5716_v1 = vld [vmem:[%s7309_s0 + $0x104] ss:$16 sps:$4 sm:$0xff]   ;;  %v5718_v2 = vld [vmem:[%s7309_s0 + $0x10c] ss:$16 sps:$4 sm:$0xff]   ;;  %v5720_v3 = vld [vmem:[%s7309_s0 + $0x100] ss:$16 sps:$4 sm:$0xff]  }
  0x17   :  { %2623 = vmatpush1.bf16.msra.mxu1 %v5647_v12  ;;  %2079 = vmatprep.subr.bf16.mxu0 %v6055_v0  ;;  %v5721_v4 = vld [vmem:[%s7309_s0 + $0x108] ss:$16 sps:$4 sm:$0xff]   ;;  %v5722_v5 = vld [vmem:[%s7309_s0 + $0x124] ss:$16 sps:$4 sm:$0xff]   ;;  %v5724_v6 = vld [vmem:[%s7309_s0 + $0x12c] ss:$16 sps:$4 sm:$0xff]  }
  0x18   :  { %2624 = vmatprep.subr.bf16.mxu1 %v6055_v0  ;;  %v5726_v7 = vld [vmem:[%s7309_s0 + $0x120] ss:$16 sps:$4 sm:$0xff]   ;;  %v5727_v8 = vld [vmem:[%s7309_s0 + $0x128] ss:$16 sps:$4 sm:$0xff]   ;;  %v5728_v9 = vld [vmem:[%s7309_s0 + $0x144] ss:$16 sps:$4 sm:$0xff]  }
  0x19   :  { %v5730_v10 = vld [vmem:[%s7309_s0 + $0x14c] ss:$16 sps:$4 sm:$0xff]   ;;  %v5732_v11 = vld [vmem:[%s7309_s0 + $0x140] ss:$16 sps:$4 sm:$0xff]   ;;  %v5733_v12 = vld [vmem:[%s7309_s0 + $0x148] ss:$16 sps:$4 sm:$0xff]  }
  0x1a   :  { %2080 = vmatpush1.bf16.msra.mxu0 %v5648_v13  ;;  %v5734_v13 = vld [vmem:[%s7309_s0 + $0x164] ss:$16 sps:$4 sm:$0xff]   ;;  %v5744_v19 = vld [vmem:[%s7309_s0 + $0x180] ss:$16 sps:$4 sm:$0xff]  }
  0x1b   :  { %2625 = vmatpush1.bf16.msra.mxu1 %v5649_v14  ;;  %2081 = vmatprep.subr.bf16.mxu0 %v6055_v0  ;;  %v5736_v14 = vld [vmem:[%s7309_s0 + $0x16c] ss:$16 sps:$4 sm:$0xff]   ;;  %v5746_v21 = vld [vmem:[%s7309_s0 + $0x1a4] ss:$16 sps:$4 sm:$0xff]  }
  0x1c   :  { %2626 = vmatprep.subr.bf16.mxu1 %v6055_v0 }
  0x1e   :  { %2082 = vmatpush1.bf16.msra.mxu0 %v5650_v15  ;;  %v5738_v15 = vld [vmem:[%s7309_s0 + $0x160] ss:$16 sps:$4 sm:$0xff]  }
  0x1f   :  { %2627 = vmatpush1.bf16.msra.mxu1 %v5651_v16  ;;  %2083 = vmatprep.subr.bf16.mxu0 %v6055_v0  ;;  %v5739_v16 = vld [vmem:[%s7309_s0 + $0x168] ss:$16 sps:$4 sm:$0xff]  }
  0x20   :  { %2628 = vmatprep.subr.bf16.mxu1 %v6055_v0 }
  0x22   :  { %2084 = vmatpush1.bf16.msra.mxu0 %v5652_v17  ;;  %v5740_v17 = vld [vmem:[%s7309_s0 + $0x184] ss:$16 sps:$4 sm:$0xff]  }
  0x23   :  { %2629 = vmatpush1.bf16.msra.mxu1 %v5653_v18  ;;  %2085 = vmatprep.subr.bf16.mxu0 %v6055_v0  ;;  %v5742_v18 = vld [vmem:[%s7309_s0 + $0x18c] ss:$16 sps:$4 sm:$0xff]  }
  0x24   :  { %2630 = vmatprep.subr.bf16.mxu1 %v6055_v0 }
  0x26   :  { %2086 = vmatpush1.bf16.msra.mxu0 %v5654_v20  ;;  %v5745_v20 = vld [vmem:[%s7309_s0 + $0x188] ss:$16 sps:$4 sm:$0xff]  }
  0x27   :  { %2631 = vmatpush1.bf16.msra.mxu1 %v5655_v22  ;;  %2087 = vmatprep.subr.bf16.mxu0 %v6055_v0  ;;  %v5748_v22 = vld [vmem:[%s7309_s0 + $0x1ac] ss:$16 sps:$4 sm:$0xff]  }
  0x28   :  { %2632 = vmatprep.subr.bf16.mxu1 %v6055_v0 }
  0x2a   :  { %2088 = vmatpush1.bf16.msra.mxu0 %v5656_v23  ;;  %v5750_v23 = vld [vmem:[%s7309_s0 + $0x1a0] ss:$16 sps:$4 sm:$0xff]  }
  0x2b   :  { %2633 = vmatpush1.bf16.msra.mxu1 %v5657_v24  ;;  %2089 = vmatprep.subr.bf16.mxu0 %v6055_v0  ;;  %v5751_v24 = vld [vmem:[%s7309_s0 + $0x1a8] ss:$16 sps:$4 sm:$0xff]  }
  0x2c   :  { %2634 = vmatprep.subr.bf16.mxu1 %v6055_v0 }
  0x2e   :  { %2090 = vmatpush1.bf16.msra.mxu0 %v5658_v25  ;;  %v5752_v25 = vld [vmem:[%s7309_s0 + $0x1c4] ss:$16 sps:$4 sm:$0xff]  }
  0x2f   :  { %2635 = vmatpush1.bf16.msra.mxu1 %v5659_v26  ;;  %2091 = vmatprep.subr.bf16.mxu0 %v6055_v0  ;;  %v5754_v26 = vld [vmem:[%s7309_s0 + $0x1cc] ss:$16 sps:$4 sm:$0xff]  }
  0x30   :  { %2636 = vmatprep.subr.bf16.mxu1 %v6055_v0 }
  0x32   :  { %2092 = vmatpush1.bf16.msra.mxu0 %v5660_v27  ;;  %v5756_v27 = vld [vmem:[%s7309_s0 + $0x1c0] ss:$16 sps:$4 sm:$0xff]  }
  0x33   :  { %2637 = vmatpush1.bf16.msra.mxu1 %v5661_v28  ;;  %2093 = vmatprep.subr.bf16.mxu0 %v6055_v0  ;;  %v5757_v28 = vld [vmem:[%s7309_s0 + $0x1c8] ss:$16 sps:$4 sm:$0xff]  }
  0x34   :  { %2638 = vmatprep.subr.bf16.mxu1 %v6055_v0 }
  0x36   :  { %2094 = vmatpush1.bf16.msra.mxu0 %v5662_v29  ;;  %v5758_v29 = vld [vmem:[%s7309_s0 + $0x1e4] ss:$16 sps:$4 sm:$0xff]  }
  0x37   :  { %2639 = vmatpush1.bf16.msra.mxu1 %v5663_v30  ;;  %2095 = vmatprep.subr.bf16.mxu0 %v6055_v0  ;;  %v5760_v30 = vld [vmem:[%s7309_s0 + $0x1ec] ss:$16 sps:$4 sm:$0xff]  }
  0x38   :  { %2640 = vmatprep.subr.bf16.mxu1 %v6055_v0 }
  0x3a   :  { %2096 = vmatpush1.bf16.msra.mxu0 %v5664_v31  ;;  %v5762_v31 = vld [vmem:[%s7309_s0 + $0x1e0] ss:$16 sps:$4 sm:$0xff]  }
  0x3b   :  { %2641 = vmatpush1.bf16.msra.mxu1 %v5665_v32  ;;  %2097 = vmatprep.subr.bf16.mxu0 %v6055_v0  ;;  %v5763_v32 = vld [vmem:[%s7309_s0 + $0x1e8] ss:$16 sps:$4 sm:$0xff]  }
  0x3c   :  { %2642 = vmatprep.subr.bf16.mxu1 %v6055_v0  ;;  %v5715_v0 = vld [vmem:[%s7309_s0 + $0xe8] ss:$16 sps:$4 sm:$0xff]  }
  0x3e   :  { %2098 = vmatpush1.bf16.msra.mxu0 %v5666_v33  ;;  %v5764_v33 = vld [vmem:[%s7309_s0 + $0x204] ss:$16 sps:$4 sm:$0xff]  }
  0x3f   :  { %2643 = vmatpush1.bf16.msra.mxu1 %v5667_v34  ;;  %v5766_v34 = vld [vmem:[%s7309_s0 + $0x20c] ss:$16 sps:$4 sm:$0xff]  }
  0x41   :  { %2100 = vmatmul.mubr.bf16.vlgmr.msra.gmra.mrb[0].mxu0 %v5668_v35  ;;  %v5768_v35 = vld [vmem:[%s7309_s0 + $0x200] ss:$16 sps:$4 sm:$0xff]  }
  0x42   :  { %2645 = vmatmul.mubr.bf16.vlgmr.msra.gmra.mrb[0].mxu1 %v5671_v36  ;;  %2107 = vmatprep.mubr.bf16.mxu0 %v5674_v37  ;;  %v5769_v36 = vld [vmem:[%s7309_s0 + $0x208] ss:$16 sps:$4 sm:$0xff]   ;;  %v5770_v37 = vld [vmem:[%s7309_s0 + $0x224] ss:$16 sps:$4 sm:$0xff]  }
  0x43   :  { %2652 = vmatprep.mubr.bf16.mxu1 %v5676_v38  ;;  %v5772_v38 = vld [vmem:[%s7309_s0 + $0x22c] ss:$16 sps:$4 sm:$0xff]  }
  0x49   :  { %2108 = vmatmul.mubr.bf16.gmra.mrb[4].mxu0 %v5678_v39  ;;  %v5774_v39 = vld [vmem:[%s7309_s0 + $0x220] ss:$16 sps:$4 sm:$0xff]  }
  0x4a   :  { %2653 = vmatmul.mubr.bf16.gmra.mrb[4].mxu1 %v5679_v40  ;;  %2115 = vmatprep.mubr.bf16.mxu0 %v5680_v41  ;;  %v5775_v40 = vld [vmem:[%s7309_s0 + $0x228] ss:$16 sps:$4 sm:$0xff]   ;;  %v5776_v41 = vld [vmem:[%s7309_s0 + $0x244] ss:$16 sps:$4 sm:$0xff]  }
  0x4b   :  { %2660 = vmatprep.mubr.bf16.mxu1 %v5682_v42  ;;  %v5778_v42 = vld [vmem:[%s7309_s0 + $0x24c] ss:$16 sps:$4 sm:$0xff]  }
  0x51   :  { %2116 = vmatmul.mubr.bf16.gmra.mrb[8].mxu0 %v5684_v43  ;;  %v5780_v43 = vld [vmem:[%s7309_s0 + $0x240] ss:$16 sps:$4 sm:$0xff]  }
  0x52   :  { %2661 = vmatmul.mubr.bf16.gmra.mrb[8].mxu1 %v5685_v44  ;;  %2123 = vmatprep.mubr.bf16.mxu0 %v5686_v45  ;;  %v5781_v44 = vld [vmem:[%s7309_s0 + $0x248] ss:$16 sps:$4 sm:$0xff]   ;;  %v5782_v45 = vld [vmem:[%s7309_s0 + $0x264] ss:$16 sps:$4 sm:$0xff]  }
  0x53   :  { %2668 = vmatprep.mubr.bf16.mxu1 %v5688_v46  ;;  %v5784_v46 = vld [vmem:[%s7309_s0 + $0x26c] ss:$16 sps:$4 sm:$0xff]  }
  0x59   :  { %2124 = vmatmul.mubr.bf16.gmra.mrb[12].mxu0 %v5690_v47  ;;  %v5786_v47 = vld [vmem:[%s7309_s0 + $0x260] ss:$16 sps:$4 sm:$0xff]  }
  0x5a   :  { %2669 = vmatmul.mubr.bf16.gmra.mrb[12].mxu1 %v5691_v48  ;;  %2131 = vmatprep.mubr.bf16.mxu0 %v5692_v49  ;;  %v5787_v48 = vld [vmem:[%s7309_s0 + $0x268] ss:$16 sps:$4 sm:$0xff]   ;;  %v5788_v49 = vld [vmem:[%s7309_s0 + $0x284] ss:$16 sps:$4 sm:$0xff]  }
  0x5b   :  { %2676 = vmatprep.mubr.bf16.mxu1 %v5694_v50  ;;  %v5790_v50 = vld [vmem:[%s7309_s0 + $0x28c] ss:$16 sps:$4 sm:$0xff]  }
  0x61   :  { %2132 = vmatmul.mubr.bf16.gmra.mrb[16].mxu0 %v5696_v51  ;;  %v5792_v51 = vld [vmem:[%s7309_s0 + $0x280] ss:$16 sps:$4 sm:$0xff]  }
  0x62   :  { %2677 = vmatmul.mubr.bf16.gmra.mrb[16].mxu1 %v5697_v52  ;;  %2139 = vmatprep.mubr.bf16.mxu0 %v5698_v53  ;;  %v5793_v52 = vld [vmem:[%s7309_s0 + $0x288] ss:$16 sps:$4 sm:$0xff]   ;;  %v5794_v53 = vld [vmem:[%s7309_s0 + $0x2a4] ss:$16 sps:$4 sm:$0xff]  }
  0x63   :  { %2684 = vmatprep.mubr.bf16.mxu1 %v5700_v54  ;;  %v5796_v54 = vld [vmem:[%s7309_s0 + $0x2ac] ss:$16 sps:$4 sm:$0xff]  }
  0x69   :  { %2140 = vmatmul.mubr.bf16.gmra.mrb[20].mxu0 %v5702_v55  ;;  %v5798_v55 = vld [vmem:[%s7309_s0 + $0x2a0] ss:$16 sps:$4 sm:$0xff]  }
  0x6a   :  { %2685 = vmatmul.mubr.bf16.gmra.mrb[20].mxu1 %v5703_v56  ;;  %2147 = vmatprep.mubr.bf16.mxu0 %v5704_v57  ;;  %v5799_v56 = vld [vmem:[%s7309_s0 + $0x2a8] ss:$16 sps:$4 sm:$0xff]   ;;  %v5800_v57 = vld [vmem:[%s7309_s0 + $0x2c4] ss:$16 sps:$4 sm:$0xff]  }
  0x6b   :  { %2692 = vmatprep.mubr.bf16.mxu1 %v5706_v58  ;;  %v5802_v58 = vld [vmem:[%s7309_s0 + $0x2cc] ss:$16 sps:$4 sm:$0xff]  }
  0x71   :  { %2148 = vmatmul.mubr.bf16.gmra.mrb[24].mxu0 %v5708_v59  ;;  %v5804_v59 = vld [vmem:[%s7309_s0 + $0x2c0] ss:$16 sps:$4 sm:$0xff]  }
  0x72   :  { %2693 = vmatmul.mubr.bf16.gmra.mrb[24].mxu1 %v5709_v60  ;;  %2155 = vmatprep.mubr.bf16.mxu0 %v5710_v61  ;;  %v5805_v60 = vld [vmem:[%s7309_s0 + $0x2c8] ss:$16 sps:$4 sm:$0xff]   ;;  %v5806_v61 = vld [vmem:[%s7309_s0 + $0x2e4] ss:$16 sps:$4 sm:$0xff]  }
  0x73   :  { %2700 = vmatprep.mubr.bf16.mxu1 %v5712_v62  ;;  %v5808_v62 = vld [vmem:[%s7309_s0 + $0x2ec] ss:$16 sps:$4 sm:$0xff]  }
  0x79   :  { %2156 = vmatmul.mubr.bf16.gmra.mrb[28].mxu0 %v5714_v63  ;;  %v5810_v63 = vld [vmem:[%s7309_s0 + $0x2e0] ss:$16 sps:$4 sm:$0xff]  }
  0x7a   :  { %2701 = vmatmul.mubr.bf16.gmra.mrb[28].mxu1 %v5715_v0  ;;  %2163 = vmatprep.mubr.bf16.mxu0 %v5716_v1  ;;  %v5811_v0 = vld [vmem:[%s7309_s0 + $0x2e8] ss:$16 sps:$4 sm:$0xff]   ;;  %v5812_v1 = vld [vmem:[%s7309_s0 + $0x304] ss:$16 sps:$4 sm:$0xff]  }
  0x7b   :  { %2708 = vmatprep.mubr.bf16.mxu1 %v5718_v2  ;;  %v5814_v2 = vld [vmem:[%s7309_s0 + $0x30c] ss:$16 sps:$4 sm:$0xff]  }
  0x81   :  { %2164 = vmatmul.mubr.bf16.gmra.mrb[32].mxu0 %v5720_v3  ;;  %v5816_v3 = vld [vmem:[%s7309_s0 + $0x300] ss:$16 sps:$4 sm:$0xff]  }
  0x82   :  { %2709 = vmatmul.mubr.bf16.gmra.mrb[32].mxu1 %v5721_v4  ;;  %2171 = vmatprep.mubr.bf16.mxu0 %v5722_v5  ;;  %v5817_v4 = vld [vmem:[%s7309_s0 + $0x308] ss:$16 sps:$4 sm:$0xff]   ;;  %v5818_v5 = vld [vmem:[%s7309_s0 + $0x324] ss:$16 sps:$4 sm:$0xff]  }
  0x83   :  { %2716 = vmatprep.mubr.bf16.mxu1 %v5724_v6  ;;  %v5820_v6 = vld [vmem:[%s7309_s0 + $0x32c] ss:$16 sps:$4 sm:$0xff]  }
  0x89   :  { %2172 = vmatmul.mubr.bf16.gmra.mrb[36].mxu0 %v5726_v7  ;;  %v5822_v7 = vld [vmem:[%s7309_s0 + $0x320] ss:$16 sps:$4 sm:$0xff]  }
  0x8a   :  { %2717 = vmatmul.mubr.bf16.gmra.mrb[36].mxu1 %v5727_v8  ;;  %2179 = vmatprep.mubr.bf16.mxu0 %v5728_v9  ;;  %v5823_v8 = vld [vmem:[%s7309_s0 + $0x328] ss:$16 sps:$4 sm:$0xff]   ;;  %v5824_v9 = vld [vmem:[%s7309_s0 + $0x344] ss:$16 sps:$4 sm:$0xff]  }
  0x8b   :  { %2724 = vmatprep.mubr.bf16.mxu1 %v5730_v10  ;;  %v5826_v10 = vld [vmem:[%s7309_s0 + $0x34c] ss:$16 sps:$4 sm:$0xff]  }
  0x91   :  { %2180 = vmatmul.mubr.bf16.gmra.mrb[40].mxu0 %v5732_v11  ;;  %v5828_v11 = vld [vmem:[%s7309_s0 + $0x340] ss:$16 sps:$4 sm:$0xff]  }
  0x92   :  { %2725 = vmatmul.mubr.bf16.gmra.mrb[40].mxu1 %v5733_v12  ;;  %2187 = vmatprep.mubr.bf16.mxu0 %v5734_v13  ;;  %v5829_v12 = vld [vmem:[%s7309_s0 + $0x348] ss:$16 sps:$4 sm:$0xff]   ;;  %v5830_v13 = vld [vmem:[%s7309_s0 + $0x364] ss:$16 sps:$4 sm:$0xff]  }
  0x93   :  { %2732 = vmatprep.mubr.bf16.mxu1 %v5736_v14  ;;  %v5832_v14 = vld [vmem:[%s7309_s0 + $0x36c] ss:$16 sps:$4 sm:$0xff]  }
  0x99   :  { %2188 = vmatmul.mubr.bf16.gmra.mrb[44].mxu0 %v5738_v15 }
  0x9a   :  { %2733 = vmatmul.mubr.bf16.gmra.mrb[44].mxu1 %v5739_v16  ;;  %2195 = vmatprep.mubr.bf16.mxu0 %v5740_v17  ;;  %v6537_v17 = vld [vmem:[%s7310_s2] ss:$0 sm:$0xff] }
  0x9b   :  { %2740 = vmatprep.mubr.bf16.mxu1 %v5742_v18 }
  0xa1   :  { %2196 = vmatmul.mubr.bf16.gmra.mrb[48].mxu0 %v5744_v19  ;;  %v5834_v19 = vld [vmem:[%s7309_s0 + $0x360] ss:$16 sps:$4 sm:$0xff]  }
  0xa2   :  { %2741 = vmatmul.mubr.bf16.gmra.mrb[48].mxu1 %v5745_v20  ;;  %2203 = vmatprep.mubr.bf16.mxu0 %v5746_v21 }
  0xa3   :  { %2748 = vmatprep.mubr.bf16.mxu1 %v5748_v22 }
  0xa9   :  { %2204 = vmatmul.mubr.bf16.gmra.mrb[52].mxu0 %v5750_v23  ;;  %v5835_v23 = vld [vmem:[%s7309_s0 + $0x368] ss:$16 sps:$4 sm:$0xff]  }
  0xaa   :  { %2749 = vmatmul.mubr.bf16.gmra.mrb[52].mxu1 %v5751_v24  ;;  %2211 = vmatprep.mubr.bf16.mxu0 %v5752_v25  ;;  %v5836_v24 = vld [vmem:[%s7309_s0 + $0x384] ss:$16 sps:$4 sm:$0xff]  }
  0xab   :  { %2756 = vmatprep.mubr.bf16.mxu1 %v5754_v26 }
  0xb1   :  { %2212 = vmatmul.mubr.bf16.gmra.mrb[56].mxu0 %v5756_v27  ;;  %v5838_v27 = vld [vmem:[%s7309_s0 + $0x38c] ss:$16 sps:$4 sm:$0xff]  }
  0xb2   :  { %2757 = vmatmul.mubr.bf16.gmra.mrb[56].mxu1 %v5757_v28  ;;  %2219 = vmatprep.mubr.bf16.mxu0 %v5758_v29 }
  0xb3   :  { %2764 = vmatprep.mubr.bf16.mxu1 %v5760_v30 }
  0xb9   :  { %2220 = vmatmul.mubr.bf16.gmra.mrb[60].mxu0 %v5762_v31 }
  0xba   :  { %2765 = vmatmul.mubr.bf16.gmra.mrb[60].mxu1 %v5763_v32  ;;  %2227 = vmatprep.mubr.bf16.mxu0 %v5764_v33 }
  0xbb   :  { %2772 = vmatprep.mubr.bf16.mxu1 %v5766_v34 }
  0xc1   :  { %2228 = vmatmul.mubr.bf16.gmra.mrb[64].mxu0 %v5768_v35 }
  0xc2   :  { %2773 = vmatmul.mubr.bf16.gmra.mrb[64].mxu1 %v5769_v36  ;;  %2235 = vmatprep.mubr.bf16.mxu0 %v5770_v37  ;;  %v5840_v37 = vld [vmem:[%s7309_s0 + $0x380] ss:$16 sps:$4 sm:$0xff]  }
  0xc3   :  { %2780 = vmatprep.mubr.bf16.mxu1 %v5772_v38 }
  0xc9   :  { %2236 = vmatmul.mubr.bf16.gmra.mrb[68].mxu0 %v5774_v39 }
  0xca   :  { %2781 = vmatmul.mubr.bf16.gmra.mrb[68].mxu1 %v5775_v40  ;;  %2243 = vmatprep.mubr.bf16.mxu0 %v5776_v41 }
  0xcb   :  { %2788 = vmatprep.mubr.bf16.mxu1 %v5778_v42 }
  0xd1   :  { %2244 = vmatmul.mubr.bf16.gmra.mrb[72].mxu0 %v5780_v43  ;;  %v5841_v43 = vld [vmem:[%s7309_s0 + $0x388] ss:$16 sps:$4 sm:$0xff]  }
  0xd2   :  { %2789 = vmatmul.mubr.bf16.gmra.mrb[72].mxu1 %v5781_v44  ;;  %2251 = vmatprep.mubr.bf16.mxu0 %v5782_v45  ;;  %v5842_v44 = vld [vmem:[%s7309_s0 + $0x3a4] ss:$16 sps:$4 sm:$0xff]  }
  0xd3   :  { %2796 = vmatprep.mubr.bf16.mxu1 %v5784_v46 }
  0xd9   :  { %2252 = vmatmul.mubr.bf16.gmra.mrb[76].mxu0 %v5786_v47 }
  0xda   :  { %2797 = vmatmul.mubr.bf16.gmra.mrb[76].mxu1 %v5787_v48  ;;  %2259 = vmatprep.mubr.bf16.mxu0 %v5788_v49  ;;  %v5844_v48 = vld [vmem:[%s7309_s0 + $0x3ac] ss:$16 sps:$4 sm:$0xff]  }
  0xdb   :  { %2804 = vmatprep.mubr.bf16.mxu1 %v5790_v50 }
  0xe1   :  { %2260 = vmatmul.mubr.bf16.gmra.mrb[80].mxu0 %v5792_v51 }
  0xe2   :  { %2805 = vmatmul.mubr.bf16.gmra.mrb[80].mxu1 %v5793_v52  ;;  %2267 = vmatprep.mubr.bf16.mxu0 %v5794_v53 }
  0xe3   :  { %2812 = vmatprep.mubr.bf16.mxu1 %v5796_v54 }
  0xe9   :  { %2268 = vmatmul.mubr.bf16.gmra.mrb[84].mxu0 %v5798_v55 }
  0xea   :  { %2813 = vmatmul.mubr.bf16.gmra.mrb[84].mxu1 %v5799_v56  ;;  %2275 = vmatprep.mubr.bf16.mxu0 %v5800_v57 }
  0xeb   :  { %2820 = vmatprep.mubr.bf16.mxu1 %v5802_v58  ;;  %v5846_v58 = vld [vmem:[%s7309_s0 + $0x3a0] ss:$16 sps:$4 sm:$0xff]  }
  0xf1   :  { %2276 = vmatmul.mubr.bf16.gmra.mrb[88].mxu0 %v5804_v59 }
  0xf2   :  { %2821 = vmatmul.mubr.bf16.gmra.mrb[88].mxu1 %v5805_v60  ;;  %2283 = vmatprep.mubr.bf16.mxu0 %v5806_v61 }
  0xf3   :  { %2828 = vmatprep.mubr.bf16.mxu1 %v5808_v62 }
  0xf9   :  { %2284 = vmatmul.mubr.bf16.gmra.mrb[92].mxu0 %v5810_v63 }
  0xfa   :  { %2829 = vmatmul.mubr.bf16.gmra.mrb[92].mxu1 %v5811_v0  ;;  %2291 = vmatprep.mubr.bf16.mxu0 %v5812_v1  ;;  %v5847_v0 = vld [vmem:[%s7309_s0 + $0x3a8] ss:$16 sps:$4 sm:$0xff]   ;;  %v5848_v1 = vld [vmem:[%s7309_s0 + $0x3c4] ss:$16 sps:$4 sm:$0xff]  }
  0xfb   :  { %2836 = vmatprep.mubr.bf16.mxu1 %v5814_v2 }
 0x101   :  { %2292 = vmatmul.mubr.bf16.gmra.mrb[96].mxu0 %v5816_v3 }
 0x102   :  { %2837 = vmatmul.mubr.bf16.gmra.mrb[96].mxu1 %v5817_v4  ;;  %2299 = vmatprep.mubr.bf16.mxu0 %v5818_v5  ;;  %v5850_v5 = vld [vmem:[%s7309_s0 + $0x3cc] ss:$16 sps:$4 sm:$0xff]  }
 0x103   :  { %2844 = vmatprep.mubr.bf16.mxu1 %v5820_v6 }
 0x109   :  { %2300 = vmatmul.mubr.bf16.gmra.mrb[100].mxu0 %v5822_v7 }
 0x10a   :  { %2845 = vmatmul.mubr.bf16.gmra.mrb[100].mxu1 %v5823_v8  ;;  %2307 = vmatprep.mubr.bf16.mxu0 %v5824_v9 }
 0x10b   :  { %2852 = vmatprep.mubr.bf16.mxu1 %v5826_v10 }
 0x111   :  { %2308 = vmatmul.mubr.bf16.gmra.mrb[104].mxu0 %v5828_v11 }
 0x112   :  { %2853 = vmatmul.mubr.bf16.gmra.mrb[104].mxu1 %v5829_v12  ;;  %2315 = vmatprep.mubr.bf16.mxu0 %v5830_v13 }
 0x113   :  { %2860 = vmatprep.mubr.bf16.mxu1 %v5832_v14 }
 0x114   :  { %v2101_v15 = vpop.f32.mrb[0].mxu0 }
 0x115   :  { %v2646_v16 = vpop.f32.mrb[0].mxu1  ;;  %v2103_v18 = vpop.f32.mrb[1].mxu0 }
 0x116   :  { %v2647_v20 = vadd.f32 %v2646_v16, %v2101_v15  ;;  %v2648_v21 = vpop.f32.mrb[1].mxu1  ;;  %v2104_v22 = vpop.f32.mrb[2].mxu0  ;;  %v5852_v15 = vld [vmem:[%s7309_s0 + $0x3c0] ss:$16 sps:$4 sm:$0xff]  }
 0x117   :  { %v2649_v25 = vpop.f32.mrb[2].mxu1  ;;  %v2106_v26 = vpop.f32.mrb[3].mxu0 }
 0x118   :  { %v3551_v28 = vadd.f32 %v6537_v17, %v2647_v20  ;;  %v2650_v29 = vadd.f32 %v2649_v25, %v2104_v22  ;;  %v2651_v30 = vpop.f32.mrb[3].mxu1  ;;  %v5853_v22 = vld [vmem:[%s7309_s0 + $0x3c8] ss:$16 sps:$4 sm:$0xff]  }
 0x119   :  { %2316 = vmatmul.mubr.bf16.gmra.mrb[108].mxu0 %v5834_v19 }
 0x11a   :  { %v3807_v31 = vmul.f32 0.2, %v3551_v28  ;;  %v3552_v32 = vadd.f32 %v6537_v17, %v2650_v29  ;;  %2861 = vmatmul.mubr.bf16.gmra.mrb[108].mxu1 %v5835_v23  ;;  %2323 = vmatprep.mubr.bf16.mxu0 %v5836_v24  ;;  %vm3679_vm0 = vcmp.ge.f32.partialorder %v3551_v28, 0.0  ;;  %v5854_v23 = vld [vmem:[%s7309_s0 + $0x3e4] ss:$16 sps:$4 sm:$0xff]  }
 0x11b   :  { %2868 = vmatprep.mubr.bf16.mxu1 %v5838_v27  ;;  %v5856_v27 = vld [vmem:[%s7309_s0 + $0x3ec] ss:$16 sps:$4 sm:$0xff]  }
 0x11c   :  { %vm3680_vm1 = vcmp.ge.f32.partialorder %v3552_v32, 0.0  ;;  %v3808_v33 = vmul.f32 0.2, %v3552_v32  ;;  %v2109_v34 = vpop.f32.mrb[4].mxu0  ;;  %v3935_v38 = vsel %vm3679_vm0, %v3551_v28, %v3807_v31 }
 0x11d   :  { %v2654_v35 = vpop.f32.mrb[4].mxu1  ;;  %v2111_v36 = vpop.f32.mrb[5].mxu0 }
 0x11e   :  { %v3936_v39 = vsel %vm3680_vm1, %v3552_v32, %v3808_v33  ;;  %v2655_v40 = vadd.f32 %v2654_v35, %v2109_v34  ;;  %v2656_v41 = vpop.f32.mrb[5].mxu1  ;;  %v2112_v42 = vpop.f32.mrb[6].mxu0 }
 0x11f   :  { %v5255_v45 = vpack.c.bf16 %v3936_v39, %v3935_v38  ;;  %v2657_v46 = vpop.f32.mrb[6].mxu1  ;;  %v2114_v47 = vpop.f32.mrb[7].mxu0 }
 0x120   :  { %v3553_v49 = vadd.f32 %v6537_v17, %v2655_v40  ;;  %v2658_v50 = vadd.f32 %v2657_v46, %v2112_v42  ;;  %v2659_v51 = vpop.f32.mrb[7].mxu1 }
 0x121   :  { %5256 = vst [vmem:[%s7311_s3] sm:$0xff] %v5255_v45   ;;  %2324 = vmatmul.mubr.bf16.gmra.mrb[112].mxu0 %v5840_v37  ;;  %v5858_v37 = vld [vmem:[%s7309_s0 + $0x3e0] ss:$16 sps:$4 sm:$0xff]  }
 0x122   :  { %v3809_v52 = vmul.f32 0.2, %v3553_v49  ;;  %v3554_v53 = vadd.f32 %v6537_v17, %v2658_v50  ;;  %2869 = vmatmul.mubr.bf16.gmra.mrb[112].mxu1 %v5841_v43  ;;  %2331 = vmatprep.mubr.bf16.mxu0 %v5842_v44  ;;  %vm3681_vm2 = vcmp.ge.f32.partialorder %v3553_v49, 0.0  ;;  %v5859_v43 = vld [vmem:[%s7309_s0 + $0x3e8] ss:$16 sps:$4 sm:$0xff]  }
 0x123   :  { %2876 = vmatprep.mubr.bf16.mxu1 %v5844_v48  ;;  %v5860_v44 = vld [vmem:[%s7309_s0 + $0x404] ss:$16 sps:$4 sm:$0xff]   ;;  %v5862_v48 = vld [vmem:[%s7309_s0 + $0x40c] ss:$16 sps:$4 sm:$0xff]  }
 0x124   :  { %vm3682_vm3 = vcmp.ge.f32.partialorder %v3554_v53, 0.0  ;;  %v3810_v54 = vmul.f32 0.2, %v3554_v53  ;;  %v2117_v55 = vpop.f32.mrb[8].mxu0  ;;  %v3937_v59 = vsel %vm3681_vm2, %v3553_v49, %v3809_v52 }
 0x125   :  { %v2662_v56 = vpop.f32.mrb[8].mxu1  ;;  %v2119_v57 = vpop.f32.mrb[9].mxu0 }
 0x126   :  { %v3938_v60 = vsel %vm3682_vm3, %v3554_v53, %v3810_v54  ;;  %v2663_v61 = vadd.f32 %v2662_v56, %v2117_v55  ;;  %v2664_v62 = vpop.f32.mrb[9].mxu1  ;;  %v2120_v63 = vpop.f32.mrb[10].mxu0 }
 0x127   :  { %v5260_v2 = vpack.c.bf16 %v3938_v60, %v3937_v59  ;;  %v2665_v3 = vpop.f32.mrb[10].mxu1  ;;  %v2122_v4 = vpop.f32.mrb[11].mxu0 }
 0x128   :  { %v3555_v6 = vadd.f32 %v6537_v17, %v2663_v61  ;;  %v2666_v7 = vadd.f32 %v2665_v3, %v2120_v63  ;;  %v2667_v8 = vpop.f32.mrb[11].mxu1 }
 0x129   :  { %5572 = vst [vmem:[%s7311_s3 + $0x8] sm:$0xff] %v5260_v2   ;;  %2332 = vmatmul.mubr.bf16.gmra.mrb[116].mxu0 %v5846_v58  ;;  %v5864_v58 = vld [vmem:[%s7309_s0 + $0x400] ss:$16 sps:$4 sm:$0xff]  }
 0x12a   :  { %v3811_v9 = vmul.f32 0.2, %v3555_v6  ;;  %v3556_v10 = vadd.f32 %v6537_v17, %v2666_v7  ;;  %2877 = vmatmul.mubr.bf16.gmra.mrb[116].mxu1 %v5847_v0  ;;  %2339 = vmatprep.mubr.bf16.mxu0 %v5848_v1  ;;  %vm3683_vm4 = vcmp.ge.f32.partialorder %v3555_v6, 0.0  ;;  %v5865_v0 = vld [vmem:[%s7309_s0 + $0x408] ss:$16 sps:$4 sm:$0xff]  }
 0x12b   :  { %2884 = vmatprep.mubr.bf16.mxu1 %v5850_v5  ;;  %v5866_v1 = vld [vmem:[%s7309_s0 + $0x424] ss:$16 sps:$4 sm:$0xff]   ;;  %v5868_v5 = vld [vmem:[%s7309_s0 + $0x42c] ss:$16 sps:$4 sm:$0xff]  }
 0x12c   :  { %vm3684_vm5 = vcmp.ge.f32.partialorder %v3556_v10, 0.0  ;;  %v3812_v11 = vmul.f32 0.2, %v3556_v10  ;;  %v2125_v12 = vpop.f32.mrb[12].mxu0  ;;  %v3939_v16 = vsel %vm3683_vm4, %v3555_v6, %v3811_v9 }
 0x12d   :  { %v2670_v13 = vpop.f32.mrb[12].mxu1  ;;  %v2127_v14 = vpop.f32.mrb[13].mxu0 }
 0x12e   :  { %v3940_v18 = vsel %vm3684_vm5, %v3556_v10, %v3812_v11  ;;  %v2671_v19 = vadd.f32 %v2670_v13, %v2125_v12  ;;  %v2672_v20 = vpop.f32.mrb[13].mxu1  ;;  %v2128_v21 = vpop.f32.mrb[14].mxu0 }
 0x12f   :  { %v5265_v24 = vpack.c.bf16 %v3940_v18, %v3939_v16  ;;  %v2673_v25 = vpop.f32.mrb[14].mxu1  ;;  %v2130_v26 = vpop.f32.mrb[15].mxu0 }
 0x130   :  { %v3557_v28 = vadd.f32 %v6537_v17, %v2671_v19  ;;  %v2674_v29 = vadd.f32 %v2673_v25, %v2128_v21  ;;  %v2675_v30 = vpop.f32.mrb[15].mxu1 }
 0x131   :  { %5573 = vst [vmem:[%s7311_s3 + $0x10] sm:$0xff] %v5265_v24   ;;  %2340 = vmatmul.mubr.bf16.gmra.mrb[120].mxu0 %v5852_v15  ;;  %v5870_v15 = vld [vmem:[%s7309_s0 + $0x420] ss:$16 sps:$4 sm:$0xff]  }
 0x132   :  { %v3813_v31 = vmul.f32 0.2, %v3557_v28  ;;  %v3558_v32 = vadd.f32 %v6537_v17, %v2674_v29  ;;  %2885 = vmatmul.mubr.bf16.gmra.mrb[120].mxu1 %v5853_v22  ;;  %2347 = vmatprep.mubr.bf16.mxu0 %v5854_v23  ;;  %vm3685_vm6 = vcmp.ge.f32.partialorder %v3557_v28, 0.0  ;;  %v5871_v22 = vld [vmem:[%s7309_s0 + $0x428] ss:$16 sps:$4 sm:$0xff]  }
 0x133   :  { %2892 = vmatprep.mubr.bf16.mxu1 %v5856_v27  ;;  %v5872_v23 = vld [vmem:[%s7309_s0 + $0x444] ss:$16 sps:$4 sm:$0xff]   ;;  %v5874_v27 = vld [vmem:[%s7309_s0 + $0x44c] ss:$16 sps:$4 sm:$0xff]  }
 0x134   :  { %vm3686_vm7 = vcmp.ge.f32.partialorder %v3558_v32, 0.0  ;;  %v3814_v33 = vmul.f32 0.2, %v3558_v32  ;;  %v2133_v34 = vpop.f32.mrb[16].mxu0  ;;  %v3941_v38 = vsel %vm3685_vm6, %v3557_v28, %v3813_v31 }
 0x135   :  { %v2678_v35 = vpop.f32.mrb[16].mxu1  ;;  %v2135_v36 = vpop.f32.mrb[17].mxu0 }
 0x136   :  { %v3942_v39 = vsel %vm3686_vm7, %v3558_v32, %v3814_v33  ;;  %v2679_v40 = vadd.f32 %v2678_v35, %v2133_v34  ;;  %v2680_v41 = vpop.f32.mrb[17].mxu1  ;;  %v2136_v42 = vpop.f32.mrb[18].mxu0 }
 0x137   :  { %v5270_v45 = vpack.c.bf16 %v3942_v39, %v3941_v38  ;;  %v2681_v46 = vpop.f32.mrb[18].mxu1  ;;  %v2138_v47 = vpop.f32.mrb[19].mxu0 }
 0x138   :  { %v3559_v49 = vadd.f32 %v6537_v17, %v2679_v40  ;;  %v2682_v50 = vadd.f32 %v2681_v46, %v2136_v42  ;;  %v2683_v51 = vpop.f32.mrb[19].mxu1 }
 0x139   :  { %5574 = vst [vmem:[%s7311_s3 + $0x18] sm:$0xff] %v5270_v45   ;;  %2348 = vmatmul.mubr.bf16.gmra.mrb[124].mxu0 %v5858_v37  ;;  %v5876_v37 = vld [vmem:[%s7309_s0 + $0x440] ss:$16 sps:$4 sm:$0xff]  }
 0x13a   :  { %v3815_v52 = vmul.f32 0.2, %v3559_v49  ;;  %v3560_v53 = vadd.f32 %v6537_v17, %v2682_v50  ;;  %2893 = vmatmul.mubr.bf16.gmra.mrb[124].mxu1 %v5859_v43  ;;  %2355 = vmatprep.mubr.bf16.mxu0 %v5860_v44  ;;  %vm3687_vm8 = vcmp.ge.f32.partialorder %v3559_v49, 0.0  ;;  %v5877_v43 = vld [vmem:[%s7309_s0 + $0x448] ss:$16 sps:$4 sm:$0xff]  }
 0x13b   :  { %2900 = vmatprep.mubr.bf16.mxu1 %v5862_v48  ;;  %v5878_v44 = vld [vmem:[%s7309_s0 + $0x464] ss:$16 sps:$4 sm:$0xff]   ;;  %v5880_v48 = vld [vmem:[%s7309_s0 + $0x46c] ss:$16 sps:$4 sm:$0xff]  }
 0x13c   :  { %vm3688_vm9 = vcmp.ge.f32.partialorder %v3560_v53, 0.0  ;;  %v3816_v54 = vmul.f32 0.2, %v3560_v53  ;;  %v2141_v55 = vpop.f32.mrb[20].mxu0  ;;  %v3943_v59 = vsel %vm3687_vm8, %v3559_v49, %v3815_v52 }
 0x13d   :  { %v2686_v56 = vpop.f32.mrb[20].mxu1  ;;  %v2143_v57 = vpop.f32.mrb[21].mxu0 }
 0x13e   :  { %v3944_v60 = vsel %vm3688_vm9, %v3560_v53, %v3816_v54  ;;  %v2687_v61 = vadd.f32 %v2686_v56, %v2141_v55  ;;  %v2688_v62 = vpop.f32.mrb[21].mxu1  ;;  %v2144_v63 = vpop.f32.mrb[22].mxu0 }
 0x13f   :  { %v5275_v2 = vpack.c.bf16 %v3944_v60, %v3943_v59  ;;  %v2689_v3 = vpop.f32.mrb[22].mxu1  ;;  %v2146_v4 = vpop.f32.mrb[23].mxu0 }
 0x140   :  { %v3561_v6 = vadd.f32 %v6537_v17, %v2687_v61  ;;  %v2690_v7 = vadd.f32 %v2689_v3, %v2144_v63  ;;  %v2691_v8 = vpop.f32.mrb[23].mxu1 }
 0x141   :  { %5575 = vst [vmem:[%s7311_s3 + $0x20] sm:$0xff] %v5275_v2   ;;  %2356 = vmatmul.mubr.bf16.gmra.mrb[128].mxu0 %v5864_v58  ;;  %v5882_v58 = vld [vmem:[%s7309_s0 + $0x460] ss:$16 sps:$4 sm:$0xff]  }
 0x142   :  { %v3817_v9 = vmul.f32 0.2, %v3561_v6  ;;  %v3562_v10 = vadd.f32 %v6537_v17, %v2690_v7  ;;  %2901 = vmatmul.mubr.bf16.gmra.mrb[128].mxu1 %v5865_v0  ;;  %2363 = vmatprep.mubr.bf16.mxu0 %v5866_v1  ;;  %vm3689_vm10 = vcmp.ge.f32.partialorder %v3561_v6, 0.0  ;;  %v5883_v0 = vld [vmem:[%s7309_s0 + $0x468] ss:$16 sps:$4 sm:$0xff]  }
 0x143   :  { %2908 = vmatprep.mubr.bf16.mxu1 %v5868_v5  ;;  %v5884_v1 = vld [vmem:[%s7309_s0 + $0x484] ss:$16 sps:$4 sm:$0xff]   ;;  %v5886_v5 = vld [vmem:[%s7309_s0 + $0x48c] ss:$16 sps:$4 sm:$0xff]  }
 0x144   :  { %vm3690_vm11 = vcmp.ge.f32.partialorder %v3562_v10, 0.0  ;;  %v3818_v11 = vmul.f32 0.2, %v3562_v10  ;;  %v2149_v12 = vpop.f32.mrb[24].mxu0  ;;  %v3945_v16 = vsel %vm3689_vm10, %v3561_v6, %v3817_v9 }
 0x145   :  { %v2694_v13 = vpop.f32.mrb[24].mxu1  ;;  %v2151_v14 = vpop.f32.mrb[25].mxu0 }
 0x146   :  { %v3946_v18 = vsel %vm3690_vm11, %v3562_v10, %v3818_v11  ;;  %v2695_v19 = vadd.f32 %v2694_v13, %v2149_v12  ;;  %v2696_v20 = vpop.f32.mrb[25].mxu1  ;;  %v2152_v21 = vpop.f32.mrb[26].mxu0 }
 0x147   :  { %v5280_v24 = vpack.c.bf16 %v3946_v18, %v3945_v16  ;;  %v2697_v25 = vpop.f32.mrb[26].mxu1  ;;  %v2154_v26 = vpop.f32.mrb[27].mxu0 }
 0x148   :  { %v3563_v28 = vadd.f32 %v6537_v17, %v2695_v19  ;;  %v2698_v29 = vadd.f32 %v2697_v25, %v2152_v21  ;;  %v2699_v30 = vpop.f32.mrb[27].mxu1 }
 0x149   :  { %5576 = vst [vmem:[%s7311_s3 + $0x28] sm:$0xff] %v5280_v24   ;;  %2364 = vmatmul.mubr.bf16.gmra.mrb[132].mxu0 %v5870_v15  ;;  %v5888_v15 = vld [vmem:[%s7309_s0 + $0x480] ss:$16 sps:$4 sm:$0xff]  }
 0x14a   :  { %v3819_v31 = vmul.f32 0.2, %v3563_v28  ;;  %v3564_v32 = vadd.f32 %v6537_v17, %v2698_v29  ;;  %2909 = vmatmul.mubr.bf16.gmra.mrb[132].mxu1 %v5871_v22  ;;  %2371 = vmatprep.mubr.bf16.mxu0 %v5872_v23  ;;  %vm3691_vm12 = vcmp.ge.f32.partialorder %v3563_v28, 0.0  ;;  %v5889_v22 = vld [vmem:[%s7309_s0 + $0x488] ss:$16 sps:$4 sm:$0xff]  }
 0x14b   :  { %2916 = vmatprep.mubr.bf16.mxu1 %v5874_v27  ;;  %v5890_v23 = vld [vmem:[%s7309_s0 + $0x4a4] ss:$16 sps:$4 sm:$0xff]   ;;  %v5892_v27 = vld [vmem:[%s7309_s0 + $0x4ac] ss:$16 sps:$4 sm:$0xff]  }
 0x14c   :  { %vm3692_vm13 = vcmp.ge.f32.partialorder %v3564_v32, 0.0  ;;  %v3820_v33 = vmul.f32 0.2, %v3564_v32  ;;  %v2157_v34 = vpop.f32.mrb[28].mxu0  ;;  %v3947_v38 = vsel %vm3691_vm12, %v3563_v28, %v3819_v31 }
 0x14d   :  { %v2702_v35 = vpop.f32.mrb[28].mxu1  ;;  %v2159_v36 = vpop.f32.mrb[29].mxu0 }
 0x14e   :  { %v3948_v39 = vsel %vm3692_vm13, %v3564_v32, %v3820_v33  ;;  %v2703_v40 = vadd.f32 %v2702_v35, %v2157_v34  ;;  %v2704_v41 = vpop.f32.mrb[29].mxu1  ;;  %v2160_v42 = vpop.f32.mrb[30].mxu0 }
 0x14f   :  { %v5285_v45 = vpack.c.bf16 %v3948_v39, %v3947_v38  ;;  %v2705_v46 = vpop.f32.mrb[30].mxu1  ;;  %v2162_v47 = vpop.f32.mrb[31].mxu0 }
 0x150   :  { %v3565_v49 = vadd.f32 %v6537_v17, %v2703_v40  ;;  %v2706_v50 = vadd.f32 %v2705_v46, %v2160_v42  ;;  %v2707_v51 = vpop.f32.mrb[31].mxu1 }
 0x151   :  { %5577 = vst [vmem:[%s7311_s3 + $0x30] sm:$0xff] %v5285_v45   ;;  %2372 = vmatmul.mubr.bf16.gmra.mrb[136].mxu0 %v5876_v37  ;;  %v5894_v37 = vld [vmem:[%s7309_s0 + $0x4a0] ss:$16 sps:$4 sm:$0xff]  }
 0x152   :  { %v3821_v52 = vmul.f32 0.2, %v3565_v49  ;;  %v3566_v53 = vadd.f32 %v6537_v17, %v2706_v50  ;;  %2917 = vmatmul.mubr.bf16.gmra.mrb[136].mxu1 %v5877_v43  ;;  %2379 = vmatprep.mubr.bf16.mxu0 %v5878_v44  ;;  %vm3693_vm14 = vcmp.ge.f32.partialorder %v3565_v49, 0.0  ;;  %v5895_v43 = vld [vmem:[%s7309_s0 + $0x4a8] ss:$16 sps:$4 sm:$0xff]  }
 0x153   :  { %2924 = vmatprep.mubr.bf16.mxu1 %v5880_v48  ;;  %v5896_v44 = vld [vmem:[%s7309_s0 + $0x4c4] ss:$16 sps:$4 sm:$0xff]   ;;  %v5898_v48 = vld [vmem:[%s7309_s0 + $0x4cc] ss:$16 sps:$4 sm:$0xff]  }
 0x154   :  { %vm3694_vm15 = vcmp.ge.f32.partialorder %v3566_v53, 0.0  ;;  %v3822_v54 = vmul.f32 0.2, %v3566_v53  ;;  %v2165_v55 = vpop.f32.mrb[32].mxu0  ;;  %v3949_v59 = vsel %vm3693_vm14, %v3565_v49, %v3821_v52 }
 0x155   :  { %v2710_v56 = vpop.f32.mrb[32].mxu1  ;;  %v2167_v57 = vpop.f32.mrb[33].mxu0 }
 0x156   :  { %v3950_v60 = vsel %vm3694_vm15, %v3566_v53, %v3822_v54  ;;  %v2711_v61 = vadd.f32 %v2710_v56, %v2165_v55  ;;  %v2712_v62 = vpop.f32.mrb[33].mxu1  ;;  %v2168_v63 = vpop.f32.mrb[34].mxu0 }
 0x157   :  { %v5290_v2 = vpack.c.bf16 %v3950_v60, %v3949_v59  ;;  %v2713_v3 = vpop.f32.mrb[34].mxu1  ;;  %v2170_v4 = vpop.f32.mrb[35].mxu0 }
 0x158   :  { %v3567_v6 = vadd.f32 %v6537_v17, %v2711_v61  ;;  %v2714_v7 = vadd.f32 %v2713_v3, %v2168_v63  ;;  %v2715_v8 = vpop.f32.mrb[35].mxu1 }
 0x159   :  { %5578 = vst [vmem:[%s7311_s3 + $0x38] sm:$0xff] %v5290_v2   ;;  %2380 = vmatmul.mubr.bf16.gmra.mrb[140].mxu0 %v5882_v58  ;;  %v5900_v58 = vld [vmem:[%s7309_s0 + $0x4c0] ss:$16 sps:$4 sm:$0xff]  }
 0x15a   :  { %v3823_v9 = vmul.f32 0.2, %v3567_v6  ;;  %v3568_v10 = vadd.f32 %v6537_v17, %v2714_v7  ;;  %2925 = vmatmul.mubr.bf16.gmra.mrb[140].mxu1 %v5883_v0  ;;  %2387 = vmatprep.mubr.bf16.mxu0 %v5884_v1  ;;  %vm3695_vm0 = vcmp.ge.f32.partialorder %v3567_v6, 0.0  ;;  %v5901_v0 = vld [vmem:[%s7309_s0 + $0x4c8] ss:$16 sps:$4 sm:$0xff]  }
 0x15b   :  { %2932 = vmatprep.mubr.bf16.mxu1 %v5886_v5  ;;  %v5902_v1 = vld [vmem:[%s7309_s0 + $0x4e4] ss:$16 sps:$4 sm:$0xff]   ;;  %v5904_v5 = vld [vmem:[%s7309_s0 + $0x4ec] ss:$16 sps:$4 sm:$0xff]  }
 0x15c   :  { %vm3696_vm1 = vcmp.ge.f32.partialorder %v3568_v10, 0.0  ;;  %v3824_v11 = vmul.f32 0.2, %v3568_v10  ;;  %v2173_v12 = vpop.f32.mrb[36].mxu0  ;;  %v3951_v16 = vsel %vm3695_vm0, %v3567_v6, %v3823_v9 }
 0x15d   :  { %v2718_v13 = vpop.f32.mrb[36].mxu1  ;;  %v2175_v14 = vpop.f32.mrb[37].mxu0 }
 0x15e   :  { %v3952_v18 = vsel %vm3696_vm1, %v3568_v10, %v3824_v11  ;;  %v2719_v19 = vadd.f32 %v2718_v13, %v2173_v12  ;;  %v2720_v20 = vpop.f32.mrb[37].mxu1  ;;  %v2176_v21 = vpop.f32.mrb[38].mxu0 }
 0x15f   :  { %v5295_v24 = vpack.c.bf16 %v3952_v18, %v3951_v16  ;;  %v2721_v25 = vpop.f32.mrb[38].mxu1  ;;  %v2178_v26 = vpop.f32.mrb[39].mxu0 }
 0x160   :  { %v3569_v28 = vadd.f32 %v6537_v17, %v2719_v19  ;;  %v2722_v29 = vadd.f32 %v2721_v25, %v2176_v21  ;;  %v2723_v30 = vpop.f32.mrb[39].mxu1 }
 0x161   :  { %5579 = vst [vmem:[%s7311_s3 + $0x40] sm:$0xff] %v5295_v24   ;;  %2388 = vmatmul.mubr.bf16.gmra.mrb[144].mxu0 %v5888_v15  ;;  %v5906_v15 = vld [vmem:[%s7309_s0 + $0x4e0] ss:$16 sps:$4 sm:$0xff]  }
 0x162   :  { %v3825_v31 = vmul.f32 0.2, %v3569_v28  ;;  %v3570_v32 = vadd.f32 %v6537_v17, %v2722_v29  ;;  %2933 = vmatmul.mubr.bf16.gmra.mrb[144].mxu1 %v5889_v22  ;;  %2395 = vmatprep.mubr.bf16.mxu0 %v5890_v23  ;;  %vm3697_vm2 = vcmp.ge.f32.partialorder %v3569_v28, 0.0  ;;  %v5907_v22 = vld [vmem:[%s7309_s0 + $0x4e8] ss:$16 sps:$4 sm:$0xff]  }
 0x163   :  { %2940 = vmatprep.mubr.bf16.mxu1 %v5892_v27  ;;  %v5908_v23 = vld [vmem:[%s7309_s0 + $0x504] ss:$16 sps:$4 sm:$0xff]   ;;  %v5910_v27 = vld [vmem:[%s7309_s0 + $0x50c] ss:$16 sps:$4 sm:$0xff]  }
 0x164   :  { %vm3698_vm3 = vcmp.ge.f32.partialorder %v3570_v32, 0.0  ;;  %v3826_v33 = vmul.f32 0.2, %v3570_v32  ;;  %v2181_v34 = vpop.f32.mrb[40].mxu0  ;;  %v3953_v38 = vsel %vm3697_vm2, %v3569_v28, %v3825_v31 }
 0x165   :  { %v2726_v35 = vpop.f32.mrb[40].mxu1  ;;  %v2183_v36 = vpop.f32.mrb[41].mxu0 }
 0x166   :  { %v3954_v39 = vsel %vm3698_vm3, %v3570_v32, %v3826_v33  ;;  %v2727_v40 = vadd.f32 %v2726_v35, %v2181_v34  ;;  %v2728_v41 = vpop.f32.mrb[41].mxu1  ;;  %v2184_v42 = vpop.f32.mrb[42].mxu0 }
 0x167   :  { %v5300_v45 = vpack.c.bf16 %v3954_v39, %v3953_v38  ;;  %v2729_v46 = vpop.f32.mrb[42].mxu1  ;;  %v2186_v47 = vpop.f32.mrb[43].mxu0 }
 0x168   :  { %v3571_v49 = vadd.f32 %v6537_v17, %v2727_v40  ;;  %v2730_v50 = vadd.f32 %v2729_v46, %v2184_v42  ;;  %v2731_v51 = vpop.f32.mrb[43].mxu1 }
 0x169   :  { %5580 = vst [vmem:[%s7311_s3 + $0x48] sm:$0xff] %v5300_v45   ;;  %2396 = vmatmul.mubr.bf16.gmra.mrb[148].mxu0 %v5894_v37  ;;  %v5912_v37 = vld [vmem:[%s7309_s0 + $0x500] ss:$16 sps:$4 sm:$0xff]  }
 0x16a   :  { %v3827_v52 = vmul.f32 0.2, %v3571_v49  ;;  %v3572_v53 = vadd.f32 %v6537_v17, %v2730_v50  ;;  %2941 = vmatmul.mubr.bf16.gmra.mrb[148].mxu1 %v5895_v43  ;;  %2403 = vmatprep.mubr.bf16.mxu0 %v5896_v44  ;;  %vm3699_vm4 = vcmp.ge.f32.partialorder %v3571_v49, 0.0  ;;  %v5913_v43 = vld [vmem:[%s7309_s0 + $0x508] ss:$16 sps:$4 sm:$0xff]  }
 0x16b   :  { %2948 = vmatprep.mubr.bf16.mxu1 %v5898_v48  ;;  %v5914_v44 = vld [vmem:[%s7309_s0 + $0x524] ss:$16 sps:$4 sm:$0xff]   ;;  %v5916_v48 = vld [vmem:[%s7309_s0 + $0x52c] ss:$16 sps:$4 sm:$0xff]  }
 0x16c   :  { %vm3700_vm5 = vcmp.ge.f32.partialorder %v3572_v53, 0.0  ;;  %v3828_v54 = vmul.f32 0.2, %v3572_v53  ;;  %v2189_v55 = vpop.f32.mrb[44].mxu0  ;;  %v3955_v59 = vsel %vm3699_vm4, %v3571_v49, %v3827_v52 }
 0x16d   :  { %v2734_v56 = vpop.f32.mrb[44].mxu1  ;;  %v2191_v57 = vpop.f32.mrb[45].mxu0 }
 0x16e   :  { %v3956_v60 = vsel %vm3700_vm5, %v3572_v53, %v3828_v54  ;;  %v2735_v61 = vadd.f32 %v2734_v56, %v2189_v55  ;;  %v2736_v62 = vpop.f32.mrb[45].mxu1  ;;  %v2192_v63 = vpop.f32.mrb[46].mxu0 }
 0x16f   :  { %v5305_v2 = vpack.c.bf16 %v3956_v60, %v3955_v59  ;;  %v2737_v3 = vpop.f32.mrb[46].mxu1  ;;  %v2194_v4 = vpop.f32.mrb[47].mxu0 }
 0x170   :  { %v3573_v6 = vadd.f32 %v6537_v17, %v2735_v61  ;;  %v2738_v7 = vadd.f32 %v2737_v3, %v2192_v63  ;;  %v2739_v8 = vpop.f32.mrb[47].mxu1 }
 0x171   :  { %5581 = vst [vmem:[%s7311_s3 + $0x50] sm:$0xff] %v5305_v2   ;;  %2404 = vmatmul.mubr.bf16.gmra.mrb[152].mxu0 %v5900_v58  ;;  %v5918_v58 = vld [vmem:[%s7309_s0 + $0x520] ss:$16 sps:$4 sm:$0xff]  }
 0x172   :  { %v3829_v9 = vmul.f32 0.2, %v3573_v6  ;;  %v3574_v10 = vadd.f32 %v6537_v17, %v2738_v7  ;;  %2949 = vmatmul.mubr.bf16.gmra.mrb[152].mxu1 %v5901_v0  ;;  %2411 = vmatprep.mubr.bf16.mxu0 %v5902_v1  ;;  %vm3701_vm6 = vcmp.ge.f32.partialorder %v3573_v6, 0.0  ;;  %v5919_v0 = vld [vmem:[%s7309_s0 + $0x528] ss:$16 sps:$4 sm:$0xff]  }
 0x173   :  { %2956 = vmatprep.mubr.bf16.mxu1 %v5904_v5  ;;  %v5920_v1 = vld [vmem:[%s7309_s0 + $0x544] ss:$16 sps:$4 sm:$0xff]   ;;  %v5922_v5 = vld [vmem:[%s7309_s0 + $0x54c] ss:$16 sps:$4 sm:$0xff]  }
 0x174   :  { %vm3702_vm7 = vcmp.ge.f32.partialorder %v3574_v10, 0.0  ;;  %v3830_v11 = vmul.f32 0.2, %v3574_v10  ;;  %v2197_v12 = vpop.f32.mrb[48].mxu0  ;;  %v3957_v16 = vsel %vm3701_vm6, %v3573_v6, %v3829_v9 }
 0x175   :  { %v2742_v13 = vpop.f32.mrb[48].mxu1  ;;  %v2199_v14 = vpop.f32.mrb[49].mxu0 }
 0x176   :  { %v3958_v18 = vsel %vm3702_vm7, %v3574_v10, %v3830_v11  ;;  %v2743_v19 = vadd.f32 %v2742_v13, %v2197_v12  ;;  %v2744_v20 = vpop.f32.mrb[49].mxu1  ;;  %v2200_v21 = vpop.f32.mrb[50].mxu0 }
 0x177   :  { %v5310_v24 = vpack.c.bf16 %v3958_v18, %v3957_v16  ;;  %v2745_v25 = vpop.f32.mrb[50].mxu1  ;;  %v2202_v26 = vpop.f32.mrb[51].mxu0 }
 0x178   :  { %v3575_v28 = vadd.f32 %v6537_v17, %v2743_v19  ;;  %v2746_v29 = vadd.f32 %v2745_v25, %v2200_v21  ;;  %v2747_v30 = vpop.f32.mrb[51].mxu1 }
 0x179   :  { %5582 = vst [vmem:[%s7311_s3 + $0x58] sm:$0xff] %v5310_v24   ;;  %2412 = vmatmul.mubr.bf16.gmra.mrb[156].mxu0 %v5906_v15  ;;  %v5924_v15 = vld [vmem:[%s7309_s0 + $0x540] ss:$16 sps:$4 sm:$0xff]  }
 0x17a   :  { %v3831_v31 = vmul.f32 0.2, %v3575_v28  ;;  %v3576_v32 = vadd.f32 %v6537_v17, %v2746_v29  ;;  %2957 = vmatmul.mubr.bf16.gmra.mrb[156].mxu1 %v5907_v22  ;;  %2419 = vmatprep.mubr.bf16.mxu0 %v5908_v23  ;;  %vm3703_vm8 = vcmp.ge.f32.partialorder %v3575_v28, 0.0  ;;  %v5925_v22 = vld [vmem:[%s7309_s0 + $0x548] ss:$16 sps:$4 sm:$0xff]  }
 0x17b   :  { %2964 = vmatprep.mubr.bf16.mxu1 %v5910_v27  ;;  %v5926_v23 = vld [vmem:[%s7309_s0 + $0x564] ss:$16 sps:$4 sm:$0xff]   ;;  %v5928_v27 = vld [vmem:[%s7309_s0 + $0x56c] ss:$16 sps:$4 sm:$0xff]  }
 0x17c   :  { %vm3704_vm9 = vcmp.ge.f32.partialorder %v3576_v32, 0.0  ;;  %v3832_v33 = vmul.f32 0.2, %v3576_v32  ;;  %v2205_v34 = vpop.f32.mrb[52].mxu0  ;;  %v3959_v38 = vsel %vm3703_vm8, %v3575_v28, %v3831_v31 }
 0x17d   :  { %v2750_v35 = vpop.f32.mrb[52].mxu1  ;;  %v2207_v36 = vpop.f32.mrb[53].mxu0 }
 0x17e   :  { %v3960_v39 = vsel %vm3704_vm9, %v3576_v32, %v3832_v33  ;;  %v2751_v40 = vadd.f32 %v2750_v35, %v2205_v34  ;;  %v2752_v41 = vpop.f32.mrb[53].mxu1  ;;  %v2208_v42 = vpop.f32.mrb[54].mxu0 }
 0x17f   :  { %v5315_v45 = vpack.c.bf16 %v3960_v39, %v3959_v38  ;;  %v2753_v46 = vpop.f32.mrb[54].mxu1  ;;  %v2210_v47 = vpop.f32.mrb[55].mxu0 }
 0x180   :  { %v3577_v49 = vadd.f32 %v6537_v17, %v2751_v40  ;;  %v2754_v50 = vadd.f32 %v2753_v46, %v2208_v42  ;;  %v2755_v51 = vpop.f32.mrb[55].mxu1 }
 0x181   :  { %5583 = vst [vmem:[%s7311_s3 + $0x60] sm:$0xff] %v5315_v45   ;;  %2420 = vmatmul.mubr.bf16.gmra.mrb[160].mxu0 %v5912_v37  ;;  %v5930_v37 = vld [vmem:[%s7309_s0 + $0x560] ss:$16 sps:$4 sm:$0xff]  }
 0x182   :  { %v3833_v52 = vmul.f32 0.2, %v3577_v49  ;;  %v3578_v53 = vadd.f32 %v6537_v17, %v2754_v50  ;;  %2965 = vmatmul.mubr.bf16.gmra.mrb[160].mxu1 %v5913_v43  ;;  %2427 = vmatprep.mubr.bf16.mxu0 %v5914_v44  ;;  %vm3705_vm10 = vcmp.ge.f32.partialorder %v3577_v49, 0.0  ;;  %v5931_v43 = vld [vmem:[%s7309_s0 + $0x568] ss:$16 sps:$4 sm:$0xff]  }
 0x183   :  { %2972 = vmatprep.mubr.bf16.mxu1 %v5916_v48  ;;  %v5932_v44 = vld [vmem:[%s7309_s0 + $0x584] ss:$16 sps:$4 sm:$0xff]   ;;  %v5934_v48 = vld [vmem:[%s7309_s0 + $0x58c] ss:$16 sps:$4 sm:$0xff]  }
 0x184   :  { %vm3706_vm11 = vcmp.ge.f32.partialorder %v3578_v53, 0.0  ;;  %v3834_v54 = vmul.f32 0.2, %v3578_v53  ;;  %v2213_v55 = vpop.f32.mrb[56].mxu0  ;;  %v3961_v59 = vsel %vm3705_vm10, %v3577_v49, %v3833_v52 }
 0x185   :  { %v2758_v56 = vpop.f32.mrb[56].mxu1  ;;  %v2215_v57 = vpop.f32.mrb[57].mxu0 }
 0x186   :  { %v3962_v60 = vsel %vm3706_vm11, %v3578_v53, %v3834_v54  ;;  %v2759_v61 = vadd.f32 %v2758_v56, %v2213_v55  ;;  %v2760_v62 = vpop.f32.mrb[57].mxu1  ;;  %v2216_v63 = vpop.f32.mrb[58].mxu0 }
 0x187   :  { %v5320_v2 = vpack.c.bf16 %v3962_v60, %v3961_v59  ;;  %v2761_v3 = vpop.f32.mrb[58].mxu1  ;;  %v2218_v4 = vpop.f32.mrb[59].mxu0 }
 0x188   :  { %v3579_v6 = vadd.f32 %v6537_v17, %v2759_v61  ;;  %v2762_v7 = vadd.f32 %v2761_v3, %v2216_v63  ;;  %v2763_v8 = vpop.f32.mrb[59].mxu1 }
 0x189   :  { %5584 = vst [vmem:[%s7311_s3 + $0x68] sm:$0xff] %v5320_v2   ;;  %2428 = vmatmul.mubr.bf16.gmra.mrb[164].mxu0 %v5918_v58  ;;  %v5936_v58 = vld [vmem:[%s7309_s0 + $0x580] ss:$16 sps:$4 sm:$0xff]  }
 0x18a   :  { %v3835_v9 = vmul.f32 0.2, %v3579_v6  ;;  %v3580_v10 = vadd.f32 %v6537_v17, %v2762_v7  ;;  %2973 = vmatmul.mubr.bf16.gmra.mrb[164].mxu1 %v5919_v0  ;;  %2435 = vmatprep.mubr.bf16.mxu0 %v5920_v1  ;;  %vm3707_vm12 = vcmp.ge.f32.partialorder %v3579_v6, 0.0  ;;  %v5937_v0 = vld [vmem:[%s7309_s0 + $0x588] ss:$16 sps:$4 sm:$0xff]  }
 0x18b   :  { %2980 = vmatprep.mubr.bf16.mxu1 %v5922_v5  ;;  %v5938_v1 = vld [vmem:[%s7309_s0 + $0x5a4] ss:$16 sps:$4 sm:$0xff]   ;;  %v5940_v5 = vld [vmem:[%s7309_s0 + $0x5ac] ss:$16 sps:$4 sm:$0xff]  }
 0x18c   :  { %vm3708_vm13 = vcmp.ge.f32.partialorder %v3580_v10, 0.0  ;;  %v3836_v11 = vmul.f32 0.2, %v3580_v10  ;;  %v2221_v12 = vpop.f32.mrb[60].mxu0  ;;  %v3963_v16 = vsel %vm3707_vm12, %v3579_v6, %v3835_v9 }
 0x18d   :  { %v2766_v13 = vpop.f32.mrb[60].mxu1  ;;  %v2223_v14 = vpop.f32.mrb[61].mxu0 }
 0x18e   :  { %v3964_v18 = vsel %vm3708_vm13, %v3580_v10, %v3836_v11  ;;  %v2767_v19 = vadd.f32 %v2766_v13, %v2221_v12  ;;  %v2768_v20 = vpop.f32.mrb[61].mxu1  ;;  %v2224_v21 = vpop.f32.mrb[62].mxu0 }
 0x18f   :  { %v5325_v24 = vpack.c.bf16 %v3964_v18, %v3963_v16  ;;  %v2769_v25 = vpop.f32.mrb[62].mxu1  ;;  %v2226_v26 = vpop.f32.mrb[63].mxu0 }
 0x190   :  { %v3581_v28 = vadd.f32 %v6537_v17, %v2767_v19  ;;  %v2770_v29 = vadd.f32 %v2769_v25, %v2224_v21  ;;  %v2771_v30 = vpop.f32.mrb[63].mxu1  ;;  %v5946_v26 = vld [vmem:[%s7309_s0 + $0x5cc] ss:$16 sps:$4 sm:$0xff]  }
 0x191   :  { %5585 = vst [vmem:[%s7311_s3 + $0x70] sm:$0xff] %v5325_v24   ;;  %2436 = vmatmul.mubr.bf16.gmra.mrb[168].mxu0 %v5924_v15  ;;  %v5942_v15 = vld [vmem:[%s7309_s0 + $0x5a0] ss:$16 sps:$4 sm:$0xff]  }
 0x192   :  { %v3837_v31 = vmul.f32 0.2, %v3581_v28  ;;  %v3582_v32 = vadd.f32 %v6537_v17, %v2770_v29  ;;  %2981 = vmatmul.mubr.bf16.gmra.mrb[168].mxu1 %v5925_v22  ;;  %2443 = vmatprep.mubr.bf16.mxu0 %v5926_v23  ;;  %vm3709_vm14 = vcmp.ge.f32.partialorder %v3581_v28, 0.0  ;;  %v5944_v22 = vld [vmem:[%s7309_s0 + $0x5c4] ss:$16 sps:$4 sm:$0xff]  }
 0x193   :  { %2988 = vmatprep.mubr.bf16.mxu1 %v5928_v27  ;;  %v6857_v27 = vld [vmem:[%s7310_s2] ss:$0 sm:$0xff] }
 0x194   :  { %vm3710_vm15 = vcmp.ge.f32.partialorder %v3582_v32, 0.0  ;;  %v3838_v33 = vmul.f32 0.2, %v3582_v32  ;;  %v2229_v34 = vpop.f32.mrb[64].mxu0  ;;  %v3965_v38 = vsel %vm3709_vm14, %v3581_v28, %v3837_v31 }
 0x195   :  { %v2774_v35 = vpop.f32.mrb[64].mxu1  ;;  %v2231_v36 = vpop.f32.mrb[65].mxu0 }
 0x196   :  { %v3966_v39 = vsel %vm3710_vm15, %v3582_v32, %v3838_v33  ;;  %v2775_v40 = vadd.f32 %v2774_v35, %v2229_v34  ;;  %v2776_v41 = vpop.f32.mrb[65].mxu1  ;;  %v2232_v42 = vpop.f32.mrb[66].mxu0 }
 0x197   :  { %v5330_v45 = vpack.c.bf16 %v3966_v39, %v3965_v38  ;;  %v2777_v46 = vpop.f32.mrb[66].mxu1  ;;  %v2234_v47 = vpop.f32.mrb[67].mxu0 }
 0x198   :  { %v3583_v49 = vadd.f32 %v6537_v17, %v2775_v40  ;;  %v2778_v50 = vadd.f32 %v2777_v46, %v2232_v42  ;;  %v2779_v51 = vpop.f32.mrb[67].mxu1 }
 0x199   :  { %5586 = vst [vmem:[%s7311_s3 + $0x78] sm:$0xff] %v5330_v45   ;;  %2444 = vmatmul.mubr.bf16.gmra.mrb[172].mxu0 %v5930_v37  ;;  %v5948_v37 = vld [vmem:[%s7309_s0 + $0x5c0] ss:$16 sps:$4 sm:$0xff]  }
 0x19a   :  { %v3839_v52 = vmul.f32 0.2, %v3583_v49  ;;  %v3584_v53 = vadd.f32 %v6537_v17, %v2778_v50  ;;  %2989 = vmatmul.mubr.bf16.gmra.mrb[172].mxu1 %v5931_v43  ;;  %2451 = vmatprep.mubr.bf16.mxu0 %v5932_v44  ;;  %vm3711_vm0 = vcmp.ge.f32.partialorder %v3583_v49, 0.0  ;;  %v5949_v43 = vld [vmem:[%s7309_s0 + $0x5c8] ss:$16 sps:$4 sm:$0xff]  }
 0x19b   :  { %2996 = vmatprep.mubr.bf16.mxu1 %v5934_v48  ;;  %v5950_v44 = vld [vmem:[%s7309_s0 + $0x5e4] ss:$16 sps:$4 sm:$0xff]   ;;  %v5952_v48 = vld [vmem:[%s7309_s0 + $0x5ec] ss:$16 sps:$4 sm:$0xff]  }
 0x19c   :  { %vm3712_vm1 = vcmp.ge.f32.partialorder %v3584_v53, 0.0  ;;  %v3840_v54 = vmul.f32 0.2, %v3584_v53  ;;  %v2237_v55 = vpop.f32.mrb[68].mxu0  ;;  %v3967_v59 = vsel %vm3711_vm0, %v3583_v49, %v3839_v52 }
 0x19d   :  { %v2782_v56 = vpop.f32.mrb[68].mxu1  ;;  %v2239_v57 = vpop.f32.mrb[69].mxu0 }
 0x19e   :  { %v3968_v60 = vsel %vm3712_vm1, %v3584_v53, %v3840_v54  ;;  %v2783_v61 = vadd.f32 %v2782_v56, %v2237_v55  ;;  %v2784_v62 = vpop.f32.mrb[69].mxu1  ;;  %v2240_v63 = vpop.f32.mrb[70].mxu0 }
 0x19f   :  { %v5335_v2 = vpack.c.bf16 %v3968_v60, %v3967_v59  ;;  %v2785_v3 = vpop.f32.mrb[70].mxu1  ;;  %v2242_v4 = vpop.f32.mrb[71].mxu0 }
 0x1a0   :  { %v3585_v6 = vadd.f32 %v6537_v17, %v2783_v61  ;;  %v2786_v7 = vadd.f32 %v2785_v3, %v2240_v63  ;;  %v2787_v8 = vpop.f32.mrb[71].mxu1 }
 0x1a1   :  { %5587 = vst [vmem:[%s7311_s3 + $0x80] sm:$0xff] %v5335_v2   ;;  %2452 = vmatmul.mubr.bf16.gmra.mrb[176].mxu0 %v5936_v58  ;;  %v5954_v58 = vld [vmem:[%s7309_s0 + $0x5e0] ss:$16 sps:$4 sm:$0xff]  }
 0x1a2   :  { %v3841_v9 = vmul.f32 0.2, %v3585_v6  ;;  %v3586_v10 = vadd.f32 %v6537_v17, %v2786_v7  ;;  %2997 = vmatmul.mubr.bf16.gmra.mrb[176].mxu1 %v5937_v0  ;;  %2459 = vmatprep.mubr.bf16.mxu0 %v5938_v1  ;;  %vm3713_vm2 = vcmp.ge.f32.partialorder %v3585_v6, 0.0  ;;  %v5943_v17 = vld [vmem:[%s7309_s0 + $0x5a8] ss:$16 sps:$4 sm:$0xff]  }
 0x1a3   :  { %3004 = vmatprep.mubr.bf16.mxu1 %v5940_v5  ;;  %v5955_v0 = vld [vmem:[%s7309_s0 + $0x5e8] ss:$16 sps:$4 sm:$0xff]   ;;  %v5956_v1 = vld [vmem:[%s7309_s0 + $0x604] ss:$16 sps:$4 sm:$0xff]   ;;  %v5958_v5 = vld [vmem:[%s7309_s0 + $0x60c] ss:$16 sps:$4 sm:$0xff]  }
 0x1a4   :  { %vm3714_vm3 = vcmp.ge.f32.partialorder %v3586_v10, 0.0  ;;  %v3842_v11 = vmul.f32 0.2, %v3586_v10  ;;  %v2245_v12 = vpop.f32.mrb[72].mxu0  ;;  %v3969_v16 = vsel %vm3713_vm2, %v3585_v6, %v3841_v9 }
 0x1a5   :  { %v2790_v13 = vpop.f32.mrb[72].mxu1  ;;  %v2247_v14 = vpop.f32.mrb[73].mxu0 }
 0x1a6   :  { %v3970_v18 = vsel %vm3714_vm3, %v3586_v10, %v3842_v11  ;;  %v2791_v19 = vadd.f32 %v2790_v13, %v2245_v12  ;;  %v2792_v20 = vpop.f32.mrb[73].mxu1  ;;  %v2248_v21 = vpop.f32.mrb[74].mxu0 }
 0x1a7   :  { %v5340_v23 = vpack.c.bf16 %v3970_v18, %v3969_v16  ;;  %v2793_v24 = vpop.f32.mrb[74].mxu1  ;;  %v2250_v25 = vpop.f32.mrb[75].mxu0 }
 0x1a8   :  { %v3587_v28 = vadd.f32 %v6857_v27, %v2791_v19  ;;  %v2794_v29 = vadd.f32 %v2793_v24, %v2248_v21  ;;  %v2795_v30 = vpop.f32.mrb[75].mxu1 }
 0x1a9   :  { %5588 = vst [vmem:[%s7311_s3 + $0x88] sm:$0xff] %v5340_v23   ;;  %2460 = vmatmul.mubr.bf16.gmra.mrb[180].mxu0 %v5942_v15  ;;  %v5960_v15 = vld [vmem:[%s7309_s0 + $0x600] ss:$16 sps:$4 sm:$0xff]  }
 0x1aa   :  { %v3843_v31 = vmul.f32 0.2, %v3587_v28  ;;  %v3588_v32 = vadd.f32 %v6857_v27, %v2794_v29  ;;  %3005 = vmatmul.mubr.bf16.gmra.mrb[180].mxu1 %v5943_v17  ;;  %2467 = vmatprep.mubr.bf16.mxu0 %v5944_v22  ;;  %vm3715_vm4 = vcmp.ge.f32.partialorder %v3587_v28, 0.0  ;;  %v5961_v17 = vld [vmem:[%s7309_s0 + $0x608] ss:$16 sps:$4 sm:$0xff]  }
 0x1ab   :  { %3012 = vmatprep.mubr.bf16.mxu1 %v5946_v26  ;;  %v5962_v22 = vld [vmem:[%s7309_s0 + $0x624] ss:$16 sps:$4 sm:$0xff]   ;;  %v5964_v26 = vld [vmem:[%s7309_s0 + $0x62c] ss:$16 sps:$4 sm:$0xff]  }
 0x1ac   :  { %vm3716_vm5 = vcmp.ge.f32.partialorder %v3588_v32, 0.0  ;;  %v3844_v33 = vmul.f32 0.2, %v3588_v32  ;;  %v2253_v34 = vpop.f32.mrb[76].mxu0  ;;  %v3971_v38 = vsel %vm3715_vm4, %v3587_v28, %v3843_v31 }
 0x1ad   :  { %v2798_v35 = vpop.f32.mrb[76].mxu1  ;;  %v2255_v36 = vpop.f32.mrb[77].mxu0 }
 0x1ae   :  { %v3972_v39 = vsel %vm3716_vm5, %v3588_v32, %v3844_v33  ;;  %v2799_v40 = vadd.f32 %v2798_v35, %v2253_v34  ;;  %v2800_v41 = vpop.f32.mrb[77].mxu1  ;;  %v2256_v42 = vpop.f32.mrb[78].mxu0 }
 0x1af   :  { %v5345_v45 = vpack.c.bf16 %v3972_v39, %v3971_v38  ;;  %v2801_v46 = vpop.f32.mrb[78].mxu1  ;;  %v2258_v47 = vpop.f32.mrb[79].mxu0 }
 0x1b0   :  { %v3589_v49 = vadd.f32 %v6857_v27, %v2799_v40  ;;  %v2802_v50 = vadd.f32 %v2801_v46, %v2256_v42  ;;  %v2803_v51 = vpop.f32.mrb[79].mxu1 }
 0x1b1   :  { %5589 = vst [vmem:[%s7311_s3 + $0x90] sm:$0xff] %v5345_v45   ;;  %2468 = vmatmul.mubr.bf16.gmra.mrb[184].mxu0 %v5948_v37  ;;  %v5966_v37 = vld [vmem:[%s7309_s0 + $0x620] ss:$16 sps:$4 sm:$0xff]  }
 0x1b2   :  { %v3845_v52 = vmul.f32 0.2, %v3589_v49  ;;  %v3590_v53 = vadd.f32 %v6857_v27, %v2802_v50  ;;  %3013 = vmatmul.mubr.bf16.gmra.mrb[184].mxu1 %v5949_v43  ;;  %2475 = vmatprep.mubr.bf16.mxu0 %v5950_v44  ;;  %vm3717_vm6 = vcmp.ge.f32.partialorder %v3589_v49, 0.0  ;;  %v5967_v43 = vld [vmem:[%s7309_s0 + $0x628] ss:$16 sps:$4 sm:$0xff]  }
 0x1b3   :  { %3020 = vmatprep.mubr.bf16.mxu1 %v5952_v48  ;;  %v5968_v44 = vld [vmem:[%s7309_s0 + $0x644] ss:$16 sps:$4 sm:$0xff]   ;;  %v5970_v48 = vld [vmem:[%s7309_s0 + $0x64c] ss:$16 sps:$4 sm:$0xff]  }
 0x1b4   :  { %vm3718_vm7 = vcmp.ge.f32.partialorder %v3590_v53, 0.0  ;;  %v3846_v54 = vmul.f32 0.2, %v3590_v53  ;;  %v2261_v55 = vpop.f32.mrb[80].mxu0  ;;  %v3973_v59 = vsel %vm3717_vm6, %v3589_v49, %v3845_v52 }
 0x1b5   :  { %v2806_v56 = vpop.f32.mrb[80].mxu1  ;;  %v2263_v57 = vpop.f32.mrb[81].mxu0 }
 0x1b6   :  { %v3974_v60 = vsel %vm3718_vm7, %v3590_v53, %v3846_v54  ;;  %v2807_v61 = vadd.f32 %v2806_v56, %v2261_v55  ;;  %v2808_v62 = vpop.f32.mrb[81].mxu1  ;;  %v2264_v63 = vpop.f32.mrb[82].mxu0 }
 0x1b7   :  { %v5350_v2 = vpack.c.bf16 %v3974_v60, %v3973_v59  ;;  %v2809_v3 = vpop.f32.mrb[82].mxu1  ;;  %v2266_v4 = vpop.f32.mrb[83].mxu0 }
 0x1b8   :  { %v3591_v6 = vadd.f32 %v6857_v27, %v2807_v61  ;;  %v2810_v7 = vadd.f32 %v2809_v3, %v2264_v63  ;;  %v2811_v8 = vpop.f32.mrb[83].mxu1 }
 0x1b9   :  { %5590 = vst [vmem:[%s7311_s3 + $0x98] sm:$0xff] %v5350_v2   ;;  %2476 = vmatmul.mubr.bf16.gmra.mrb[188].mxu0 %v5954_v58  ;;  %v5972_v58 = vld [vmem:[%s7309_s0 + $0x640] ss:$16 sps:$4 sm:$0xff]  }
 0x1ba   :  { %v3847_v9 = vmul.f32 0.2, %v3591_v6  ;;  %v3592_v10 = vadd.f32 %v6857_v27, %v2810_v7  ;;  %3021 = vmatmul.mubr.bf16.gmra.mrb[188].mxu1 %v5955_v0  ;;  %2483 = vmatprep.mubr.bf16.mxu0 %v5956_v1  ;;  %vm3719_vm8 = vcmp.ge.f32.partialorder %v3591_v6, 0.0  ;;  %v5973_v0 = vld [vmem:[%s7309_s0 + $0x648] ss:$16 sps:$4 sm:$0xff]  }
 0x1bb   :  { %3028 = vmatprep.mubr.bf16.mxu1 %v5958_v5  ;;  %v5974_v1 = vld [vmem:[%s7309_s0 + $0x664] ss:$16 sps:$4 sm:$0xff]   ;;  %v5976_v5 = vld [vmem:[%s7309_s0 + $0x66c] ss:$16 sps:$4 sm:$0xff]  }
 0x1bc   :  { %vm3720_vm9 = vcmp.ge.f32.partialorder %v3592_v10, 0.0  ;;  %v3848_v11 = vmul.f32 0.2, %v3592_v10  ;;  %v2269_v12 = vpop.f32.mrb[84].mxu0  ;;  %v3975_v16 = vsel %vm3719_vm8, %v3591_v6, %v3847_v9 }
 0x1bd   :  { %v2814_v13 = vpop.f32.mrb[84].mxu1  ;;  %v2271_v14 = vpop.f32.mrb[85].mxu0 }
 0x1be   :  { %v3976_v18 = vsel %vm3720_vm9, %v3592_v10, %v3848_v11  ;;  %v2815_v19 = vadd.f32 %v2814_v13, %v2269_v12  ;;  %v2816_v20 = vpop.f32.mrb[85].mxu1  ;;  %v2272_v21 = vpop.f32.mrb[86].mxu0 }
 0x1bf   :  { %v5355_v23 = vpack.c.bf16 %v3976_v18, %v3975_v16  ;;  %v2817_v24 = vpop.f32.mrb[86].mxu1  ;;  %v2274_v25 = vpop.f32.mrb[87].mxu0 }
 0x1c0   :  { %v3593_v28 = vadd.f32 %v6857_v27, %v2815_v19  ;;  %v2818_v29 = vadd.f32 %v2817_v24, %v2272_v21  ;;  %v2819_v30 = vpop.f32.mrb[87].mxu1 }
 0x1c1   :  { %5591 = vst [vmem:[%s7311_s3 + $0xa0] sm:$0xff] %v5355_v23   ;;  %2484 = vmatmul.mubr.bf16.gmra.mrb[192].mxu0 %v5960_v15  ;;  %v5978_v15 = vld [vmem:[%s7309_s0 + $0x660] ss:$16 sps:$4 sm:$0xff]  }
 0x1c2   :  { %v3849_v31 = vmul.f32 0.2, %v3593_v28  ;;  %v3594_v32 = vadd.f32 %v6857_v27, %v2818_v29  ;;  %3029 = vmatmul.mubr.bf16.gmra.mrb[192].mxu1 %v5961_v17  ;;  %2491 = vmatprep.mubr.bf16.mxu0 %v5962_v22  ;;  %vm3721_vm10 = vcmp.ge.f32.partialorder %v3593_v28, 0.0  ;;  %v5979_v17 = vld [vmem:[%s7309_s0 + $0x668] ss:$16 sps:$4 sm:$0xff]  }
 0x1c3   :  { %3036 = vmatprep.mubr.bf16.mxu1 %v5964_v26  ;;  %v5980_v22 = vld [vmem:[%s7309_s0 + $0x684] ss:$16 sps:$4 sm:$0xff]   ;;  %v5982_v26 = vld [vmem:[%s7309_s0 + $0x68c] ss:$16 sps:$4 sm:$0xff]  }
 0x1c4   :  { %vm3722_vm11 = vcmp.ge.f32.partialorder %v3594_v32, 0.0  ;;  %v3850_v33 = vmul.f32 0.2, %v3594_v32  ;;  %v2277_v34 = vpop.f32.mrb[88].mxu0  ;;  %v3977_v38 = vsel %vm3721_vm10, %v3593_v28, %v3849_v31 }
 0x1c5   :  { %v2822_v35 = vpop.f32.mrb[88].mxu1  ;;  %v2279_v36 = vpop.f32.mrb[89].mxu0 }
 0x1c6   :  { %v3978_v39 = vsel %vm3722_vm11, %v3594_v32, %v3850_v33  ;;  %v2823_v40 = vadd.f32 %v2822_v35, %v2277_v34  ;;  %v2824_v41 = vpop.f32.mrb[89].mxu1  ;;  %v2280_v42 = vpop.f32.mrb[90].mxu0 }
 0x1c7   :  { %v5360_v45 = vpack.c.bf16 %v3978_v39, %v3977_v38  ;;  %v2825_v46 = vpop.f32.mrb[90].mxu1  ;;  %v2282_v47 = vpop.f32.mrb[91].mxu0 }
 0x1c8   :  { %v3595_v49 = vadd.f32 %v6857_v27, %v2823_v40  ;;  %v2826_v50 = vadd.f32 %v2825_v46, %v2280_v42  ;;  %v2827_v51 = vpop.f32.mrb[91].mxu1 }
 0x1c9   :  { %5592 = vst [vmem:[%s7311_s3 + $0xa8] sm:$0xff] %v5360_v45   ;;  %2492 = vmatmul.mubr.bf16.gmra.mrb[196].mxu0 %v5966_v37  ;;  %v5984_v37 = vld [vmem:[%s7309_s0 + $0x680] ss:$16 sps:$4 sm:$0xff]  }
 0x1ca   :  { %v3851_v52 = vmul.f32 0.2, %v3595_v49  ;;  %v3596_v53 = vadd.f32 %v6857_v27, %v2826_v50  ;;  %3037 = vmatmul.mubr.bf16.gmra.mrb[196].mxu1 %v5967_v43  ;;  %2499 = vmatprep.mubr.bf16.mxu0 %v5968_v44  ;;  %vm3723_vm12 = vcmp.ge.f32.partialorder %v3595_v49, 0.0  ;;  %v5985_v43 = vld [vmem:[%s7309_s0 + $0x688] ss:$16 sps:$4 sm:$0xff]  }
 0x1cb   :  { %3044 = vmatprep.mubr.bf16.mxu1 %v5970_v48  ;;  %v5986_v44 = vld [vmem:[%s7309_s0 + $0x6a4] ss:$16 sps:$4 sm:$0xff]   ;;  %v5988_v48 = vld [vmem:[%s7309_s0 + $0x6ac] ss:$16 sps:$4 sm:$0xff]  }
 0x1cc   :  { %vm3724_vm13 = vcmp.ge.f32.partialorder %v3596_v53, 0.0  ;;  %v3852_v54 = vmul.f32 0.2, %v3596_v53  ;;  %v2285_v55 = vpop.f32.mrb[92].mxu0  ;;  %v3979_v59 = vsel %vm3723_vm12, %v3595_v49, %v3851_v52 }
 0x1cd   :  { %v2830_v56 = vpop.f32.mrb[92].mxu1  ;;  %v2287_v57 = vpop.f32.mrb[93].mxu0 }
 0x1ce   :  { %v3980_v60 = vsel %vm3724_vm13, %v3596_v53, %v3852_v54  ;;  %v2831_v61 = vadd.f32 %v2830_v56, %v2285_v55  ;;  %v2832_v62 = vpop.f32.mrb[93].mxu1  ;;  %v2288_v63 = vpop.f32.mrb[94].mxu0 }
 0x1cf   :  { %v5365_v2 = vpack.c.bf16 %v3980_v60, %v3979_v59  ;;  %v2833_v3 = vpop.f32.mrb[94].mxu1  ;;  %v2290_v4 = vpop.f32.mrb[95].mxu0 }
 0x1d0   :  { %v3597_v6 = vadd.f32 %v6857_v27, %v2831_v61  ;;  %v2834_v7 = vadd.f32 %v2833_v3, %v2288_v63  ;;  %v2835_v8 = vpop.f32.mrb[95].mxu1 }
 0x1d1   :  { %5593 = vst [vmem:[%s7311_s3 + $0xb0] sm:$0xff] %v5365_v2   ;;  %2500 = vmatmul.mubr.bf16.gmra.mrb[200].mxu0 %v5972_v58  ;;  %v5990_v58 = vld [vmem:[%s7309_s0 + $0x6a0] ss:$16 sps:$4 sm:$0xff]  }
 0x1d2   :  { %v3853_v9 = vmul.f32 0.2, %v3597_v6  ;;  %v3598_v10 = vadd.f32 %v6857_v27, %v2834_v7  ;;  %3045 = vmatmul.mubr.bf16.gmra.mrb[200].mxu1 %v5973_v0  ;;  %2507 = vmatprep.mubr.bf16.mxu0 %v5974_v1  ;;  %vm3725_vm14 = vcmp.ge.f32.partialorder %v3597_v6, 0.0  ;;  %v5991_v0 = vld [vmem:[%s7309_s0 + $0x6a8] ss:$16 sps:$4 sm:$0xff]  }
 0x1d3   :  { %3052 = vmatprep.mubr.bf16.mxu1 %v5976_v5  ;;  %v5992_v1 = vld [vmem:[%s7309_s0 + $0x6c4] ss:$16 sps:$4 sm:$0xff]   ;;  %v5994_v5 = vld [vmem:[%s7309_s0 + $0x6cc] ss:$16 sps:$4 sm:$0xff]  }
 0x1d4   :  { %vm3726_vm15 = vcmp.ge.f32.partialorder %v3598_v10, 0.0  ;;  %v3854_v11 = vmul.f32 0.2, %v3598_v10  ;;  %v2293_v12 = vpop.f32.mrb[96].mxu0  ;;  %v3981_v16 = vsel %vm3725_vm14, %v3597_v6, %v3853_v9 }
 0x1d5   :  { %v2838_v13 = vpop.f32.mrb[96].mxu1  ;;  %v2295_v14 = vpop.f32.mrb[97].mxu0 }
 0x1d6   :  { %v3982_v18 = vsel %vm3726_vm15, %v3598_v10, %v3854_v11  ;;  %v2839_v19 = vadd.f32 %v2838_v13, %v2293_v12  ;;  %v2840_v20 = vpop.f32.mrb[97].mxu1  ;;  %v2296_v21 = vpop.f32.mrb[98].mxu0 }
 0x1d7   :  { %v5370_v23 = vpack.c.bf16 %v3982_v18, %v3981_v16  ;;  %v2841_v24 = vpop.f32.mrb[98].mxu1  ;;  %v2298_v25 = vpop.f32.mrb[99].mxu0 }
 0x1d8   :  { %v3599_v28 = vadd.f32 %v6857_v27, %v2839_v19  ;;  %v2842_v29 = vadd.f32 %v2841_v24, %v2296_v21  ;;  %v2843_v30 = vpop.f32.mrb[99].mxu1 }
 0x1d9   :  { %5594 = vst [vmem:[%s7311_s3 + $0xb8] sm:$0xff] %v5370_v23   ;;  %2508 = vmatmul.mubr.bf16.gmra.mrb[204].mxu0 %v5978_v15  ;;  %v5996_v15 = vld [vmem:[%s7309_s0 + $0x6c0] ss:$16 sps:$4 sm:$0xff]  }
 0x1da   :  { %v3855_v31 = vmul.f32 0.2, %v3599_v28  ;;  %v3600_v32 = vadd.f32 %v6857_v27, %v2842_v29  ;;  %3053 = vmatmul.mubr.bf16.gmra.mrb[204].mxu1 %v5979_v17  ;;  %2515 = vmatprep.mubr.bf16.mxu0 %v5980_v22  ;;  %vm3727_vm0 = vcmp.ge.f32.partialorder %v3599_v28, 0.0  ;;  %v5997_v17 = vld [vmem:[%s7309_s0 + $0x6c8] ss:$16 sps:$4 sm:$0xff]  }
 0x1db   :  { %3060 = vmatprep.mubr.bf16.mxu1 %v5982_v26  ;;  %v5998_v22 = vld [vmem:[%s7309_s0 + $0x6e4] ss:$16 sps:$4 sm:$0xff]   ;;  %v6000_v26 = vld [vmem:[%s7309_s0 + $0x6ec] ss:$16 sps:$4 sm:$0xff]  }
 0x1dc   :  { %vm3728_vm1 = vcmp.ge.f32.partialorder %v3600_v32, 0.0  ;;  %v3856_v33 = vmul.f32 0.2, %v3600_v32  ;;  %v2301_v34 = vpop.f32.mrb[100].mxu0  ;;  %v3983_v38 = vsel %vm3727_vm0, %v3599_v28, %v3855_v31 }
 0x1dd   :  { %v2846_v35 = vpop.f32.mrb[100].mxu1  ;;  %v2303_v36 = vpop.f32.mrb[101].mxu0 }
 0x1de   :  { %v3984_v39 = vsel %vm3728_vm1, %v3600_v32, %v3856_v33  ;;  %v2847_v40 = vadd.f32 %v2846_v35, %v2301_v34  ;;  %v2848_v41 = vpop.f32.mrb[101].mxu1  ;;  %v2304_v42 = vpop.f32.mrb[102].mxu0 }
 0x1df   :  { %v5375_v45 = vpack.c.bf16 %v3984_v39, %v3983_v38  ;;  %v2849_v46 = vpop.f32.mrb[102].mxu1  ;;  %v2306_v47 = vpop.f32.mrb[103].mxu0 }
 0x1e0   :  { %v3601_v49 = vadd.f32 %v6857_v27, %v2847_v40  ;;  %v2850_v50 = vadd.f32 %v2849_v46, %v2304_v42  ;;  %v2851_v51 = vpop.f32.mrb[103].mxu1 }
 0x1e1   :  { %5595 = vst [vmem:[%s7311_s3 + $0xc0] sm:$0xff] %v5375_v45   ;;  %2516 = vmatmul.mubr.bf16.gmra.mrb[208].mxu0 %v5984_v37  ;;  %v6002_v37 = vld [vmem:[%s7309_s0 + $0x6e0] ss:$16 sps:$4 sm:$0xff]  }
 0x1e2   :  { %v3857_v52 = vmul.f32 0.2, %v3601_v49  ;;  %v3602_v53 = vadd.f32 %v6857_v27, %v2850_v50  ;;  %3061 = vmatmul.mubr.bf16.gmra.mrb[208].mxu1 %v5985_v43  ;;  %2523 = vmatprep.mubr.bf16.mxu0 %v5986_v44  ;;  %vm3729_vm2 = vcmp.ge.f32.partialorder %v3601_v49, 0.0  ;;  %v6003_v43 = vld [vmem:[%s7309_s0 + $0x6e8] ss:$16 sps:$4 sm:$0xff]  }
 0x1e3   :  { %3068 = vmatprep.mubr.bf16.mxu1 %v5988_v48  ;;  %v6004_v44 = vld [vmem:[%s7309_s0 + $0x704] ss:$16 sps:$4 sm:$0xff]   ;;  %v6006_v48 = vld [vmem:[%s7309_s0 + $0x70c] ss:$16 sps:$4 sm:$0xff]  }
 0x1e4   :  { %vm3730_vm3 = vcmp.ge.f32.partialorder %v3602_v53, 0.0  ;;  %v3858_v54 = vmul.f32 0.2, %v3602_v53  ;;  %v2309_v55 = vpop.f32.mrb[104].mxu0  ;;  %v3985_v59 = vsel %vm3729_vm2, %v3601_v49, %v3857_v52 }
 0x1e5   :  { %v2854_v56 = vpop.f32.mrb[104].mxu1  ;;  %v2311_v57 = vpop.f32.mrb[105].mxu0 }
 0x1e6   :  { %v3986_v60 = vsel %vm3730_vm3, %v3602_v53, %v3858_v54  ;;  %v2855_v61 = vadd.f32 %v2854_v56, %v2309_v55  ;;  %v2856_v62 = vpop.f32.mrb[105].mxu1  ;;  %v2312_v63 = vpop.f32.mrb[106].mxu0 }
 0x1e7   :  { %v5380_v2 = vpack.c.bf16 %v3986_v60, %v3985_v59  ;;  %v2857_v3 = vpop.f32.mrb[106].mxu1  ;;  %v2314_v4 = vpop.f32.mrb[107].mxu0 }
 0x1e8   :  { %v3603_v6 = vadd.f32 %v6857_v27, %v2855_v61  ;;  %v2858_v7 = vadd.f32 %v2857_v3, %v2312_v63  ;;  %v2859_v8 = vpop.f32.mrb[107].mxu1 }
 0x1e9   :  { %5596 = vst [vmem:[%s7311_s3 + $0xc8] sm:$0xff] %v5380_v2   ;;  %2524 = vmatmul.mubr.bf16.gmra.mrb[212].mxu0 %v5990_v58  ;;  %v6008_v58 = vld [vmem:[%s7309_s0 + $0x700] ss:$16 sps:$4 sm:$0xff]  }
 0x1ea   :  { %v3859_v9 = vmul.f32 0.2, %v3603_v6  ;;  %v3604_v10 = vadd.f32 %v6857_v27, %v2858_v7  ;;  %3069 = vmatmul.mubr.bf16.gmra.mrb[212].mxu1 %v5991_v0  ;;  %2531 = vmatprep.mubr.bf16.mxu0 %v5992_v1  ;;  %vm3731_vm4 = vcmp.ge.f32.partialorder %v3603_v6, 0.0  ;;  %v6009_v0 = vld [vmem:[%s7309_s0 + $0x708] ss:$16 sps:$4 sm:$0xff]  }
 0x1eb   :  { %3076 = vmatprep.mubr.bf16.mxu1 %v5994_v5  ;;  %v6010_v1 = vld [vmem:[%s7309_s0 + $0x724] ss:$16 sps:$4 sm:$0xff]   ;;  %v6012_v5 = vld [vmem:[%s7309_s0 + $0x72c] ss:$16 sps:$4 sm:$0xff]  }
 0x1ec   :  { %vm3732_vm5 = vcmp.ge.f32.partialorder %v3604_v10, 0.0  ;;  %v3860_v11 = vmul.f32 0.2, %v3604_v10  ;;  %v2317_v12 = vpop.f32.mrb[108].mxu0  ;;  %v3987_v16 = vsel %vm3731_vm4, %v3603_v6, %v3859_v9 }
 0x1ed   :  { %v2862_v13 = vpop.f32.mrb[108].mxu1  ;;  %v2319_v14 = vpop.f32.mrb[109].mxu0 }
 0x1ee   :  { %v3988_v18 = vsel %vm3732_vm5, %v3604_v10, %v3860_v11  ;;  %v2863_v19 = vadd.f32 %v2862_v13, %v2317_v12  ;;  %v2864_v20 = vpop.f32.mrb[109].mxu1  ;;  %v2320_v21 = vpop.f32.mrb[110].mxu0 }
 0x1ef   :  { %v5385_v23 = vpack.c.bf16 %v3988_v18, %v3987_v16  ;;  %v2865_v24 = vpop.f32.mrb[110].mxu1  ;;  %v2322_v25 = vpop.f32.mrb[111].mxu0 }
 0x1f0   :  { %v3605_v28 = vadd.f32 %v6857_v27, %v2863_v19  ;;  %v2866_v29 = vadd.f32 %v2865_v24, %v2320_v21  ;;  %v2867_v30 = vpop.f32.mrb[111].mxu1 }
 0x1f1   :  { %5597 = vst [vmem:[%s7311_s3 + $0xd0] sm:$0xff] %v5385_v23   ;;  %2532 = vmatmul.mubr.bf16.gmra.mrb[216].mxu0 %v5996_v15  ;;  %v6014_v15 = vld [vmem:[%s7309_s0 + $0x720] ss:$16 sps:$4 sm:$0xff]  }
 0x1f2   :  { %v3861_v31 = vmul.f32 0.2, %v3605_v28  ;;  %v3606_v32 = vadd.f32 %v6857_v27, %v2866_v29  ;;  %3077 = vmatmul.mubr.bf16.gmra.mrb[216].mxu1 %v5997_v17  ;;  %2539 = vmatprep.mubr.bf16.mxu0 %v5998_v22  ;;  %vm3733_vm6 = vcmp.ge.f32.partialorder %v3605_v28, 0.0  ;;  %v6015_v17 = vld [vmem:[%s7309_s0 + $0x728] ss:$16 sps:$4 sm:$0xff]  }
 0x1f3   :  { %3084 = vmatprep.mubr.bf16.mxu1 %v6000_v26  ;;  %v6016_v22 = vld [vmem:[%s7309_s0 + $0x744] ss:$16 sps:$4 sm:$0xff]   ;;  %v6018_v26 = vld [vmem:[%s7309_s0 + $0x74c] ss:$16 sps:$4 sm:$0xff]  }
 0x1f4   :  { %vm3734_vm7 = vcmp.ge.f32.partialorder %v3606_v32, 0.0  ;;  %v3862_v33 = vmul.f32 0.2, %v3606_v32  ;;  %v2325_v34 = vpop.f32.mrb[112].mxu0  ;;  %v3989_v38 = vsel %vm3733_vm6, %v3605_v28, %v3861_v31 }
 0x1f5   :  { %v2870_v35 = vpop.f32.mrb[112].mxu1  ;;  %v2327_v36 = vpop.f32.mrb[113].mxu0 }
 0x1f6   :  { %v3990_v39 = vsel %vm3734_vm7, %v3606_v32, %v3862_v33  ;;  %v2871_v40 = vadd.f32 %v2870_v35, %v2325_v34  ;;  %v2872_v41 = vpop.f32.mrb[113].mxu1  ;;  %v2328_v42 = vpop.f32.mrb[114].mxu0 }
 0x1f7   :  { %v5390_v45 = vpack.c.bf16 %v3990_v39, %v3989_v38  ;;  %v2873_v46 = vpop.f32.mrb[114].mxu1  ;;  %v2330_v47 = vpop.f32.mrb[115].mxu0 }
 0x1f8   :  { %v3607_v49 = vadd.f32 %v6857_v27, %v2871_v40  ;;  %v2874_v50 = vadd.f32 %v2873_v46, %v2328_v42  ;;  %v2875_v51 = vpop.f32.mrb[115].mxu1 }
 0x1f9   :  { %5598 = vst [vmem:[%s7311_s3 + $0xd8] sm:$0xff] %v5390_v45   ;;  %2540 = vmatmul.mubr.bf16.gmra.mrb[220].mxu0 %v6002_v37  ;;  %v6020_v37 = vld [vmem:[%s7309_s0 + $0x740] ss:$16 sps:$4 sm:$0xff]  }
 0x1fa   :  { %v3863_v52 = vmul.f32 0.2, %v3607_v49  ;;  %v3608_v53 = vadd.f32 %v6857_v27, %v2874_v50  ;;  %3085 = vmatmul.mubr.bf16.gmra.mrb[220].mxu1 %v6003_v43  ;;  %2547 = vmatprep.mubr.bf16.mxu0 %v6004_v44  ;;  %vm3735_vm8 = vcmp.ge.f32.partialorder %v3607_v49, 0.0  ;;  %v6021_v43 = vld [vmem:[%s7309_s0 + $0x748] ss:$16 sps:$4 sm:$0xff]  }
 0x1fb   :  { %3092 = vmatprep.mubr.bf16.mxu1 %v6006_v48  ;;  %v6022_v44 = vld [vmem:[%s7309_s0 + $0x764] ss:$16 sps:$4 sm:$0xff]   ;;  %v6024_v48 = vld [vmem:[%s7309_s0 + $0x76c] ss:$16 sps:$4 sm:$0xff]  }
 0x1fc   :  { %vm3736_vm9 = vcmp.ge.f32.partialorder %v3608_v53, 0.0  ;;  %v3864_v54 = vmul.f32 0.2, %v3608_v53  ;;  %v2333_v55 = vpop.f32.mrb[116].mxu0  ;;  %v3991_v59 = vsel %vm3735_vm8, %v3607_v49, %v3863_v52 }
 0x1fd   :  { %v2878_v56 = vpop.f32.mrb[116].mxu1  ;;  %v2335_v57 = vpop.f32.mrb[117].mxu0 }
 0x1fe   :  { %v3992_v60 = vsel %vm3736_vm9, %v3608_v53, %v3864_v54  ;;  %v2879_v61 = vadd.f32 %v2878_v56, %v2333_v55  ;;  %v2880_v62 = vpop.f32.mrb[117].mxu1  ;;  %v2336_v63 = vpop.f32.mrb[118].mxu0 }
 0x1ff   :  { %v5395_v2 = vpack.c.bf16 %v3992_v60, %v3991_v59  ;;  %v2881_v3 = vpop.f32.mrb[118].mxu1  ;;  %v2338_v4 = vpop.f32.mrb[119].mxu0 }
 0x200   :  { %v3609_v6 = vadd.f32 %v6857_v27, %v2879_v61  ;;  %v2882_v7 = vadd.f32 %v2881_v3, %v2336_v63  ;;  %v2883_v8 = vpop.f32.mrb[119].mxu1 }
 0x201   :  { %5599 = vst [vmem:[%s7311_s3 + $0xe0] sm:$0xff] %v5395_v2   ;;  %2548 = vmatmul.mubr.bf16.gmra.mrb[224].mxu0 %v6008_v58  ;;  %v6026_v58 = vld [vmem:[%s7309_s0 + $0x760] ss:$16 sps:$4 sm:$0xff]  }
 0x202   :  { %v3865_v9 = vmul.f32 0.2, %v3609_v6  ;;  %v3610_v10 = vadd.f32 %v6857_v27, %v2882_v7  ;;  %3093 = vmatmul.mubr.bf16.gmra.mrb[224].mxu1 %v6009_v0  ;;  %2555 = vmatprep.mubr.bf16.mxu0 %v6010_v1  ;;  %vm3737_vm10 = vcmp.ge.f32.partialorder %v3609_v6, 0.0  ;;  %v6027_v0 = vld [vmem:[%s7309_s0 + $0x768] ss:$16 sps:$4 sm:$0xff]  }
 0x203   :  { %3100 = vmatprep.mubr.bf16.mxu1 %v6012_v5  ;;  %v6028_v1 = vld [vmem:[%s7309_s0 + $0x784] ss:$16 sps:$4 sm:$0xff]   ;;  %v6030_v5 = vld [vmem:[%s7309_s0 + $0x78c] ss:$16 sps:$4 sm:$0xff]  }
 0x204   :  { %vm3738_vm11 = vcmp.ge.f32.partialorder %v3610_v10, 0.0  ;;  %v3866_v11 = vmul.f32 0.2, %v3610_v10  ;;  %v2341_v12 = vpop.f32.mrb[120].mxu0  ;;  %v3993_v16 = vsel %vm3737_vm10, %v3609_v6, %v3865_v9 }
 0x205   :  { %v2886_v13 = vpop.f32.mrb[120].mxu1  ;;  %v2343_v14 = vpop.f32.mrb[121].mxu0 }
 0x206   :  { %v3994_v18 = vsel %vm3738_vm11, %v3610_v10, %v3866_v11  ;;  %v2887_v19 = vadd.f32 %v2886_v13, %v2341_v12  ;;  %v2888_v20 = vpop.f32.mrb[121].mxu1  ;;  %v2344_v21 = vpop.f32.mrb[122].mxu0 }
 0x207   :  { %v5400_v23 = vpack.c.bf16 %v3994_v18, %v3993_v16  ;;  %v2889_v24 = vpop.f32.mrb[122].mxu1  ;;  %v2346_v25 = vpop.f32.mrb[123].mxu0 }
 0x208   :  { %v3611_v28 = vadd.f32 %v6857_v27, %v2887_v19  ;;  %v2890_v29 = vadd.f32 %v2889_v24, %v2344_v21  ;;  %v2891_v30 = vpop.f32.mrb[123].mxu1 }
 0x209   :  { %5600 = vst [vmem:[%s7311_s3 + $0xe8] sm:$0xff] %v5400_v23   ;;  %2556 = vmatmul.mubr.bf16.gmra.mrb[228].mxu0 %v6014_v15  ;;  %v6032_v15 = vld [vmem:[%s7309_s0 + $0x780] ss:$16 sps:$4 sm:$0xff]  }
 0x20a   :  { %v3867_v31 = vmul.f32 0.2, %v3611_v28  ;;  %v3612_v32 = vadd.f32 %v6857_v27, %v2890_v29  ;;  %3101 = vmatmul.mubr.bf16.gmra.mrb[228].mxu1 %v6015_v17  ;;  %2563 = vmatprep.mubr.bf16.mxu0 %v6016_v22  ;;  %vm3739_vm12 = vcmp.ge.f32.partialorder %v3611_v28, 0.0  ;;  %v6033_v17 = vld [vmem:[%s7309_s0 + $0x788] ss:$16 sps:$4 sm:$0xff]  }
 0x20b   :  { %3108 = vmatprep.mubr.bf16.mxu1 %v6018_v26  ;;  %v6034_v22 = vld [vmem:[%s7309_s0 + $0x7a4] ss:$16 sps:$4 sm:$0xff]   ;;  %v6036_v26 = vld [vmem:[%s7309_s0 + $0x7ac] ss:$16 sps:$4 sm:$0xff]  }
 0x20c   :  { %vm3740_vm13 = vcmp.ge.f32.partialorder %v3612_v32, 0.0  ;;  %v3868_v33 = vmul.f32 0.2, %v3612_v32  ;;  %v2349_v34 = vpop.f32.mrb[124].mxu0  ;;  %v3995_v38 = vsel %vm3739_vm12, %v3611_v28, %v3867_v31 }
 0x20d   :  { %v2894_v35 = vpop.f32.mrb[124].mxu1  ;;  %v2351_v36 = vpop.f32.mrb[125].mxu0 }
 0x20e   :  { %v3996_v39 = vsel %vm3740_vm13, %v3612_v32, %v3868_v33  ;;  %v2895_v40 = vadd.f32 %v2894_v35, %v2349_v34  ;;  %v2896_v41 = vpop.f32.mrb[125].mxu1  ;;  %v2352_v42 = vpop.f32.mrb[126].mxu0 }
 0x20f   :  { %v5405_v45 = vpack.c.bf16 %v3996_v39, %v3995_v38  ;;  %v2897_v46 = vpop.f32.mrb[126].mxu1  ;;  %v2354_v47 = vpop.f32.mrb[127].mxu0 }
 0x210   :  { %v3613_v49 = vadd.f32 %v6857_v27, %v2895_v40  ;;  %v2898_v50 = vadd.f32 %v2897_v46, %v2352_v42  ;;  %v2899_v51 = vpop.f32.mrb[127].mxu1 }
 0x211   :  { %5601 = vst [vmem:[%s7311_s3 + $0xf0] sm:$0xff] %v5405_v45   ;;  %2564 = vmatmul.mubr.bf16.gmra.mrb[232].mxu0 %v6020_v37  ;;  %v6038_v37 = vld [vmem:[%s7309_s0 + $0x7a0] ss:$16 sps:$4 sm:$0xff]  }
 0x212   :  { %v3869_v52 = vmul.f32 0.2, %v3613_v49  ;;  %v3614_v53 = vadd.f32 %v6857_v27, %v2898_v50  ;;  %3109 = vmatmul.mubr.bf16.gmra.mrb[232].mxu1 %v6021_v43  ;;  %2571 = vmatprep.mubr.bf16.mxu0 %v6022_v44  ;;  %vm3741_vm14 = vcmp.ge.f32.partialorder %v3613_v49, 0.0  ;;  %v6039_v43 = vld [vmem:[%s7309_s0 + $0x7a8] ss:$16 sps:$4 sm:$0xff]  }
 0x213   :  { %3116 = vmatprep.mubr.bf16.mxu1 %v6024_v48  ;;  %v6040_v44 = vld [vmem:[%s7309_s0 + $0x7c4] ss:$16 sps:$4 sm:$0xff]   ;;  %v6042_v48 = vld [vmem:[%s7309_s0 + $0x7cc] ss:$16 sps:$4 sm:$0xff]  }
 0x214   :  { %vm3742_vm15 = vcmp.ge.f32.partialorder %v3614_v53, 0.0  ;;  %v3870_v54 = vmul.f32 0.2, %v3614_v53  ;;  %v2357_v55 = vpop.f32.mrb[128].mxu0  ;;  %v3997_v59 = vsel %vm3741_vm14, %v3613_v49, %v3869_v52 }
 0x215   :  { %v2902_v56 = vpop.f32.mrb[128].mxu1  ;;  %v2359_v57 = vpop.f32.mrb[129].mxu0 }
 0x216   :  { %v3998_v60 = vsel %vm3742_vm15, %v3614_v53, %v3870_v54  ;;  %v2903_v61 = vadd.f32 %v2902_v56, %v2357_v55  ;;  %v2904_v62 = vpop.f32.mrb[129].mxu1  ;;  %v2360_v63 = vpop.f32.mrb[130].mxu0 }
 0x217   :  { %v5410_v2 = vpack.c.bf16 %v3998_v60, %v3997_v59  ;;  %v2905_v3 = vpop.f32.mrb[130].mxu1  ;;  %v2362_v4 = vpop.f32.mrb[131].mxu0 }
 0x218   :  { %v3615_v6 = vadd.f32 %v6857_v27, %v2903_v61  ;;  %v2906_v7 = vadd.f32 %v2905_v3, %v2360_v63  ;;  %v2907_v8 = vpop.f32.mrb[131].mxu1 }
 0x219   :  { %5602 = vst [vmem:[%s7311_s3 + $0xf8] sm:$0xff] %v5410_v2   ;;  %2572 = vmatmul.mubr.bf16.gmra.mrb[236].mxu0 %v6026_v58  ;;  %v6044_v58 = vld [vmem:[%s7309_s0 + $0x7c0] ss:$16 sps:$4 sm:$0xff]  }
 0x21a   :  { %v3871_v9 = vmul.f32 0.2, %v3615_v6  ;;  %v3616_v10 = vadd.f32 %v6857_v27, %v2906_v7  ;;  %3117 = vmatmul.mubr.bf16.gmra.mrb[236].mxu1 %v6027_v0  ;;  %2579 = vmatprep.mubr.bf16.mxu0 %v6028_v1  ;;  %vm3743_vm0 = vcmp.ge.f32.partialorder %v3615_v6, 0.0  ;;  %v6045_v0 = vld [vmem:[%s7309_s0 + $0x7c8] ss:$16 sps:$4 sm:$0xff]  }
 0x21b   :  { %3124 = vmatprep.mubr.bf16.mxu1 %v6030_v5  ;;  %v6046_v1 = vld [vmem:[%s7309_s0 + $0x7e4] ss:$16 sps:$4 sm:$0xff]   ;;  %v6048_v5 = vld [vmem:[%s7309_s0 + $0x7ec] ss:$16 sps:$4 sm:$0xff]  }
 0x21c   :  { %vm3744_vm1 = vcmp.ge.f32.partialorder %v3616_v10, 0.0  ;;  %v3872_v11 = vmul.f32 0.2, %v3616_v10  ;;  %v2365_v12 = vpop.f32.mrb[132].mxu0  ;;  %v3999_v16 = vsel %vm3743_vm0, %v3615_v6, %v3871_v9 }
 0x21d   :  { %v2910_v13 = vpop.f32.mrb[132].mxu1  ;;  %v2367_v14 = vpop.f32.mrb[133].mxu0 }
 0x21e   :  { %v4000_v18 = vsel %vm3744_vm1, %v3616_v10, %v3872_v11  ;;  %v2911_v19 = vadd.f32 %v2910_v13, %v2365_v12  ;;  %v2912_v20 = vpop.f32.mrb[133].mxu1  ;;  %v2368_v21 = vpop.f32.mrb[134].mxu0 }
 0x21f   :  { %v5415_v23 = vpack.c.bf16 %v4000_v18, %v3999_v16  ;;  %v2913_v24 = vpop.f32.mrb[134].mxu1  ;;  %v2370_v25 = vpop.f32.mrb[135].mxu0 }
 0x220   :  { %v3617_v28 = vadd.f32 %v6857_v27, %v2911_v19  ;;  %v2914_v29 = vadd.f32 %v2913_v24, %v2368_v21  ;;  %v2915_v30 = vpop.f32.mrb[135].mxu1 }
 0x221   :  { %5603 = vst [vmem:[%s7311_s3 + $0x100] sm:$0xff] %v5415_v23   ;;  %2580 = vmatmul.mubr.bf16.gmra.mrb[240].mxu0 %v6032_v15  ;;  %v6050_v15 = vld [vmem:[%s7309_s0 + $0x7e0] ss:$16 sps:$4 sm:$0xff]  }
 0x222   :  { %v3873_v31 = vmul.f32 0.2, %v3617_v28  ;;  %v3618_v32 = vadd.f32 %v6857_v27, %v2914_v29  ;;  %3125 = vmatmul.mubr.bf16.gmra.mrb[240].mxu1 %v6033_v17  ;;  %2587 = vmatprep.mubr.bf16.mxu0 %v6034_v22  ;;  %vm3745_vm2 = vcmp.ge.f32.partialorder %v3617_v28, 0.0  ;;  %v6051_v17 = vld [vmem:[%s7309_s0 + $0x7e8] ss:$16 sps:$4 sm:$0xff]  }
 0x223   :  { %3132 = vmatprep.mubr.bf16.mxu1 %v6036_v26 }
 0x224   :  { %vm3746_vm3 = vcmp.ge.f32.partialorder %v3618_v32, 0.0  ;;  %v3874_v33 = vmul.f32 0.2, %v3618_v32  ;;  %v2373_v34 = vpop.f32.mrb[136].mxu0  ;;  %v4001_v38 = vsel %vm3745_vm2, %v3617_v28, %v3873_v31 }
 0x225   :  { %v2918_v35 = vpop.f32.mrb[136].mxu1  ;;  %v2375_v36 = vpop.f32.mrb[137].mxu0 }
 0x226   :  { %v4002_v39 = vsel %vm3746_vm3, %v3618_v32, %v3874_v33  ;;  %v2919_v40 = vadd.f32 %v2918_v35, %v2373_v34  ;;  %v2920_v41 = vpop.f32.mrb[137].mxu1  ;;  %v2376_v42 = vpop.f32.mrb[138].mxu0 }
 0x227   :  { %v5420_v45 = vpack.c.bf16 %v4002_v39, %v4001_v38  ;;  %v2921_v46 = vpop.f32.mrb[138].mxu1  ;;  %v2378_v47 = vpop.f32.mrb[139].mxu0 }
 0x228   :  { %v3619_v49 = vadd.f32 %v6857_v27, %v2919_v40  ;;  %v2922_v50 = vadd.f32 %v2921_v46, %v2376_v42  ;;  %v2923_v51 = vpop.f32.mrb[139].mxu1 }
 0x229   :  { %5604 = vst [vmem:[%s7311_s3 + $0x108] sm:$0xff] %v5420_v45   ;;  %2588 = vmatmul.mubr.bf16.gmra.mrb[244].mxu0 %v6038_v37 }
 0x22a   :  { %v3875_v52 = vmul.f32 0.2, %v3619_v49  ;;  %v3620_v53 = vadd.f32 %v6857_v27, %v2922_v50  ;;  %3133 = vmatmul.mubr.bf16.gmra.mrb[244].mxu1 %v6039_v43  ;;  %2595 = vmatprep.mubr.bf16.mxu0 %v6040_v44  ;;  %vm3747_vm4 = vcmp.ge.f32.partialorder %v3619_v49, 0.0  ;;  %v7167_v43 = vld [vmem:[%s7310_s2] ss:$0 sm:$0xff] }
 0x22b   :  { %3140 = vmatprep.mubr.bf16.mxu1 %v6042_v48 }
 0x22c   :  { %vm3748_vm5 = vcmp.ge.f32.partialorder %v3620_v53, 0.0  ;;  %v3876_v54 = vmul.f32 0.2, %v3620_v53  ;;  %v2381_v55 = vpop.f32.mrb[140].mxu0  ;;  %v4003_v59 = vsel %vm3747_vm4, %v3619_v49, %v3875_v52 }
 0x22d   :  { %v2926_v56 = vpop.f32.mrb[140].mxu1  ;;  %v2383_v57 = vpop.f32.mrb[141].mxu0 }
 0x22e   :  { %v4004_v60 = vsel %vm3748_vm5, %v3620_v53, %v3876_v54  ;;  %v2927_v61 = vadd.f32 %v2926_v56, %v2381_v55  ;;  %v2928_v62 = vpop.f32.mrb[141].mxu1  ;;  %v2384_v63 = vpop.f32.mrb[142].mxu0 }
 0x22f   :  { %v5425_v2 = vpack.c.bf16 %v4004_v60, %v4003_v59  ;;  %v2929_v3 = vpop.f32.mrb[142].mxu1  ;;  %v2386_v4 = vpop.f32.mrb[143].mxu0 }
 0x230   :  { %v3621_v6 = vadd.f32 %v6857_v27, %v2927_v61  ;;  %v2930_v7 = vadd.f32 %v2929_v3, %v2384_v63  ;;  %v2931_v8 = vpop.f32.mrb[143].mxu1 }
 0x231   :  { %5605 = vst [vmem:[%s7311_s3 + $0x110] sm:$0xff] %v5425_v2   ;;  %2596 = vmatmul.mubr.bf16.gmra.mrb[248].mxu0 %v6044_v58 }
 0x232   :  { %v3877_v9 = vmul.f32 0.2, %v3621_v6  ;;  %v3622_v10 = vadd.f32 %v6857_v27, %v2930_v7  ;;  %3141 = vmatmul.mubr.bf16.gmra.mrb[248].mxu1 %v6045_v0  ;;  %2603 = vmatprep.mubr.bf16.mxu0 %v6046_v1  ;;  %vm3749_vm6 = vcmp.ge.f32.partialorder %v3621_v6, 0.0 }
 0x233   :  { %3148 = vmatprep.mubr.bf16.mxu1 %v6048_v5 }
 0x234   :  { %vm3750_vm7 = vcmp.ge.f32.partialorder %v3622_v10, 0.0  ;;  %v3878_v11 = vmul.f32 0.2, %v3622_v10  ;;  %v2389_v12 = vpop.f32.mrb[144].mxu0  ;;  %v4005_v16 = vsel %vm3749_vm6, %v3621_v6, %v3877_v9 }
 0x235   :  { %v2934_v13 = vpop.f32.mrb[144].mxu1  ;;  %v2391_v14 = vpop.f32.mrb[145].mxu0 }
 0x236   :  { %v4006_v18 = vsel %vm3750_vm7, %v3622_v10, %v3878_v11  ;;  %v2935_v19 = vadd.f32 %v2934_v13, %v2389_v12  ;;  %v2936_v20 = vpop.f32.mrb[145].mxu1  ;;  %v2392_v21 = vpop.f32.mrb[146].mxu0 }
 0x237   :  { %v5430_v22 = vpack.c.bf16 %v4006_v18, %v4005_v16  ;;  %v2937_v23 = vpop.f32.mrb[146].mxu1  ;;  %v2394_v24 = vpop.f32.mrb[147].mxu0 }
 0x238   :  { %v3623_v25 = vadd.f32 %v6857_v27, %v2935_v19  ;;  %v2938_v26 = vadd.f32 %v2937_v23, %v2392_v21  ;;  %v2939_v28 = vpop.f32.mrb[147].mxu1 }
 0x239   :  { %5606 = vst [vmem:[%s7311_s3 + $0x118] sm:$0xff] %v5430_v22   ;;  %2604 = vmatmul.mubr.bf16.gmra.mrb[252].mxu0 %v6050_v15 }
 0x23a   :  { %v3879_v29 = vmul.f32 0.2, %v3623_v25  ;;  %v3624_v30 = vadd.f32 %v6857_v27, %v2938_v26  ;;  %3149 = vmatmul.mubr.bf16.gmra.mrb[252].mxu1 %v6051_v17  ;;  %vm3751_vm8 = vcmp.ge.f32.partialorder %v3623_v25, 0.0 }
 0x23c   :  { %vm3752_vm9 = vcmp.ge.f32.partialorder %v3624_v30, 0.0  ;;  %v3880_v31 = vmul.f32 0.2, %v3624_v30  ;;  %v2397_v32 = vpop.f32.mrb[148].mxu0  ;;  %v4007_v35 = vsel %vm3751_vm8, %v3623_v25, %v3879_v29 }
 0x23d   :  { %v2942_v33 = vpop.f32.mrb[148].mxu1  ;;  %v2399_v34 = vpop.f32.mrb[149].mxu0 }
 0x23e   :  { %v4008_v36 = vsel %vm3752_vm9, %v3624_v30, %v3880_v31  ;;  %v2943_v37 = vadd.f32 %v2942_v33, %v2397_v32  ;;  %v2944_v38 = vpop.f32.mrb[149].mxu1  ;;  %v2400_v39 = vpop.f32.mrb[150].mxu0 }
 0x23f   :  { %v5435_v40 = vpack.c.bf16 %v4008_v36, %v4007_v35  ;;  %v2945_v41 = vpop.f32.mrb[150].mxu1  ;;  %v2402_v42 = vpop.f32.mrb[151].mxu0 }
 0x240   :  { %v3625_v27 = vadd.f32 %v7167_v43, %v2943_v37  ;;  %v2946_v44 = vadd.f32 %v2945_v41, %v2400_v39  ;;  %v2947_v45 = vpop.f32.mrb[151].mxu1 }
 0x241   :  { %5607 = vst [vmem:[%s7311_s3 + $0x120] sm:$0xff] %v5435_v40  }
 0x242   :  { %v3881_v46 = vmul.f32 0.2, %v3625_v27  ;;  %v3626_v47 = vadd.f32 %v7167_v43, %v2946_v44  ;;  %vm3753_vm10 = vcmp.ge.f32.partialorder %v3625_v27, 0.0 }
 0x244   :  { %vm3754_vm11 = vcmp.ge.f32.partialorder %v3626_v47, 0.0  ;;  %v3882_v48 = vmul.f32 0.2, %v3626_v47  ;;  %v2405_v49 = vpop.f32.mrb[152].mxu0  ;;  %v4009_v52 = vsel %vm3753_vm10, %v3625_v27, %v3881_v46 }
 0x245   :  { %v2950_v50 = vpop.f32.mrb[152].mxu1  ;;  %v2407_v51 = vpop.f32.mrb[153].mxu0 }
 0x246   :  { %v4010_v53 = vsel %vm3754_vm11, %v3626_v47, %v3882_v48  ;;  %v2951_v54 = vadd.f32 %v2950_v50, %v2405_v49  ;;  %v2952_v55 = vpop.f32.mrb[153].mxu1  ;;  %v2408_v56 = vpop.f32.mrb[154].mxu0 }
 0x247   :  { %v5440_v57 = vpack.c.bf16 %v4010_v53, %v4009_v52  ;;  %v2953_v58 = vpop.f32.mrb[154].mxu1  ;;  %v2410_v59 = vpop.f32.mrb[155].mxu0 }
 0x248   :  { %v3627_v60 = vadd.f32 %v7167_v43, %v2951_v54  ;;  %v2954_v61 = vadd.f32 %v2953_v58, %v2408_v56  ;;  %v2955_v62 = vpop.f32.mrb[155].mxu1 }
 0x249   :  { %5608 = vst [vmem:[%s7311_s3 + $0x128] sm:$0xff] %v5440_v57  }
 0x24a   :  { %v3883_v63 = vmul.f32 0.2, %v3627_v60  ;;  %v3628_v0 = vadd.f32 %v7167_v43, %v2954_v61  ;;  %vm3755_vm12 = vcmp.ge.f32.partialorder %v3627_v60, 0.0 }
 0x24c   :  { %vm3756_vm13 = vcmp.ge.f32.partialorder %v3628_v0, 0.0  ;;  %v3884_v1 = vmul.f32 0.2, %v3628_v0  ;;  %v2413_v2 = vpop.f32.mrb[156].mxu0  ;;  %v4011_v5 = vsel %vm3755_vm12, %v3627_v60, %v3883_v63 }
 0x24d   :  { %v2958_v3 = vpop.f32.mrb[156].mxu1  ;;  %v2415_v4 = vpop.f32.mrb[157].mxu0 }
 0x24e   :  { %v4012_v6 = vsel %vm3756_vm13, %v3628_v0, %v3884_v1  ;;  %v2959_v7 = vadd.f32 %v2958_v3, %v2413_v2  ;;  %v2960_v8 = vpop.f32.mrb[157].mxu1  ;;  %v2416_v9 = vpop.f32.mrb[158].mxu0 }
 0x24f   :  { %v5445_v10 = vpack.c.bf16 %v4012_v6, %v4011_v5  ;;  %v2961_v11 = vpop.f32.mrb[158].mxu1  ;;  %v2418_v12 = vpop.f32.mrb[159].mxu0 }
 0x250   :  { %v3629_v13 = vadd.f32 %v7167_v43, %v2959_v7  ;;  %v2962_v14 = vadd.f32 %v2961_v11, %v2416_v9  ;;  %v2963_v15 = vpop.f32.mrb[159].mxu1 }
 0x251   :  { %5609 = vst [vmem:[%s7311_s3 + $0x130] sm:$0xff] %v5445_v10  }
 0x252   :  { %v3885_v16 = vmul.f32 0.2, %v3629_v13  ;;  %v3630_v18 = vadd.f32 %v7167_v43, %v2962_v14  ;;  %vm3757_vm14 = vcmp.ge.f32.partialorder %v3629_v13, 0.0 }
 0x254   :  { %vm3758_vm15 = vcmp.ge.f32.partialorder %v3630_v18, 0.0  ;;  %v3886_v19 = vmul.f32 0.2, %v3630_v18  ;;  %v2421_v20 = vpop.f32.mrb[160].mxu0  ;;  %v4013_v22 = vsel %vm3757_vm14, %v3629_v13, %v3885_v16 }
 0x255   :  { %v2966_v21 = vpop.f32.mrb[160].mxu1  ;;  %v2423_v17 = vpop.f32.mrb[161].mxu0 }
 0x256   :  { %v4014_v23 = vsel %vm3758_vm15, %v3630_v18, %v3886_v19  ;;  %v2967_v24 = vadd.f32 %v2966_v21, %v2421_v20  ;;  %v2968_v25 = vpop.f32.mrb[161].mxu1  ;;  %v2424_v26 = vpop.f32.mrb[162].mxu0 }
 0x257   :  { %v5450_v28 = vpack.c.bf16 %v4014_v23, %v4013_v22  ;;  %v2969_v29 = vpop.f32.mrb[162].mxu1  ;;  %v2426_v30 = vpop.f32.mrb[163].mxu0 }
 0x258   :  { %v3631_v31 = vadd.f32 %v7167_v43, %v2967_v24  ;;  %v2970_v32 = vadd.f32 %v2969_v29, %v2424_v26  ;;  %v2971_v33 = vpop.f32.mrb[163].mxu1 }
 0x259   :  { %5610 = vst [vmem:[%s7311_s3 + $0x138] sm:$0xff] %v5450_v28  }
 0x25a   :  { %v3887_v34 = vmul.f32 0.2, %v3631_v31  ;;  %v3632_v35 = vadd.f32 %v7167_v43, %v2970_v32  ;;  %vm3759_vm0 = vcmp.ge.f32.partialorder %v3631_v31, 0.0 }
 0x25c   :  { %vm3760_vm1 = vcmp.ge.f32.partialorder %v3632_v35, 0.0  ;;  %v3888_v36 = vmul.f32 0.2, %v3632_v35  ;;  %v2429_v37 = vpop.f32.mrb[164].mxu0  ;;  %v4015_v40 = vsel %vm3759_vm0, %v3631_v31, %v3887_v34 }
 0x25d   :  { %v2974_v38 = vpop.f32.mrb[164].mxu1  ;;  %v2431_v39 = vpop.f32.mrb[165].mxu0 }
 0x25e   :  { %v4016_v41 = vsel %vm3760_vm1, %v3632_v35, %v3888_v36  ;;  %v2975_v42 = vadd.f32 %v2974_v38, %v2429_v37  ;;  %v2976_v27 = vpop.f32.mrb[165].mxu1  ;;  %v2432_v44 = vpop.f32.mrb[166].mxu0 }
 0x25f   :  { %v5455_v45 = vpack.c.bf16 %v4016_v41, %v4015_v40  ;;  %v2977_v46 = vpop.f32.mrb[166].mxu1  ;;  %v2434_v47 = vpop.f32.mrb[167].mxu0 }
 0x260   :  { %v3633_v48 = vadd.f32 %v7167_v43, %v2975_v42  ;;  %v2978_v49 = vadd.f32 %v2977_v46, %v2432_v44  ;;  %v2979_v50 = vpop.f32.mrb[167].mxu1 }
 0x261   :  { %5611 = vst [vmem:[%s7311_s3 + $0x140] sm:$0xff] %v5455_v45  }
 0x262   :  { %v3889_v51 = vmul.f32 0.2, %v3633_v48  ;;  %v3634_v52 = vadd.f32 %v7167_v43, %v2978_v49  ;;  %vm3761_vm2 = vcmp.ge.f32.partialorder %v3633_v48, 0.0 }
 0x264   :  { %vm3762_vm3 = vcmp.ge.f32.partialorder %v3634_v52, 0.0  ;;  %v3890_v53 = vmul.f32 0.2, %v3634_v52  ;;  %v2437_v54 = vpop.f32.mrb[168].mxu0  ;;  %v4017_v57 = vsel %vm3761_vm2, %v3633_v48, %v3889_v51 }
 0x265   :  { %v2982_v55 = vpop.f32.mrb[168].mxu1  ;;  %v2439_v56 = vpop.f32.mrb[169].mxu0 }
 0x266   :  { %v4018_v58 = vsel %vm3762_vm3, %v3634_v52, %v3890_v53  ;;  %v2983_v59 = vadd.f32 %v2982_v55, %v2437_v54  ;;  %v2984_v60 = vpop.f32.mrb[169].mxu1  ;;  %v2440_v61 = vpop.f32.mrb[170].mxu0 }
 0x267   :  { %v5460_v62 = vpack.c.bf16 %v4018_v58, %v4017_v57  ;;  %v2985_v63 = vpop.f32.mrb[170].mxu1  ;;  %v2442_v0 = vpop.f32.mrb[171].mxu0 }
 0x268   :  { %v3635_v1 = vadd.f32 %v7167_v43, %v2983_v59  ;;  %v2986_v2 = vadd.f32 %v2985_v63, %v2440_v61  ;;  %v2987_v3 = vpop.f32.mrb[171].mxu1 }
 0x269   :  { %5612 = vst [vmem:[%s7311_s3 + $0x148] sm:$0xff] %v5460_v62  }
 0x26a   :  { %v3891_v4 = vmul.f32 0.2, %v3635_v1  ;;  %v3636_v5 = vadd.f32 %v7167_v43, %v2986_v2  ;;  %vm3763_vm4 = vcmp.ge.f32.partialorder %v3635_v1, 0.0 }
 0x26c   :  { %vm3764_vm5 = vcmp.ge.f32.partialorder %v3636_v5, 0.0  ;;  %v3892_v6 = vmul.f32 0.2, %v3636_v5  ;;  %v2445_v7 = vpop.f32.mrb[172].mxu0  ;;  %v4019_v10 = vsel %vm3763_vm4, %v3635_v1, %v3891_v4 }
 0x26d   :  { %v2990_v8 = vpop.f32.mrb[172].mxu1  ;;  %v2447_v9 = vpop.f32.mrb[173].mxu0 }
 0x26e   :  { %v4020_v11 = vsel %vm3764_vm5, %v3636_v5, %v3892_v6  ;;  %v2991_v12 = vadd.f32 %v2990_v8, %v2445_v7  ;;  %v2992_v13 = vpop.f32.mrb[173].mxu1  ;;  %v2448_v14 = vpop.f32.mrb[174].mxu0 }
 0x26f   :  { %v5465_v15 = vpack.c.bf16 %v4020_v11, %v4019_v10  ;;  %v2993_v16 = vpop.f32.mrb[174].mxu1  ;;  %v2450_v18 = vpop.f32.mrb[175].mxu0 }
 0x270   :  { %v3637_v19 = vadd.f32 %v7167_v43, %v2991_v12  ;;  %v2994_v20 = vadd.f32 %v2993_v16, %v2448_v14  ;;  %v2995_v21 = vpop.f32.mrb[175].mxu1 }
 0x271   :  { %5613 = vst [vmem:[%s7311_s3 + $0x150] sm:$0xff] %v5465_v15  }
 0x272   :  { %v3893_v17 = vmul.f32 0.2, %v3637_v19  ;;  %v3638_v22 = vadd.f32 %v7167_v43, %v2994_v20  ;;  %vm3765_vm6 = vcmp.ge.f32.partialorder %v3637_v19, 0.0 }
 0x274   :  { %vm3766_vm7 = vcmp.ge.f32.partialorder %v3638_v22, 0.0  ;;  %v3894_v23 = vmul.f32 0.2, %v3638_v22  ;;  %v2453_v24 = vpop.f32.mrb[176].mxu0  ;;  %v4021_v28 = vsel %vm3765_vm6, %v3637_v19, %v3893_v17 }
 0x275   :  { %v2998_v25 = vpop.f32.mrb[176].mxu1  ;;  %v2455_v26 = vpop.f32.mrb[177].mxu0 }
 0x276   :  { %v4022_v29 = vsel %vm3766_vm7, %v3638_v22, %v3894_v23  ;;  %v2999_v30 = vadd.f32 %v2998_v25, %v2453_v24  ;;  %v3000_v31 = vpop.f32.mrb[177].mxu1  ;;  %v2456_v32 = vpop.f32.mrb[178].mxu0 }
 0x277   :  { %v5470_v33 = vpack.c.bf16 %v4022_v29, %v4021_v28  ;;  %v3001_v34 = vpop.f32.mrb[178].mxu1  ;;  %v2458_v35 = vpop.f32.mrb[179].mxu0 }
 0x278   :  { %v3639_v36 = vadd.f32 %v7167_v43, %v2999_v30  ;;  %v3002_v37 = vadd.f32 %v3001_v34, %v2456_v32  ;;  %v3003_v38 = vpop.f32.mrb[179].mxu1 }
 0x279   :  { %5614 = vst [vmem:[%s7311_s3 + $0x158] sm:$0xff] %v5470_v33  }
 0x27a   :  { %v3895_v39 = vmul.f32 0.2, %v3639_v36  ;;  %v3640_v40 = vadd.f32 %v7167_v43, %v3002_v37  ;;  %vm3767_vm8 = vcmp.ge.f32.partialorder %v3639_v36, 0.0 }
 0x27c   :  { %vm3768_vm9 = vcmp.ge.f32.partialorder %v3640_v40, 0.0  ;;  %v3896_v41 = vmul.f32 0.2, %v3640_v40  ;;  %v2461_v42 = vpop.f32.mrb[180].mxu0  ;;  %v4023_v45 = vsel %vm3767_vm8, %v3639_v36, %v3895_v39 }
 0x27d   :  { %v3006_v27 = vpop.f32.mrb[180].mxu1  ;;  %v2463_v44 = vpop.f32.mrb[181].mxu0 }
 0x27e   :  { %v4024_v46 = vsel %vm3768_vm9, %v3640_v40, %v3896_v41  ;;  %v3007_v47 = vadd.f32 %v3006_v27, %v2461_v42  ;;  %v3008_v48 = vpop.f32.mrb[181].mxu1  ;;  %v2464_v49 = vpop.f32.mrb[182].mxu0 }
 0x27f   :  { %v5475_v50 = vpack.c.bf16 %v4024_v46, %v4023_v45  ;;  %v3009_v51 = vpop.f32.mrb[182].mxu1  ;;  %v2466_v52 = vpop.f32.mrb[183].mxu0 }
 0x280   :  { %v3641_v53 = vadd.f32 %v7167_v43, %v3007_v47  ;;  %v3010_v54 = vadd.f32 %v3009_v51, %v2464_v49  ;;  %v3011_v55 = vpop.f32.mrb[183].mxu1 }
 0x281   :  { %5615 = vst [vmem:[%s7311_s3 + $0x160] sm:$0xff] %v5475_v50  }
 0x282   :  { %v3897_v56 = vmul.f32 0.2, %v3641_v53  ;;  %v3642_v57 = vadd.f32 %v7167_v43, %v3010_v54  ;;  %vm3769_vm10 = vcmp.ge.f32.partialorder %v3641_v53, 0.0 }
 0x284   :  { %vm3770_vm11 = vcmp.ge.f32.partialorder %v3642_v57, 0.0  ;;  %v3898_v58 = vmul.f32 0.2, %v3642_v57  ;;  %v2469_v59 = vpop.f32.mrb[184].mxu0  ;;  %v4025_v62 = vsel %vm3769_vm10, %v3641_v53, %v3897_v56 }
 0x285   :  { %v3014_v60 = vpop.f32.mrb[184].mxu1  ;;  %v2471_v61 = vpop.f32.mrb[185].mxu0 }
 0x286   :  { %v4026_v63 = vsel %vm3770_vm11, %v3642_v57, %v3898_v58  ;;  %v3015_v0 = vadd.f32 %v3014_v60, %v2469_v59  ;;  %v3016_v1 = vpop.f32.mrb[185].mxu1  ;;  %v2472_v2 = vpop.f32.mrb[186].mxu0 }
 0x287   :  { %v5480_v3 = vpack.c.bf16 %v4026_v63, %v4025_v62  ;;  %v3017_v4 = vpop.f32.mrb[186].mxu1  ;;  %v2474_v5 = vpop.f32.mrb[187].mxu0 }
 0x288   :  { %v3643_v6 = vadd.f32 %v7167_v43, %v3015_v0  ;;  %v3018_v7 = vadd.f32 %v3017_v4, %v2472_v2  ;;  %v3019_v8 = vpop.f32.mrb[187].mxu1 }
 0x289   :  { %5616 = vst [vmem:[%s7311_s3 + $0x168] sm:$0xff] %v5480_v3  }
 0x28a   :  { %v3899_v9 = vmul.f32 0.2, %v3643_v6  ;;  %v3644_v10 = vadd.f32 %v7167_v43, %v3018_v7  ;;  %vm3771_vm12 = vcmp.ge.f32.partialorder %v3643_v6, 0.0 }
 0x28c   :  { %vm3772_vm13 = vcmp.ge.f32.partialorder %v3644_v10, 0.0  ;;  %v3900_v11 = vmul.f32 0.2, %v3644_v10  ;;  %v2477_v12 = vpop.f32.mrb[188].mxu0  ;;  %v4027_v15 = vsel %vm3771_vm12, %v3643_v6, %v3899_v9 }
 0x28d   :  { %v3022_v13 = vpop.f32.mrb[188].mxu1  ;;  %v2479_v14 = vpop.f32.mrb[189].mxu0 }
 0x28e   :  { %v4028_v16 = vsel %vm3772_vm13, %v3644_v10, %v3900_v11  ;;  %v3023_v18 = vadd.f32 %v3022_v13, %v2477_v12  ;;  %v3024_v19 = vpop.f32.mrb[189].mxu1  ;;  %v2480_v20 = vpop.f32.mrb[190].mxu0 }
 0x28f   :  { %v5485_v21 = vpack.c.bf16 %v4028_v16, %v4027_v15  ;;  %v3025_v17 = vpop.f32.mrb[190].mxu1  ;;  %v2482_v22 = vpop.f32.mrb[191].mxu0 }
 0x290   :  { %v3645_v23 = vadd.f32 %v7167_v43, %v3023_v18  ;;  %v3026_v24 = vadd.f32 %v3025_v17, %v2480_v20  ;;  %v3027_v25 = vpop.f32.mrb[191].mxu1 }
 0x291   :  { %5617 = vst [vmem:[%s7311_s3 + $0x170] sm:$0xff] %v5485_v21  }
 0x292   :  { %v3901_v26 = vmul.f32 0.2, %v3645_v23  ;;  %v3646_v28 = vadd.f32 %v7167_v43, %v3026_v24  ;;  %vm3773_vm14 = vcmp.ge.f32.partialorder %v3645_v23, 0.0 }
 0x294   :  { %vm3774_vm15 = vcmp.ge.f32.partialorder %v3646_v28, 0.0  ;;  %v3902_v29 = vmul.f32 0.2, %v3646_v28  ;;  %v2485_v30 = vpop.f32.mrb[192].mxu0  ;;  %v4029_v33 = vsel %vm3773_vm14, %v3645_v23, %v3901_v26 }
 0x295   :  { %v3030_v31 = vpop.f32.mrb[192].mxu1  ;;  %v2487_v32 = vpop.f32.mrb[193].mxu0 }
 0x296   :  { %v4030_v34 = vsel %vm3774_vm15, %v3646_v28, %v3902_v29  ;;  %v3031_v35 = vadd.f32 %v3030_v31, %v2485_v30  ;;  %v3032_v36 = vpop.f32.mrb[193].mxu1  ;;  %v2488_v37 = vpop.f32.mrb[194].mxu0 }
 0x297   :  { %v5490_v38 = vpack.c.bf16 %v4030_v34, %v4029_v33  ;;  %v3033_v39 = vpop.f32.mrb[194].mxu1  ;;  %v2490_v40 = vpop.f32.mrb[195].mxu0 }
 0x298   :  { %v3647_v41 = vadd.f32 %v7167_v43, %v3031_v35  ;;  %v3034_v42 = vadd.f32 %v3033_v39, %v2488_v37  ;;  %v3035_v27 = vpop.f32.mrb[195].mxu1 }
 0x299   :  { %5618 = vst [vmem:[%s7311_s3 + $0x178] sm:$0xff] %v5490_v38  }
 0x29a   :  { %v3903_v44 = vmul.f32 0.2, %v3647_v41  ;;  %v3648_v45 = vadd.f32 %v7167_v43, %v3034_v42  ;;  %vm3775_vm0 = vcmp.ge.f32.partialorder %v3647_v41, 0.0 }
 0x29c   :  { %vm3776_vm1 = vcmp.ge.f32.partialorder %v3648_v45, 0.0  ;;  %v3904_v46 = vmul.f32 0.2, %v3648_v45  ;;  %v2493_v47 = vpop.f32.mrb[196].mxu0  ;;  %v4031_v50 = vsel %vm3775_vm0, %v3647_v41, %v3903_v44 }
 0x29d   :  { %v3038_v48 = vpop.f32.mrb[196].mxu1  ;;  %v2495_v49 = vpop.f32.mrb[197].mxu0 }
 0x29e   :  { %v4032_v51 = vsel %vm3776_vm1, %v3648_v45, %v3904_v46  ;;  %v3039_v52 = vadd.f32 %v3038_v48, %v2493_v47  ;;  %v3040_v53 = vpop.f32.mrb[197].mxu1  ;;  %v2496_v54 = vpop.f32.mrb[198].mxu0 }
 0x29f   :  { %v5495_v55 = vpack.c.bf16 %v4032_v51, %v4031_v50  ;;  %v3041_v56 = vpop.f32.mrb[198].mxu1  ;;  %v2498_v57 = vpop.f32.mrb[199].mxu0 }
 0x2a0   :  { %v3649_v58 = vadd.f32 %v7167_v43, %v3039_v52  ;;  %v3042_v59 = vadd.f32 %v3041_v56, %v2496_v54  ;;  %v3043_v60 = vpop.f32.mrb[199].mxu1 }
 0x2a1   :  { %5619 = vst [vmem:[%s7311_s3 + $0x180] sm:$0xff] %v5495_v55  }
 0x2a2   :  { %v3905_v61 = vmul.f32 0.2, %v3649_v58  ;;  %v3650_v62 = vadd.f32 %v7167_v43, %v3042_v59  ;;  %vm3777_vm2 = vcmp.ge.f32.partialorder %v3649_v58, 0.0 }
 0x2a4   :  { %vm3778_vm3 = vcmp.ge.f32.partialorder %v3650_v62, 0.0  ;;  %v3906_v63 = vmul.f32 0.2, %v3650_v62  ;;  %v2501_v0 = vpop.f32.mrb[200].mxu0  ;;  %v4033_v3 = vsel %vm3777_vm2, %v3649_v58, %v3905_v61 }
 0x2a5   :  { %v3046_v1 = vpop.f32.mrb[200].mxu1  ;;  %v2503_v2 = vpop.f32.mrb[201].mxu0 }
 0x2a6   :  { %v4034_v4 = vsel %vm3778_vm3, %v3650_v62, %v3906_v63  ;;  %v3047_v5 = vadd.f32 %v3046_v1, %v2501_v0  ;;  %v3048_v6 = vpop.f32.mrb[201].mxu1  ;;  %v2504_v7 = vpop.f32.mrb[202].mxu0 }
 0x2a7   :  { %v5500_v8 = vpack.c.bf16 %v4034_v4, %v4033_v3  ;;  %v3049_v9 = vpop.f32.mrb[202].mxu1  ;;  %v2506_v10 = vpop.f32.mrb[203].mxu0 }
 0x2a8   :  { %v3651_v11 = vadd.f32 %v7167_v43, %v3047_v5  ;;  %v3050_v12 = vadd.f32 %v3049_v9, %v2504_v7  ;;  %v3051_v13 = vpop.f32.mrb[203].mxu1 }
 0x2a9   :  { %5620 = vst [vmem:[%s7311_s3 + $0x188] sm:$0xff] %v5500_v8  }
 0x2aa   :  { %v3907_v14 = vmul.f32 0.2, %v3651_v11  ;;  %v3652_v15 = vadd.f32 %v7167_v43, %v3050_v12  ;;  %vm3779_vm4 = vcmp.ge.f32.partialorder %v3651_v11, 0.0 }
 0x2ac   :  { %vm3780_vm5 = vcmp.ge.f32.partialorder %v3652_v15, 0.0  ;;  %v3908_v16 = vmul.f32 0.2, %v3652_v15  ;;  %v2509_v18 = vpop.f32.mrb[204].mxu0  ;;  %v4035_v21 = vsel %vm3779_vm4, %v3651_v11, %v3907_v14 }
 0x2ad   :  { %v3054_v19 = vpop.f32.mrb[204].mxu1  ;;  %v2511_v20 = vpop.f32.mrb[205].mxu0 }
 0x2ae   :  { %v4036_v17 = vsel %vm3780_vm5, %v3652_v15, %v3908_v16  ;;  %v3055_v22 = vadd.f32 %v3054_v19, %v2509_v18  ;;  %v3056_v23 = vpop.f32.mrb[205].mxu1  ;;  %v2512_v24 = vpop.f32.mrb[206].mxu0 }
 0x2af   :  { %v5505_v25 = vpack.c.bf16 %v4036_v17, %v4035_v21  ;;  %v3057_v26 = vpop.f32.mrb[206].mxu1  ;;  %v2514_v28 = vpop.f32.mrb[207].mxu0 }
 0x2b0   :  { %v3653_v29 = vadd.f32 %v7167_v43, %v3055_v22  ;;  %v3058_v30 = vadd.f32 %v3057_v26, %v2512_v24  ;;  %v3059_v31 = vpop.f32.mrb[207].mxu1 }
 0x2b1   :  { %5621 = vst [vmem:[%s7311_s3 + $0x190] sm:$0xff] %v5505_v25  }
 0x2b2   :  { %v3909_v32 = vmul.f32 0.2, %v3653_v29  ;;  %v3654_v33 = vadd.f32 %v7167_v43, %v3058_v30  ;;  %vm3781_vm6 = vcmp.ge.f32.partialorder %v3653_v29, 0.0 }
 0x2b4   :  { %vm3782_vm7 = vcmp.ge.f32.partialorder %v3654_v33, 0.0  ;;  %v3910_v34 = vmul.f32 0.2, %v3654_v33  ;;  %v2517_v35 = vpop.f32.mrb[208].mxu0  ;;  %v4037_v38 = vsel %vm3781_vm6, %v3653_v29, %v3909_v32 }
 0x2b5   :  { %v3062_v36 = vpop.f32.mrb[208].mxu1  ;;  %v2519_v37 = vpop.f32.mrb[209].mxu0 }
 0x2b6   :  { %v4038_v39 = vsel %vm3782_vm7, %v3654_v33, %v3910_v34  ;;  %v3063_v40 = vadd.f32 %v3062_v36, %v2517_v35  ;;  %v3064_v41 = vpop.f32.mrb[209].mxu1  ;;  %v2520_v42 = vpop.f32.mrb[210].mxu0 }
 0x2b7   :  { %v5510_v27 = vpack.c.bf16 %v4038_v39, %v4037_v38  ;;  %v3065_v44 = vpop.f32.mrb[210].mxu1  ;;  %v2522_v45 = vpop.f32.mrb[211].mxu0 }
 0x2b8   :  { %v3655_v46 = vadd.f32 %v7167_v43, %v3063_v40  ;;  %v3066_v47 = vadd.f32 %v3065_v44, %v2520_v42  ;;  %v3067_v48 = vpop.f32.mrb[211].mxu1 }
 0x2b9   :  { %5622 = vst [vmem:[%s7311_s3 + $0x198] sm:$0xff] %v5510_v27  }
 0x2ba   :  { %v3911_v49 = vmul.f32 0.2, %v3655_v46  ;;  %v3656_v50 = vadd.f32 %v7167_v43, %v3066_v47  ;;  %vm3783_vm8 = vcmp.ge.f32.partialorder %v3655_v46, 0.0 }
 0x2bc   :  { %vm3784_vm9 = vcmp.ge.f32.partialorder %v3656_v50, 0.0  ;;  %v3912_v51 = vmul.f32 0.2, %v3656_v50  ;;  %v2525_v52 = vpop.f32.mrb[212].mxu0  ;;  %v4039_v55 = vsel %vm3783_vm8, %v3655_v46, %v3911_v49 }
 0x2bd   :  { %v3070_v53 = vpop.f32.mrb[212].mxu1  ;;  %v2527_v54 = vpop.f32.mrb[213].mxu0 }
 0x2be   :  { %v4040_v56 = vsel %vm3784_vm9, %v3656_v50, %v3912_v51  ;;  %v3071_v57 = vadd.f32 %v3070_v53, %v2525_v52  ;;  %v3072_v58 = vpop.f32.mrb[213].mxu1  ;;  %v2528_v59 = vpop.f32.mrb[214].mxu0 }
 0x2bf   :  { %v5515_v60 = vpack.c.bf16 %v4040_v56, %v4039_v55  ;;  %v3073_v61 = vpop.f32.mrb[214].mxu1  ;;  %v2530_v62 = vpop.f32.mrb[215].mxu0 }
 0x2c0   :  { %v3657_v63 = vadd.f32 %v7167_v43, %v3071_v57  ;;  %v3074_v0 = vadd.f32 %v3073_v61, %v2528_v59  ;;  %v3075_v1 = vpop.f32.mrb[215].mxu1 }
 0x2c1   :  { %5623 = vst [vmem:[%s7311_s3 + $0x1a0] sm:$0xff] %v5515_v60  }
 0x2c2   :  { %v3913_v2 = vmul.f32 0.2, %v3657_v63  ;;  %v3658_v3 = vadd.f32 %v7167_v43, %v3074_v0  ;;  %vm3785_vm10 = vcmp.ge.f32.partialorder %v3657_v63, 0.0 }
 0x2c4   :  { %vm3786_vm11 = vcmp.ge.f32.partialorder %v3658_v3, 0.0  ;;  %v3914_v4 = vmul.f32 0.2, %v3658_v3  ;;  %v2533_v5 = vpop.f32.mrb[216].mxu0  ;;  %v4041_v8 = vsel %vm3785_vm10, %v3657_v63, %v3913_v2 }
 0x2c5   :  { %v3078_v6 = vpop.f32.mrb[216].mxu1  ;;  %v2535_v7 = vpop.f32.mrb[217].mxu0 }
 0x2c6   :  { %v4042_v9 = vsel %vm3786_vm11, %v3658_v3, %v3914_v4  ;;  %v3079_v10 = vadd.f32 %v3078_v6, %v2533_v5  ;;  %v3080_v11 = vpop.f32.mrb[217].mxu1  ;;  %v2536_v12 = vpop.f32.mrb[218].mxu0 }
 0x2c7   :  { %v5520_v13 = vpack.c.bf16 %v4042_v9, %v4041_v8  ;;  %v3081_v14 = vpop.f32.mrb[218].mxu1  ;;  %v2538_v15 = vpop.f32.mrb[219].mxu0 }
 0x2c8   :  { %v3659_v16 = vadd.f32 %v7167_v43, %v3079_v10  ;;  %v3082_v18 = vadd.f32 %v3081_v14, %v2536_v12  ;;  %v3083_v19 = vpop.f32.mrb[219].mxu1 }
 0x2c9   :  { %5624 = vst [vmem:[%s7311_s3 + $0x1a8] sm:$0xff] %v5520_v13  }
 0x2ca   :  { %v3915_v20 = vmul.f32 0.2, %v3659_v16  ;;  %v3660_v21 = vadd.f32 %v7167_v43, %v3082_v18  ;;  %vm3787_vm12 = vcmp.ge.f32.partialorder %v3659_v16, 0.0 }
 0x2cc   :  { %vm3788_vm13 = vcmp.ge.f32.partialorder %v3660_v21, 0.0  ;;  %v3916_v17 = vmul.f32 0.2, %v3660_v21  ;;  %v2541_v22 = vpop.f32.mrb[220].mxu0  ;;  %v4043_v25 = vsel %vm3787_vm12, %v3659_v16, %v3915_v20 }
 0x2cd   :  { %v3086_v23 = vpop.f32.mrb[220].mxu1  ;;  %v2543_v24 = vpop.f32.mrb[221].mxu0 }
 0x2ce   :  { %v4044_v26 = vsel %vm3788_vm13, %v3660_v21, %v3916_v17  ;;  %v3087_v28 = vadd.f32 %v3086_v23, %v2541_v22  ;;  %v3088_v29 = vpop.f32.mrb[221].mxu1  ;;  %v2544_v30 = vpop.f32.mrb[222].mxu0 }
 0x2cf   :  { %v5525_v31 = vpack.c.bf16 %v4044_v26, %v4043_v25  ;;  %v3089_v32 = vpop.f32.mrb[222].mxu1  ;;  %v2546_v33 = vpop.f32.mrb[223].mxu0 }
 0x2d0   :  { %v3661_v34 = vadd.f32 %v7167_v43, %v3087_v28  ;;  %v3090_v35 = vadd.f32 %v3089_v32, %v2544_v30  ;;  %v3091_v36 = vpop.f32.mrb[223].mxu1 }
 0x2d1   :  { %5625 = vst [vmem:[%s7311_s3 + $0x1b0] sm:$0xff] %v5525_v31  }
 0x2d2   :  { %v3917_v37 = vmul.f32 0.2, %v3661_v34  ;;  %v3662_v38 = vadd.f32 %v7167_v43, %v3090_v35  ;;  %vm3789_vm14 = vcmp.ge.f32.partialorder %v3661_v34, 0.0 }
 0x2d4   :  { %vm3790_vm15 = vcmp.ge.f32.partialorder %v3662_v38, 0.0  ;;  %v3918_v39 = vmul.f32 0.2, %v3662_v38  ;;  %v2549_v40 = vpop.f32.mrb[224].mxu0  ;;  %v4045_v27 = vsel %vm3789_vm14, %v3661_v34, %v3917_v37 }
 0x2d5   :  { %v3094_v41 = vpop.f32.mrb[224].mxu1  ;;  %v2551_v42 = vpop.f32.mrb[225].mxu0 }
 0x2d6   :  { %v4046_v44 = vsel %vm3790_vm15, %v3662_v38, %v3918_v39  ;;  %v3095_v45 = vadd.f32 %v3094_v41, %v2549_v40  ;;  %v3096_v46 = vpop.f32.mrb[225].mxu1  ;;  %v2552_v47 = vpop.f32.mrb[226].mxu0 }
 0x2d7   :  { %v5530_v48 = vpack.c.bf16 %v4046_v44, %v4045_v27  ;;  %v3097_v49 = vpop.f32.mrb[226].mxu1  ;;  %v2554_v50 = vpop.f32.mrb[227].mxu0 }
 0x2d8   :  { %v3663_v51 = vadd.f32 %v7167_v43, %v3095_v45  ;;  %v3098_v52 = vadd.f32 %v3097_v49, %v2552_v47  ;;  %v3099_v53 = vpop.f32.mrb[227].mxu1 }
 0x2d9   :  { %5626 = vst [vmem:[%s7311_s3 + $0x1b8] sm:$0xff] %v5530_v48  }
 0x2da   :  { %v3919_v54 = vmul.f32 0.2, %v3663_v51  ;;  %v3664_v55 = vadd.f32 %v7167_v43, %v3098_v52  ;;  %vm3791_vm0 = vcmp.ge.f32.partialorder %v3663_v51, 0.0 }
 0x2dc   :  { %vm3792_vm1 = vcmp.ge.f32.partialorder %v3664_v55, 0.0  ;;  %v3920_v56 = vmul.f32 0.2, %v3664_v55  ;;  %v2557_v57 = vpop.f32.mrb[228].mxu0  ;;  %v4047_v60 = vsel %vm3791_vm0, %v3663_v51, %v3919_v54 }
 0x2dd   :  { %v3102_v58 = vpop.f32.mrb[228].mxu1  ;;  %v2559_v59 = vpop.f32.mrb[229].mxu0 }
 0x2de   :  { %v4048_v61 = vsel %vm3792_vm1, %v3664_v55, %v3920_v56  ;;  %v3103_v62 = vadd.f32 %v3102_v58, %v2557_v57  ;;  %v3104_v63 = vpop.f32.mrb[229].mxu1  ;;  %v2560_v0 = vpop.f32.mrb[230].mxu0 }
 0x2df   :  { %v5535_v1 = vpack.c.bf16 %v4048_v61, %v4047_v60  ;;  %v3105_v2 = vpop.f32.mrb[230].mxu1  ;;  %v2562_v3 = vpop.f32.mrb[231].mxu0 }
 0x2e0   :  { %v3665_v4 = vadd.f32 %v7167_v43, %v3103_v62  ;;  %v3106_v5 = vadd.f32 %v3105_v2, %v2560_v0  ;;  %v3107_v6 = vpop.f32.mrb[231].mxu1 }
 0x2e1   :  { %5627 = vst [vmem:[%s7311_s3 + $0x1c0] sm:$0xff] %v5535_v1  }
 0x2e2   :  { %v3921_v7 = vmul.f32 0.2, %v3665_v4  ;;  %v3666_v8 = vadd.f32 %v7167_v43, %v3106_v5  ;;  %vm3793_vm2 = vcmp.ge.f32.partialorder %v3665_v4, 0.0 }
 0x2e4   :  { %vm3794_vm3 = vcmp.ge.f32.partialorder %v3666_v8, 0.0  ;;  %v3922_v9 = vmul.f32 0.2, %v3666_v8  ;;  %v2565_v10 = vpop.f32.mrb[232].mxu0  ;;  %v4049_v13 = vsel %vm3793_vm2, %v3665_v4, %v3921_v7 }
 0x2e5   :  { %v3110_v11 = vpop.f32.mrb[232].mxu1  ;;  %v2567_v12 = vpop.f32.mrb[233].mxu0 }
 0x2e6   :  { %v4050_v14 = vsel %vm3794_vm3, %v3666_v8, %v3922_v9  ;;  %v3111_v15 = vadd.f32 %v3110_v11, %v2565_v10  ;;  %v3112_v16 = vpop.f32.mrb[233].mxu1  ;;  %v2568_v18 = vpop.f32.mrb[234].mxu0 }
 0x2e7   :  { %v5540_v19 = vpack.c.bf16 %v4050_v14, %v4049_v13  ;;  %v3113_v20 = vpop.f32.mrb[234].mxu1  ;;  %v2570_v21 = vpop.f32.mrb[235].mxu0 }
 0x2e8   :  { %v3667_v17 = vadd.f32 %v7167_v43, %v3111_v15  ;;  %v3114_v22 = vadd.f32 %v3113_v20, %v2568_v18  ;;  %v3115_v23 = vpop.f32.mrb[235].mxu1 }
 0x2e9   :  { %5628 = vst [vmem:[%s7311_s3 + $0x1c8] sm:$0xff] %v5540_v19  }
 0x2ea   :  { %v3923_v24 = vmul.f32 0.2, %v3667_v17  ;;  %v3668_v25 = vadd.f32 %v7167_v43, %v3114_v22  ;;  %vm3795_vm4 = vcmp.ge.f32.partialorder %v3667_v17, 0.0 }
 0x2ec   :  { %vm3796_vm5 = vcmp.ge.f32.partialorder %v3668_v25, 0.0  ;;  %v3924_v26 = vmul.f32 0.2, %v3668_v25  ;;  %v2573_v28 = vpop.f32.mrb[236].mxu0  ;;  %v4051_v31 = vsel %vm3795_vm4, %v3667_v17, %v3923_v24 }
 0x2ed   :  { %v3118_v29 = vpop.f32.mrb[236].mxu1  ;;  %v2575_v30 = vpop.f32.mrb[237].mxu0 }
 0x2ee   :  { %v4052_v32 = vsel %vm3796_vm5, %v3668_v25, %v3924_v26  ;;  %v3119_v33 = vadd.f32 %v3118_v29, %v2573_v28  ;;  %v3120_v34 = vpop.f32.mrb[237].mxu1  ;;  %v2576_v35 = vpop.f32.mrb[238].mxu0 }
 0x2ef   :  { %v5545_v36 = vpack.c.bf16 %v4052_v32, %v4051_v31  ;;  %v3121_v37 = vpop.f32.mrb[238].mxu1  ;;  %v2578_v38 = vpop.f32.mrb[239].mxu0 }
 0x2f0   :  { %v3669_v39 = vadd.f32 %v7167_v43, %v3119_v33  ;;  %v3122_v40 = vadd.f32 %v3121_v37, %v2576_v35  ;;  %v3123_v41 = vpop.f32.mrb[239].mxu1 }
 0x2f1   :  { %5629 = vst [vmem:[%s7311_s3 + $0x1d0] sm:$0xff] %v5545_v36  }
 0x2f2   :  { %v3925_v42 = vmul.f32 0.2, %v3669_v39  ;;  %v3670_v27 = vadd.f32 %v7167_v43, %v3122_v40  ;;  %vm3797_vm6 = vcmp.ge.f32.partialorder %v3669_v39, 0.0 }
 0x2f4   :  { %vm3798_vm7 = vcmp.ge.f32.partialorder %v3670_v27, 0.0  ;;  %v3926_v44 = vmul.f32 0.2, %v3670_v27  ;;  %v2581_v45 = vpop.f32.mrb[240].mxu0  ;;  %v4053_v48 = vsel %vm3797_vm6, %v3669_v39, %v3925_v42 }
 0x2f5   :  { %v3126_v46 = vpop.f32.mrb[240].mxu1  ;;  %v2583_v47 = vpop.f32.mrb[241].mxu0 }
 0x2f6   :  { %v4054_v49 = vsel %vm3798_vm7, %v3670_v27, %v3926_v44  ;;  %v3127_v50 = vadd.f32 %v3126_v46, %v2581_v45  ;;  %v3128_v51 = vpop.f32.mrb[241].mxu1  ;;  %v2584_v52 = vpop.f32.mrb[242].mxu0  ;;  %v6054_v44 = vld [vmem:[%s7310_s2] ss:$0 sm:$0xff] }
 0x2f7   :  { %v5550_v53 = vpack.c.bf16 %v4054_v49, %v4053_v48  ;;  %v3129_v54 = vpop.f32.mrb[242].mxu1  ;;  %v2586_v55 = vpop.f32.mrb[243].mxu0 }
 0x2f8   :  { %v3671_v56 = vadd.f32 %v7167_v43, %v3127_v50  ;;  %v3130_v57 = vadd.f32 %v3129_v54, %v2584_v52  ;;  %v3131_v58 = vpop.f32.mrb[243].mxu1 }
 0x2f9   :  { %5630 = vst [vmem:[%s7311_s3 + $0x1d8] sm:$0xff] %v5550_v53  }
 0x2fa   :  { %v3927_v59 = vmul.f32 0.2, %v3671_v56  ;;  %v3672_v60 = vadd.f32 %v7167_v43, %v3130_v57  ;;  %vm3799_vm8 = vcmp.ge.f32.partialorder %v3671_v56, 0.0 }
 0x2fc   :  { %vm3800_vm9 = vcmp.ge.f32.partialorder %v3672_v60, 0.0  ;;  %v3928_v61 = vmul.f32 0.2, %v3672_v60  ;;  %v2589_v62 = vpop.f32.mrb[244].mxu0  ;;  %v4055_v1 = vsel %vm3799_vm8, %v3671_v56, %v3927_v59 }
 0x2fd   :  { %v3134_v63 = vpop.f32.mrb[244].mxu1  ;;  %v2591_v0 = vpop.f32.mrb[245].mxu0 }
 0x2fe   :  { %v4056_v2 = vsel %vm3800_vm9, %v3672_v60, %v3928_v61  ;;  %v3135_v3 = vadd.f32 %v3134_v63, %v2589_v62  ;;  %v3136_v4 = vpop.f32.mrb[245].mxu1  ;;  %v2592_v5 = vpop.f32.mrb[246].mxu0 }
 0x2ff   :  { %v5555_v6 = vpack.c.bf16 %v4056_v2, %v4055_v1  ;;  %v3137_v7 = vpop.f32.mrb[246].mxu1  ;;  %v2594_v8 = vpop.f32.mrb[247].mxu0 }
 0x300   :  { %v3673_v9 = vadd.f32 %v7167_v43, %v3135_v3  ;;  %v3138_v10 = vadd.f32 %v3137_v7, %v2592_v5  ;;  %v3139_v11 = vpop.f32.mrb[247].mxu1 }
 0x301   :  { %5631 = vst [vmem:[%s7311_s3 + $0x1e0] sm:$0xff] %v5555_v6  }
 0x302   :  { %v3929_v12 = vmul.f32 0.2, %v3673_v9  ;;  %v3674_v13 = vadd.f32 %v7167_v43, %v3138_v10  ;;  %vm3801_vm10 = vcmp.ge.f32.partialorder %v3673_v9, 0.0 }
 0x304   :  { %vm3802_vm11 = vcmp.ge.f32.partialorder %v3674_v13, 0.0  ;;  %v3930_v14 = vmul.f32 0.2, %v3674_v13  ;;  %v2597_v15 = vpop.f32.mrb[248].mxu0  ;;  %v4057_v19 = vsel %vm3801_vm10, %v3673_v9, %v3929_v12 }
 0x305   :  { %v3142_v16 = vpop.f32.mrb[248].mxu1  ;;  %v2599_v18 = vpop.f32.mrb[249].mxu0 }
 0x306   :  { %v4058_v20 = vsel %vm3802_vm11, %v3674_v13, %v3930_v14  ;;  %v3143_v21 = vadd.f32 %v3142_v16, %v2597_v15  ;;  %v3144_v17 = vpop.f32.mrb[249].mxu1  ;;  %v2600_v22 = vpop.f32.mrb[250].mxu0 }
 0x307   :  { %v5560_v23 = vpack.c.bf16 %v4058_v20, %v4057_v19  ;;  %v3145_v24 = vpop.f32.mrb[250].mxu1  ;;  %v2602_v25 = vpop.f32.mrb[251].mxu0 }
 0x308   :  { %v3675_v26 = vadd.f32 %v7167_v43, %v3143_v21  ;;  %v3146_v28 = vadd.f32 %v3145_v24, %v2600_v22  ;;  %v3147_v29 = vpop.f32.mrb[251].mxu1 }
 0x309   :  { %5632 = vst [vmem:[%s7311_s3 + $0x1e8] sm:$0xff] %v5560_v23  }
 0x30a   :  { %v3931_v30 = vmul.f32 0.2, %v3675_v26  ;;  %v3676_v31 = vadd.f32 %v7167_v43, %v3146_v28  ;;  %vm3803_vm12 = vcmp.ge.f32.partialorder %v3675_v26, 0.0 }
 0x30c   :  { %vm3804_vm13 = vcmp.ge.f32.partialorder %v3676_v31, 0.0  ;;  %v3932_v32 = vmul.f32 0.2, %v3676_v31  ;;  %v2605_v33 = vpop.f32.mrb[252].mxu0  ;;  %v4059_v36 = vsel %vm3803_vm12, %v3675_v26, %v3931_v30 }
 0x30d   :  { %v3150_v34 = vpop.f32.mrb[252].mxu1  ;;  %v2607_v35 = vpop.f32.mrb[253].mxu0 }
 0x30e   :  { %v4060_v37 = vsel %vm3804_vm13, %v3676_v31, %v3932_v32  ;;  %v3151_v38 = vadd.f32 %v3150_v34, %v2605_v33  ;;  %v3152_v39 = vpop.f32.mrb[253].mxu1  ;;  %v2608_v40 = vpop.f32.mrb[254].mxu0 }
 0x30f   :  { %v5565_v41 = vpack.c.bf16 %v4060_v37, %v4059_v36  ;;  %v3153_v42 = vpop.f32.mrb[254].mxu1  ;;  %v2610_v27 = vpop.f32.mrb[255].mxu0 }
 0x310   :  { %v3677_v45 = vadd.f32 %v6054_v44, %v3151_v38  ;;  %v3154_v43 = vadd.f32 %v3153_v42, %v2608_v40  ;;  %v3155_v46 = vpop.f32.mrb[255].mxu1 }
 0x311   :  { %5633 = vst [vmem:[%s7311_s3 + $0x1f0] sm:$0xff] %v5565_v41  }
 0x312   :  { %v3933_v47 = vmul.f32 0.2, %v3677_v45  ;;  %v3678_v48 = vadd.f32 %v6054_v44, %v3154_v43  ;;  %vm3805_vm14 = vcmp.ge.f32.partialorder %v3677_v45, 0.0 }
 0x314   :  { %vm3806_vm15 = vcmp.ge.f32.partialorder %v3678_v48, 0.0  ;;  %v3934_v49 = vmul.f32 0.2, %v3678_v48  ;;  %v4061_v50 = vsel %vm3805_vm14, %v3677_v45, %v3933_v47 }
 0x316   :  { %v4062_v51 = vsel %vm3806_vm15, %v3678_v48, %v3934_v49 }
 0x317   :  { %v5570_v52 = vpack.c.bf16 %v4062_v51, %v4061_v50 }
 0x319   :  { %5634 = vst [vmem:[%s7311_s3 + $0x1f8] sm:$0xff] %v5570_v52  }

// kernel: _lambda_.6
= control target key start
LH: loop header
LB: loop body
LE: loop exit
PB: predicated region body
PF: predicated region fallthrough
CT: control target
= control target key end

     0   :  { %s2550_s1 = inlined_call_operand.vmem [shape: bf16[1024,128], index: 1, kind: input, shape index: {}]   ;;  %s2551_s2 = inlined_call_operand.vmem [shape: f32[1,128], index: 2, kind: input, shape index: {}]   ;;  %s2552_s0 = inlined_call_operand.vmem [shape: bf16[128,1024], index: 0, kind: input, shape index: {}]   ;;  %s2553_s3 = inlined_call_operand.vmem [shape: bf16[128,128], index: 3, kind: output, shape index: {0}]   ;;  %s2554_s4 = inlined_call_operand.vmem [shape: f32[1,2,128], index: 4, kind: output, shape index: {1}]  }
   0x1   :  { %v1999_v0 = vld [vmem:[%s2550_s1 + $0x40] sm:$0xff]   ;;  %v2003_v4 = vld [vmem:[%s2550_s1 + $0x48] sm:$0xff]   ;;  %v2007_v8 = vld [vmem:[%s2550_s1 + $0x50] sm:$0xff]  }
   0x2   :  { %v2000_v1 = vld [vmem:[%s2550_s1 + $0xc0] sm:$0xff]   ;;  %1743 = vmatprep.subr.bf16.mxu0 %v1999_v0  ;;  %v2004_v5 = vld [vmem:[%s2550_s1 + $0xc8] sm:$0xff]   ;;  %v2008_v9 = vld [vmem:[%s2550_s1 + $0xd0] sm:$0xff]  }
   0x3   :  { %v2001_v2 = vld [vmem:[%s2550_s1] sm:$0xff]   ;;  %1807 = vmatprep.subr.bf16.mxu1 %v2000_v1  ;;  %v2005_v6 = vld [vmem:[%s2550_s1 + $0x8] sm:$0xff]   ;;  %v2009_v10 = vld [vmem:[%s2550_s1 + $0x10] sm:$0xff]  }
   0x4   :  { %v2002_v3 = vld [vmem:[%s2550_s1 + $0x80] sm:$0xff]   ;;  %1744 = vmatpush3.bf16.msra.mxu0 %v2001_v2  ;;  %v2006_v7 = vld [vmem:[%s2550_s1 + $0x88] sm:$0xff]   ;;  %v2010_v11 = vld [vmem:[%s2550_s1 + $0x90] sm:$0xff]  }
   0x5   :  { %1808 = vmatpush3.bf16.msra.mxu1 %v2002_v3  ;;  %1745 = vmatprep.subr.bf16.mxu0 %v2003_v4  ;;  %v2011_v12 = vld [vmem:[%s2550_s1 + $0x58] sm:$0xff]   ;;  %v2015_v16 = vld [vmem:[%s2550_s1 + $0x60] sm:$0xff]   ;;  %v2019_v20 = vld [vmem:[%s2550_s1 + $0x68] sm:$0xff]  }
   0x6   :  { %1809 = vmatprep.subr.bf16.mxu1 %v2004_v5  ;;  %v2012_v13 = vld [vmem:[%s2550_s1 + $0xd8] sm:$0xff]   ;;  %v2016_v17 = vld [vmem:[%s2550_s1 + $0xe0] sm:$0xff]   ;;  %v2020_v21 = vld [vmem:[%s2550_s1 + $0xe8] sm:$0xff]  }
   0x7   :  { %v2013_v14 = vld [vmem:[%s2550_s1 + $0x18] sm:$0xff]   ;;  %v2017_v18 = vld [vmem:[%s2550_s1 + $0x20] sm:$0xff]   ;;  %v2021_v22 = vld [vmem:[%s2550_s1 + $0x28] sm:$0xff]  }
   0x8   :  { %1746 = vmatpush3.bf16.msra.mxu0 %v2005_v6  ;;  %v2014_v15 = vld [vmem:[%s2550_s1 + $0x98] sm:$0xff]   ;;  %v2018_v19 = vld [vmem:[%s2550_s1 + $0xa0] sm:$0xff]   ;;  %v2022_v23 = vld [vmem:[%s2550_s1 + $0xa8] sm:$0xff]  }
   0x9   :  { %1810 = vmatpush3.bf16.msra.mxu1 %v2006_v7  ;;  %1747 = vmatprep.subr.bf16.mxu0 %v2007_v8  ;;  %v2023_v24 = vld [vmem:[%s2550_s1 + $0x70] sm:$0xff]   ;;  %v2027_v28 = vld [vmem:[%s2550_s1 + $0x78] sm:$0xff]   ;;  %v53_v32 = vld [vmem:[%s2552_s0] sm:$0xff] }
   0xa   :  { %1811 = vmatprep.subr.bf16.mxu1 %v2008_v9  ;;  %v2024_v25 = vld [vmem:[%s2550_s1 + $0xf0] sm:$0xff]   ;;  %v2028_v29 = vld [vmem:[%s2550_s1 + $0xf8] sm:$0xff]   ;;  %v57_v33 = vld [vmem:[%s2552_s0 + $0x20] sm:$0xff] }
   0xb   :  { %v2025_v26 = vld [vmem:[%s2550_s1 + $0x30] sm:$0xff]   ;;  %v2029_v30 = vld [vmem:[%s2550_s1 + $0x38] sm:$0xff]   ;;  %v54_v34 = vld [vmem:[%s2552_s0 + $0x8] sm:$0xff]  ;;  %v1536_v35 = vcombine.low %v53_v32, %v57_v33  ;;  %v1537_v36 = vcombine.high %v53_v32, %v57_v33 }
   0xc   :  { %1748 = vmatpush3.bf16.msra.mxu0 %v2009_v10  ;;  %v2026_v27 = vld [vmem:[%s2550_s1 + $0xb0] sm:$0xff]   ;;  %v2030_v31 = vld [vmem:[%s2550_s1 + $0xb8] sm:$0xff]   ;;  %v58_v37 = vld [vmem:[%s2552_s0 + $0x28] sm:$0xff] }
   0xd   :  { %1812 = vmatpush3.bf16.msra.mxu1 %v2010_v11  ;;  %1749 = vmatprep.subr.bf16.mxu0 %v2011_v12  ;;  %v1538_v38 = vcombine.low %v54_v34, %v58_v37  ;;  %v1539_v39 = vcombine.high %v54_v34, %v58_v37  ;;  %v2031_v40 = vld [vmem:[%s2550_s1 + $0x140] sm:$0xff]   ;;  %v62_v47 = vld [vmem:[%s2552_s0 + $0x48] sm:$0xff]  ;;  %v2039_v62 = vld [vmem:[%s2550_s1 + $0x150] sm:$0xff]  }
   0xe   :  { %1813 = vmatprep.subr.bf16.mxu1 %v2012_v13  ;;  %981 = vmatprep.mubr.bf16.mxu0 %v1537_v36  ;;  %v2032_v41 = vld [vmem:[%s2550_s1 + $0x100] sm:$0xff]   ;;  %v66_v48 = vld [vmem:[%s2552_s0 + $0x68] sm:$0xff]  ;;  %v2040_v63 = vld [vmem:[%s2550_s1 + $0x110] sm:$0xff]  }
   0xf   :  { %1078 = vmatprep.mubr.bf16.mxu1 %v1539_v39  ;;  %v2033_v42 = vld [vmem:[%s2550_s1 + $0x1c0] sm:$0xff]   ;;  %v1547_v49 = vcombine.high %v62_v47, %v66_v48  ;;  %v2035_v50 = vld [vmem:[%s2550_s1 + $0x148] sm:$0xff]   ;;  %v1546_v53 = vcombine.low %v62_v47, %v66_v48  ;;  %v2041_v0 = vld [vmem:[%s2550_s1 + $0x1d0] sm:$0xff]  }
  0x10   :  { %1750 = vmatpush3.bf16.msra.mxu0 %v2013_v14  ;;  %v2034_v43 = vld [vmem:[%s2550_s1 + $0x180] sm:$0xff]   ;;  %v2036_v52 = vld [vmem:[%s2550_s1 + $0x108] sm:$0xff]   ;;  %v2042_v1 = vld [vmem:[%s2550_s1 + $0x190] sm:$0xff]  }
  0x11   :  { %1814 = vmatpush3.bf16.msra.mxu1 %v2014_v15  ;;  %1751 = vmatprep.subr.bf16.mxu0 %v2015_v16  ;;  %v61_v44 = vld [vmem:[%s2552_s0 + $0x40] sm:$0xff]  ;;  %v2037_v54 = vld [vmem:[%s2550_s1 + $0x1c8] sm:$0xff]   ;;  %v2043_v10 = vld [vmem:[%s2550_s1 + $0x158] sm:$0xff]  }
  0x12   :  { %1815 = vmatprep.subr.bf16.mxu1 %v2016_v17  ;;  %v65_v45 = vld [vmem:[%s2552_s0 + $0x60] sm:$0xff]  ;;  %v2038_v55 = vld [vmem:[%s2550_s1 + $0x188] sm:$0xff]   ;;  %v2044_v11 = vld [vmem:[%s2550_s1 + $0x118] sm:$0xff]  }
  0x13   :  { %v1545_v46 = vcombine.high %v61_v44, %v65_v45  ;;  %v1544_v51 = vcombine.low %v61_v44, %v65_v45  ;;  %v69_v56 = vld [vmem:[%s2552_s0 + $0x80] sm:$0xff]  ;;  %v70_v58 = vld [vmem:[%s2552_s0 + $0x88] sm:$0xff]  ;;  %v2045_v12 = vld [vmem:[%s2550_s1 + $0x1d8] sm:$0xff]  }
  0x14   :  { %1752 = vmatpush3.bf16.msra.mxu0 %v2017_v18  ;;  %v73_v57 = vld [vmem:[%s2552_s0 + $0xa0] sm:$0xff]  ;;  %v74_v59 = vld [vmem:[%s2552_s0 + $0xa8] sm:$0xff]  ;;  %v2046_v13 = vld [vmem:[%s2550_s1 + $0x198] sm:$0xff]  }
  0x15   :  { %1816 = vmatpush3.bf16.msra.mxu1 %v2018_v19  ;;  %1753 = vmatprep.subr.bf16.mxu0 %v2019_v20  ;;  %v1553_v60 = vcombine.high %v69_v56, %v73_v57  ;;  %v1555_v61 = vcombine.high %v70_v58, %v74_v59  ;;  %v1552_v2 = vcombine.low %v69_v56, %v73_v57  ;;  %v77_v3 = vld [vmem:[%s2552_s0 + $0xc0] sm:$0xff]  ;;  %v78_v5 = vld [vmem:[%s2552_s0 + $0xc8] sm:$0xff]  ;;  %v2056_v39 = vld [vmem:[%s2550_s1 + $0x130] sm:$0xff]  }
  0x16   :  { %1817 = vmatprep.subr.bf16.mxu1 %v2020_v21  ;;  %v81_v4 = vld [vmem:[%s2552_s0 + $0xe0] sm:$0xff]  ;;  %v1554_v6 = vcombine.low %v70_v58, %v74_v59  ;;  %v82_v8 = vld [vmem:[%s2552_s0 + $0xe8] sm:$0xff]  ;;  %v2060_v48 = vld [vmem:[%s2550_s1 + $0x138] sm:$0xff]  }
  0x17   :  { %v1561_v7 = vcombine.high %v77_v3, %v81_v4  ;;  %v1563_v9 = vcombine.high %v78_v5, %v82_v8  ;;  %v85_v14 = vld [vmem:[%s2552_s0 + $0x100] sm:$0xff]  ;;  %v86_v16 = vld [vmem:[%s2552_s0 + $0x108] sm:$0xff]  ;;  %v1560_v19 = vcombine.low %v77_v3, %v81_v4  ;;  %v1562_v21 = vcombine.low %v78_v5, %v82_v8  ;;  %v64_v8 = vld [vmem:[%s2552_s0 + $0x58] sm:$0xff] }
  0x18   :  { %1754 = vmatpush3.bf16.msra.mxu0 %v2021_v22  ;;  %v89_v15 = vld [vmem:[%s2552_s0 + $0x120] sm:$0xff]  ;;  %v90_v17 = vld [vmem:[%s2552_s0 + $0x128] sm:$0xff] }
  0x19   :  { %1818 = vmatpush3.bf16.msra.mxu1 %v2022_v23  ;;  %1755 = vmatprep.subr.bf16.mxu0 %v2023_v24  ;;  %v2047_v18 = vld [vmem:[%s2550_s1 + $0x160] sm:$0xff]   ;;  %v1569_v22 = vcombine.high %v85_v14, %v89_v15  ;;  %v1571_v24 = vcombine.high %v86_v16, %v90_v17  ;;  %v2053_v32 = vld [vmem:[%s2550_s1 + $0x1e8] sm:$0xff]   ;;  %v1568_v34 = vcombine.low %v85_v14, %v89_v15  ;;  %v71_v14 = vld [vmem:[%s2552_s0 + $0x90] sm:$0xff] }
  0x1a   :  { %1819 = vmatprep.subr.bf16.mxu1 %v2024_v25  ;;  %v2048_v20 = vld [vmem:[%s2550_s1 + $0x120] sm:$0xff]   ;;  %v2054_v33 = vld [vmem:[%s2550_s1 + $0x1a8] sm:$0xff]   ;;  %v75_v15 = vld [vmem:[%s2552_s0 + $0xb0] sm:$0xff] }
  0x1b   :  { %v2049_v23 = vld [vmem:[%s2550_s1 + $0x1e0] sm:$0xff]   ;;  %v102_v44 = vld [vmem:[%s2552_s0 + $0x188] sm:$0xff] }
  0x1c   :  { %1756 = vmatpush3.bf16.msra.mxu0 %v2025_v26  ;;  %v2050_v25 = vld [vmem:[%s2550_s1 + $0x1a0] sm:$0xff]   ;;  %v106_v45 = vld [vmem:[%s2552_s0 + $0x1a8] sm:$0xff] }
  0x1d   :  { %1820 = vmatpush3.bf16.msra.mxu1 %v2026_v27  ;;  %1757 = vmatprep.subr.bf16.mxu0 %v2027_v28  ;;  %v93_v26 = vld [vmem:[%s2552_s0 + $0x140] sm:$0xff]  ;;  %v2051_v28 = vld [vmem:[%s2550_s1 + $0x168] sm:$0xff]   ;;  %v1586_v59 = vcombine.low %v102_v44, %v106_v45 }
  0x1e   :  { %1821 = vmatprep.subr.bf16.mxu1 %v2028_v29  ;;  %v97_v27 = vld [vmem:[%s2552_s0 + $0x160] sm:$0xff]  ;;  %v94_v29 = vld [vmem:[%s2552_s0 + $0x148] sm:$0xff] }
  0x1f   :  { %v1577_v36 = vcombine.high %v93_v26, %v97_v27  ;;  %v1576_v47 = vcombine.low %v93_v26, %v97_v27  ;;  %v110_v56 = vld [vmem:[%s2552_s0 + $0x1c8] sm:$0xff]  ;;  %v1556_v26 = vcombine.low %v71_v14, %v75_v15 }
  0x20   :  { %1758 = vmatpush3.bf16.msra.mxu0 %v2029_v30  ;;  %v98_v30 = vld [vmem:[%s2552_s0 + $0x168] sm:$0xff] }
  0x21   :  { %1822 = vmatpush3.bf16.msra.mxu1 %v2030_v31  ;;  %1871 = vmatprep.subr.bf16.mxu0 %v2031_v40  ;;  %v2052_v31 = vld [vmem:[%s2550_s1 + $0x128] sm:$0xff]   ;;  %v1579_v37 = vcombine.high %v94_v29, %v98_v30  ;;  %v2057_v40 = vld [vmem:[%s2550_s1 + $0x1f0] sm:$0xff]  }
  0x22   :  { %1935 = vmatprep.subr.bf16.mxu1 %v2033_v42  ;;  %v105_v42 = vld [vmem:[%s2552_s0 + $0x1a0] sm:$0xff]  ;;  %v114_v57 = vld [vmem:[%s2552_s0 + $0x1e8] sm:$0xff] }
  0x23   :  { %982 = vmatmul.mubr.bf16.vlgmr.msra.gmra.mrb[0].mxu0 %v1536_v35  ;;  %v1570_v35 = vcombine.low %v86_v16, %v90_v17  ;;  %v1594_v3 = vcombine.low %v110_v56, %v114_v57  ;;  %v72_v16 = vld [vmem:[%s2552_s0 + $0x98] sm:$0xff] }
  0x24   :  { %1079 = vmatmul.mubr.bf16.vlgmr.msra.gmra.mrb[0].mxu1 %v1538_v38  ;;  %1872 = vmatpush3.bf16.msra.mxu0 %v2032_v41  ;;  %v2055_v38 = vld [vmem:[%s2550_s1 + $0x170] sm:$0xff]   ;;  %v101_v41 = vld [vmem:[%s2552_s0 + $0x180] sm:$0xff]  ;;  %v76_v17 = vld [vmem:[%s2552_s0 + $0xb8] sm:$0xff] }
  0x25   :  { %1936 = vmatpush3.bf16.msra.mxu1 %v2034_v43  ;;  %989 = vmatprep.mubr.bf16.mxu0 %v1545_v46  ;;  %v2058_v43 = vld [vmem:[%s2550_s1 + $0x1b0] sm:$0xff]   ;;  %v2059_v46 = vld [vmem:[%s2550_s1 + $0x178] sm:$0xff]   ;;  %v1584_v58 = vcombine.low %v101_v41, %v105_v42  ;;  %v1558_v27 = vcombine.low %v72_v16, %v76_v17 }
  0x26   :  { %1086 = vmatprep.mubr.bf16.mxu1 %v1547_v49  ;;  %1873 = vmatprep.subr.bf16.mxu0 %v2035_v50  ;;  %v1578_v49 = vcombine.low %v94_v29, %v98_v30  ;;  %v1585_v50 = vcombine.high %v101_v41, %v105_v42  ;;  %v87_v30 = vld [vmem:[%s2552_s0 + $0x110] sm:$0xff]  ;;  %v100_v41 = vld [vmem:[%s2552_s0 + $0x178] sm:$0xff] }
  0x27   :  { %1937 = vmatprep.subr.bf16.mxu1 %v2037_v54  ;;  %v109_v54 = vld [vmem:[%s2552_s0 + $0x1c0] sm:$0xff] }
  0x28   :  { %1874 = vmatpush3.bf16.msra.mxu0 %v2036_v52  ;;  %v1587_v52 = vcombine.high %v102_v44, %v106_v45 }
  0x29   :  { %1938 = vmatpush3.bf16.msra.mxu1 %v2038_v55  ;;  %1875 = vmatprep.subr.bf16.mxu0 %v2039_v62  ;;  %v113_v55 = vld [vmem:[%s2552_s0 + $0x1e0] sm:$0xff]  ;;  %v55_v62 = vld [vmem:[%s2552_s0 + $0x10] sm:$0xff] }
  0x2a   :  { %1939 = vmatprep.subr.bf16.mxu1 %v2041_v0  ;;  %v56_v0 = vld [vmem:[%s2552_s0 + $0x18] sm:$0xff] }
  0x2b   :  { %990 = vmatmul.mubr.bf16.gmra.mrb[4].mxu0 %v1544_v51  ;;  %v2061_v51 = vld [vmem:[%s2550_s1 + $0x1f8] sm:$0xff]  }
  0x2c   :  { %1087 = vmatmul.mubr.bf16.gmra.mrb[4].mxu1 %v1546_v53  ;;  %997 = vmatprep.mubr.bf16.mxu0 %v1553_v60  ;;  %v2062_v53 = vld [vmem:[%s2550_s1 + $0x1b8] sm:$0xff]   ;;  %v1593_v60 = vcombine.high %v109_v54, %v113_v55 }
  0x2d   :  { %1094 = vmatprep.mubr.bf16.mxu1 %v1555_v61  ;;  %1876 = vmatpush3.bf16.msra.mxu0 %v2040_v63  ;;  %v1595_v61 = vcombine.high %v110_v56, %v114_v57  ;;  %v59_v63 = vld [vmem:[%s2552_s0 + $0x30] sm:$0xff]  ;;  %v112_v56 = vld [vmem:[%s2552_s0 + $0x1d8] sm:$0xff] }
  0x2e   :  { %1940 = vmatpush3.bf16.msra.mxu1 %v2042_v1  ;;  %1877 = vmatprep.subr.bf16.mxu0 %v2043_v10  ;;  %v60_v1 = vld [vmem:[%s2552_s0 + $0x38] sm:$0xff]  ;;  %v1541_v4 = vcombine.high %v55_v62, %v59_v63  ;;  %v1540_v10 = vcombine.low %v55_v62, %v59_v63 }
  0x2f   :  { %1941 = vmatprep.subr.bf16.mxu1 %v2045_v12  ;;  %v1543_v5 = vcombine.high %v56_v0, %v60_v1  ;;  %v116_v57 = vld [vmem:[%s2552_s0 + $0x1f8] sm:$0xff] }
  0x30   :  { %v1598_v63 = vcombine.low %v112_v56, %v116_v57 }
  0x31   :  { %1878 = vmatpush3.bf16.msra.mxu0 %v2044_v11  ;;  %v1542_v11 = vcombine.low %v56_v0, %v60_v1 }
  0x32   :  { %1942 = vmatpush3.bf16.msra.mxu1 %v2046_v13  ;;  %1879 = vmatprep.subr.bf16.mxu0 %v2047_v18 }
  0x33   :  { %998 = vmatmul.mubr.bf16.gmra.mrb[8].mxu0 %v1552_v2  ;;  %1943 = vmatprep.subr.bf16.mxu1 %v2049_v23  ;;  %v1592_v2 = vcombine.low %v109_v54, %v113_v55  ;;  %v83_v23 = vld [vmem:[%s2552_s0 + $0xf0] sm:$0xff] }
  0x34   :  { %1095 = vmatmul.mubr.bf16.gmra.mrb[8].mxu1 %v1554_v6  ;;  %1005 = vmatprep.mubr.bf16.mxu0 %v1561_v7  ;;  %v63_v6 = vld [vmem:[%s2552_s0 + $0x50] sm:$0xff] }
  0x35   :  { %1102 = vmatprep.mubr.bf16.mxu1 %v1563_v9  ;;  %1880 = vmatpush3.bf16.msra.mxu0 %v2048_v20  ;;  %v67_v7 = vld [vmem:[%s2552_s0 + $0x70] sm:$0xff]  ;;  %v68_v9 = vld [vmem:[%s2552_s0 + $0x78] sm:$0xff]  ;;  %v1557_v20 = vcombine.high %v71_v14, %v75_v15 }
  0x36   :  { %1944 = vmatpush3.bf16.msra.mxu1 %v2050_v25  ;;  %1881 = vmatprep.subr.bf16.mxu0 %v2051_v28  ;;  %v1549_v12 = vcombine.high %v63_v6, %v67_v7  ;;  %v1551_v13 = vcombine.high %v64_v8, %v68_v9  ;;  %v1548_v18 = vcombine.low %v63_v6, %v67_v7  ;;  %v84_v25 = vld [vmem:[%s2552_s0 + $0xf8] sm:$0xff]  ;;  %v111_v54 = vld [vmem:[%s2552_s0 + $0x1d0] sm:$0xff] }
  0x37   :  { %1945 = vmatprep.subr.bf16.mxu1 %v2053_v32  ;;  %v88_v32 = vld [vmem:[%s2552_s0 + $0x118] sm:$0xff]  ;;  %v115_v55 = vld [vmem:[%s2552_s0 + $0x1f0] sm:$0xff] }
  0x38   :  { %v1596_v62 = vcombine.low %v111_v54, %v115_v55 }
  0x39   :  { %1882 = vmatpush3.bf16.msra.mxu0 %v2052_v31  ;;  %v91_v31 = vld [vmem:[%s2552_s0 + $0x130] sm:$0xff] }
  0x3a   :  { %1946 = vmatpush3.bf16.msra.mxu1 %v2054_v33  ;;  %1883 = vmatprep.subr.bf16.mxu0 %v2055_v38  ;;  %v92_v33 = vld [vmem:[%s2552_s0 + $0x138] sm:$0xff]  ;;  %v95_v38 = vld [vmem:[%s2552_s0 + $0x150] sm:$0xff]  ;;  %v1572_v42 = vcombine.low %v87_v30, %v91_v31 }
  0x3b   :  { %1006 = vmatmul.mubr.bf16.gmra.mrb[12].mxu0 %v1560_v19  ;;  %1947 = vmatprep.subr.bf16.mxu1 %v2057_v40  ;;  %v1550_v19 = vcombine.low %v64_v8, %v68_v9  ;;  %v96_v40 = vld [vmem:[%s2552_s0 + $0x158] sm:$0xff] }
  0x3c   :  { %1103 = vmatmul.mubr.bf16.gmra.mrb[12].mxu1 %v1562_v21  ;;  %1013 = vmatprep.mubr.bf16.mxu0 %v1569_v22  ;;  %v1559_v21 = vcombine.high %v72_v16, %v76_v17  ;;  %v79_v22 = vld [vmem:[%s2552_s0 + $0xd0] sm:$0xff]  ;;  %v1583_v45 = vcombine.high %v96_v40, %v100_v41 }
  0x3d   :  { %1110 = vmatprep.mubr.bf16.mxu1 %v1571_v24  ;;  %1884 = vmatpush3.bf16.msra.mxu0 %v2056_v39  ;;  %v80_v24 = vld [vmem:[%s2552_s0 + $0xd8] sm:$0xff]  ;;  %v1565_v28 = vcombine.high %v79_v22, %v83_v23  ;;  %v99_v39 = vld [vmem:[%s2552_s0 + $0x170] sm:$0xff] }
  0x3e   :  { %1948 = vmatpush3.bf16.msra.mxu1 %v2058_v43  ;;  %1885 = vmatprep.subr.bf16.mxu0 %v2059_v46  ;;  %v1567_v29 = vcombine.high %v80_v24, %v84_v25  ;;  %v1574_v43 = vcombine.low %v88_v32, %v92_v33  ;;  %v1581_v44 = vcombine.high %v95_v38, %v99_v39  ;;  %v103_v46 = vld [vmem:[%s2552_s0 + $0x190] sm:$0xff] }
  0x3f   :  { %1949 = vmatprep.subr.bf16.mxu1 %v2061_v51  ;;  %v1582_v51 = vcombine.low %v96_v40, %v100_v41 }
  0x41   :  { %1886 = vmatpush3.bf16.msra.mxu0 %v2060_v48  ;;  %v104_v48 = vld [vmem:[%s2552_s0 + $0x198] sm:$0xff] }
  0x42   :  { %1950 = vmatpush3.bf16.msra.mxu1 %v2062_v53 }
  0x43   :  { %1014 = vmatmul.mubr.bf16.gmra.mrb[16].mxu0 %v1568_v34  ;;  %v1564_v34 = vcombine.low %v79_v22, %v83_v23 }
  0x44   :  { %1111 = vmatmul.mubr.bf16.gmra.mrb[16].mxu1 %v1570_v35  ;;  %1021 = vmatprep.mubr.bf16.mxu0 %v1577_v36  ;;  %v1566_v35 = vcombine.low %v80_v24, %v84_v25  ;;  %v1573_v36 = vcombine.high %v87_v30, %v91_v31 }
  0x45   :  { %1118 = vmatprep.mubr.bf16.mxu1 %v1579_v37  ;;  %v1575_v37 = vcombine.high %v88_v32, %v92_v33 }
  0x4b   :  { %1022 = vmatmul.mubr.bf16.gmra.mrb[20].mxu0 %v1576_v47  ;;  %v107_v47 = vld [vmem:[%s2552_s0 + $0x1b0] sm:$0xff] }
  0x4c   :  { %1119 = vmatmul.mubr.bf16.gmra.mrb[20].mxu1 %v1578_v49  ;;  %1029 = vmatprep.mubr.bf16.mxu0 %v1585_v50  ;;  %v108_v49 = vld [vmem:[%s2552_s0 + $0x1b8] sm:$0xff]  ;;  %v1580_v50 = vcombine.low %v95_v38, %v99_v39 }
  0x4d   :  { %1126 = vmatprep.mubr.bf16.mxu1 %v1587_v52  ;;  %v1589_v52 = vcombine.high %v103_v46, %v107_v47  ;;  %v1591_v53 = vcombine.high %v104_v48, %v108_v49 }
  0x53   :  { %1030 = vmatmul.mubr.bf16.gmra.mrb[24].mxu0 %v1584_v58  ;;  %v1588_v58 = vcombine.low %v103_v46, %v107_v47 }
  0x54   :  { %1127 = vmatmul.mubr.bf16.gmra.mrb[24].mxu1 %v1586_v59  ;;  %1037 = vmatprep.mubr.bf16.mxu0 %v1593_v60  ;;  %v1590_v59 = vcombine.low %v104_v48, %v108_v49  ;;  %v1597_v60 = vcombine.high %v111_v54, %v115_v55 }
  0x55   :  { %1134 = vmatprep.mubr.bf16.mxu1 %v1595_v61  ;;  %v1599_v61 = vcombine.high %v112_v56, %v116_v57 }
  0x5b   :  { %1038 = vmatmul.mubr.bf16.gmra.mrb[28].mxu0 %v1592_v2 }
  0x5c   :  { %1135 = vmatmul.mubr.bf16.gmra.mrb[28].mxu1 %v1594_v3  ;;  %1175 = vmatprep.mubr.bf16.mxu0 %v1541_v4 }
  0x5d   :  { %1272 = vmatprep.mubr.bf16.mxu1 %v1543_v5 }
  0x63   :  { %1176 = vmatmul.mubr.bf16.vlgmr.msra.gmra.mrb[32].mxu0 %v1540_v10 }
  0x64   :  { %1273 = vmatmul.mubr.bf16.vlgmr.msra.gmra.mrb[32].mxu1 %v1542_v11  ;;  %1183 = vmatprep.mubr.bf16.mxu0 %v1549_v12 }
  0x65   :  { %1280 = vmatprep.mubr.bf16.mxu1 %v1551_v13 }
  0x6b   :  { %1184 = vmatmul.mubr.bf16.gmra.mrb[36].mxu0 %v1548_v18 }
  0x6c   :  { %1281 = vmatmul.mubr.bf16.gmra.mrb[36].mxu1 %v1550_v19  ;;  %1191 = vmatprep.mubr.bf16.mxu0 %v1557_v20 }
  0x6d   :  { %1288 = vmatprep.mubr.bf16.mxu1 %v1559_v21 }
  0x73   :  { %1192 = vmatmul.mubr.bf16.gmra.mrb[40].mxu0 %v1556_v26 }
  0x74   :  { %1289 = vmatmul.mubr.bf16.gmra.mrb[40].mxu1 %v1558_v27  ;;  %1199 = vmatprep.mubr.bf16.mxu0 %v1565_v28 }
  0x75   :  { %1296 = vmatprep.mubr.bf16.mxu1 %v1567_v29 }
  0x7b   :  { %1200 = vmatmul.mubr.bf16.gmra.mrb[44].mxu0 %v1564_v34 }
  0x7c   :  { %1297 = vmatmul.mubr.bf16.gmra.mrb[44].mxu1 %v1566_v35  ;;  %1207 = vmatprep.mubr.bf16.mxu0 %v1573_v36 }
  0x7d   :  { %1304 = vmatprep.mubr.bf16.mxu1 %v1575_v37 }
  0x83   :  { %1208 = vmatmul.mubr.bf16.gmra.mrb[48].mxu0 %v1572_v42 }
  0x84   :  { %1305 = vmatmul.mubr.bf16.gmra.mrb[48].mxu1 %v1574_v43  ;;  %1215 = vmatprep.mubr.bf16.mxu0 %v1581_v44 }
  0x85   :  { %1312 = vmatprep.mubr.bf16.mxu1 %v1583_v45 }
  0x8b   :  { %1216 = vmatmul.mubr.bf16.gmra.mrb[52].mxu0 %v1580_v50 }
  0x8c   :  { %1313 = vmatmul.mubr.bf16.gmra.mrb[52].mxu1 %v1582_v51  ;;  %1223 = vmatprep.mubr.bf16.mxu0 %v1589_v52 }
  0x8d   :  { %1320 = vmatprep.mubr.bf16.mxu1 %v1591_v53 }
  0x93   :  { %1224 = vmatmul.mubr.bf16.gmra.mrb[56].mxu0 %v1588_v58 }
  0x94   :  { %1321 = vmatmul.mubr.bf16.gmra.mrb[56].mxu1 %v1590_v59  ;;  %1231 = vmatprep.mubr.bf16.mxu0 %v1597_v60 }
  0x95   :  { %1328 = vmatprep.mubr.bf16.mxu1 %v1599_v61 }
  0x9b   :  { %1232 = vmatmul.mubr.bf16.gmra.mrb[60].mxu0 %v1596_v62 }
  0x9c   :  { %1329 = vmatmul.mubr.bf16.gmra.mrb[60].mxu1 %v1598_v63 }
  0xf6   :  { %v1759_v0 = vpop.f32.mrb[0].mxu0 }
  0xf7   :  { %v1823_v1 = vpop.f32.mrb[0].mxu1  ;;  %v1760_v2 = vpop.f32.mrb[1].mxu0 }
  0xf8   :  { %v1761_v3 = vadd.f32 %v1760_v2, %v1759_v0  ;;  %v1824_v4 = vpop.f32.mrb[1].mxu1  ;;  %v1762_v5 = vpop.f32.mrb[2].mxu0 }
  0xf9   :  { %v1825_v6 = vadd.f32 %v1824_v4, %v1823_v1  ;;  %v1826_v7 = vpop.f32.mrb[2].mxu1  ;;  %v1763_v8 = vpop.f32.mrb[3].mxu0 }
  0xfa   :  { %v1764_v9 = vadd.f32 %v1763_v8, %v1762_v5  ;;  %v1827_v10 = vpop.f32.mrb[3].mxu1 }
  0xfb   :  { %v2472_v11 = vadd.f32 %v1825_v6, %v1761_v3  ;;  %v1828_v12 = vadd.f32 %v1827_v10, %v1826_v7 }
  0xfd   :  { %v2474_v13 = vadd.f32 %v1828_v12, %v1764_v9 }
  0xfe   :  { %v1765_v14 = vpop.f32.mrb[4].mxu0 }
  0xff   :  { %v1829_v15 = vpop.f32.mrb[4].mxu1  ;;  %v1766_v16 = vpop.f32.mrb[5].mxu0 }
 0x100   :  { %v1767_v17 = vadd.f32 %v1766_v16, %v1765_v14  ;;  %v1830_v18 = vpop.f32.mrb[5].mxu1  ;;  %v1768_v19 = vpop.f32.mrb[6].mxu0 }
 0x101   :  { %v1831_v20 = vadd.f32 %v1830_v18, %v1829_v15  ;;  %v1832_v21 = vpop.f32.mrb[6].mxu1  ;;  %v1769_v22 = vpop.f32.mrb[7].mxu0 }
 0x102   :  { %v1770_v23 = vadd.f32 %v1769_v22, %v1768_v19  ;;  %v1833_v24 = vpop.f32.mrb[7].mxu1 }
 0x103   :  { %v2476_v25 = vadd.f32 %v1831_v20, %v1767_v17  ;;  %v1834_v26 = vadd.f32 %v1833_v24, %v1832_v21 }
 0x105   :  { %v2478_v27 = vadd.f32 %v1834_v26, %v1770_v23 }
 0x106   :  { %v1771_v28 = vpop.f32.mrb[8].mxu0 }
 0x107   :  { %v1835_v29 = vpop.f32.mrb[8].mxu1  ;;  %v1772_v30 = vpop.f32.mrb[9].mxu0 }
 0x108   :  { %v1773_v31 = vadd.f32 %v1772_v30, %v1771_v28  ;;  %v1836_v32 = vpop.f32.mrb[9].mxu1  ;;  %v1774_v33 = vpop.f32.mrb[10].mxu0 }
 0x109   :  { %v1837_v34 = vadd.f32 %v1836_v32, %v1835_v29  ;;  %v1838_v35 = vpop.f32.mrb[10].mxu1  ;;  %v1775_v36 = vpop.f32.mrb[11].mxu0 }
 0x10a   :  { %v1776_v37 = vadd.f32 %v1775_v36, %v1774_v33  ;;  %v1839_v38 = vpop.f32.mrb[11].mxu1 }
 0x10b   :  { %v2480_v39 = vadd.f32 %v1837_v34, %v1773_v31  ;;  %v1840_v40 = vadd.f32 %v1839_v38, %v1838_v35 }
 0x10d   :  { %v2482_v41 = vadd.f32 %v1840_v40, %v1776_v37 }
 0x10e   :  { %v1777_v42 = vpop.f32.mrb[12].mxu0 }
 0x10f   :  { %v1841_v43 = vpop.f32.mrb[12].mxu1  ;;  %v1778_v44 = vpop.f32.mrb[13].mxu0 }
 0x110   :  { %v1779_v45 = vadd.f32 %v1778_v44, %v1777_v42  ;;  %v1842_v46 = vpop.f32.mrb[13].mxu1  ;;  %v1780_v47 = vpop.f32.mrb[14].mxu0 }
 0x111   :  { %v1843_v48 = vadd.f32 %v1842_v46, %v1841_v43  ;;  %v1844_v49 = vpop.f32.mrb[14].mxu1  ;;  %v1781_v50 = vpop.f32.mrb[15].mxu0 }
 0x112   :  { %v1782_v51 = vadd.f32 %v1781_v50, %v1780_v47  ;;  %v1845_v52 = vpop.f32.mrb[15].mxu1 }
 0x113   :  { %v2484_v53 = vadd.f32 %v1843_v48, %v1779_v45  ;;  %v1846_v54 = vadd.f32 %v1845_v52, %v1844_v49 }
 0x115   :  { %v2486_v55 = vadd.f32 %v1846_v54, %v1782_v51 }
 0x116   :  { %v1783_v56 = vpop.f32.mrb[16].mxu0 }
 0x117   :  { %v1847_v57 = vpop.f32.mrb[16].mxu1  ;;  %v1784_v58 = vpop.f32.mrb[17].mxu0 }
 0x118   :  { %v1785_v59 = vadd.f32 %v1784_v58, %v1783_v56  ;;  %v1848_v60 = vpop.f32.mrb[17].mxu1  ;;  %v1786_v61 = vpop.f32.mrb[18].mxu0 }
 0x119   :  { %v1849_v62 = vadd.f32 %v1848_v60, %v1847_v57  ;;  %v1850_v63 = vpop.f32.mrb[18].mxu1  ;;  %v1787_v0 = vpop.f32.mrb[19].mxu0 }
 0x11a   :  { %v1788_v1 = vadd.f32 %v1787_v0, %v1786_v61  ;;  %v1851_v2 = vpop.f32.mrb[19].mxu1 }
 0x11b   :  { %v2488_v3 = vadd.f32 %v1849_v62, %v1785_v59  ;;  %v1852_v4 = vadd.f32 %v1851_v2, %v1850_v63 }
 0x11d   :  { %v2490_v5 = vadd.f32 %v1852_v4, %v1788_v1 }
 0x11e   :  { %v1789_v6 = vpop.f32.mrb[20].mxu0 }
 0x11f   :  { %v1853_v7 = vpop.f32.mrb[20].mxu1  ;;  %v1790_v8 = vpop.f32.mrb[21].mxu0 }
 0x120   :  { %v1791_v9 = vadd.f32 %v1790_v8, %v1789_v6  ;;  %v1854_v10 = vpop.f32.mrb[21].mxu1  ;;  %v1792_v12 = vpop.f32.mrb[22].mxu0 }
 0x121   :  { %v1855_v14 = vadd.f32 %v1854_v10, %v1853_v7  ;;  %v1856_v15 = vpop.f32.mrb[22].mxu1  ;;  %v1793_v16 = vpop.f32.mrb[23].mxu0 }
 0x122   :  { %v1794_v17 = vadd.f32 %v1793_v16, %v1792_v12  ;;  %v1857_v18 = vpop.f32.mrb[23].mxu1 }
 0x123   :  { %v2492_v19 = vadd.f32 %v1855_v14, %v1791_v9  ;;  %v1858_v20 = vadd.f32 %v1857_v18, %v1856_v15 }
 0x125   :  { %v2494_v21 = vadd.f32 %v1858_v20, %v1794_v17 }
 0x126   :  { %v1795_v22 = vpop.f32.mrb[24].mxu0 }
 0x127   :  { %v1859_v23 = vpop.f32.mrb[24].mxu1  ;;  %v1796_v24 = vpop.f32.mrb[25].mxu0 }
 0x128   :  { %v1797_v26 = vadd.f32 %v1796_v24, %v1795_v22  ;;  %v1860_v28 = vpop.f32.mrb[25].mxu1  ;;  %v1798_v29 = vpop.f32.mrb[26].mxu0 }
 0x129   :  { %v1861_v30 = vadd.f32 %v1860_v28, %v1859_v23  ;;  %v1862_v31 = vpop.f32.mrb[26].mxu1  ;;  %v1799_v32 = vpop.f32.mrb[27].mxu0 }
 0x12a   :  { %v1800_v33 = vadd.f32 %v1799_v32, %v1798_v29  ;;  %v1863_v34 = vpop.f32.mrb[27].mxu1 }
 0x12b   :  { %v2496_v35 = vadd.f32 %v1861_v30, %v1797_v26  ;;  %v1864_v36 = vadd.f32 %v1863_v34, %v1862_v31 }
 0x12d   :  { %v2498_v37 = vadd.f32 %v1864_v36, %v1800_v33 }
 0x12e   :  { %v1801_v38 = vpop.f32.mrb[28].mxu0 }
 0x12f   :  { %v1865_v40 = vpop.f32.mrb[28].mxu1  ;;  %v1802_v42 = vpop.f32.mrb[29].mxu0 }
 0x130   :  { %v1803_v43 = vadd.f32 %v1802_v42, %v1801_v38  ;;  %v1866_v44 = vpop.f32.mrb[29].mxu1  ;;  %v1804_v45 = vpop.f32.mrb[30].mxu0 }
 0x131   :  { %v1867_v46 = vadd.f32 %v1866_v44, %v1865_v40  ;;  %v1868_v47 = vpop.f32.mrb[30].mxu1  ;;  %v1805_v48 = vpop.f32.mrb[31].mxu0 }
 0x132   :  { %v1806_v49 = vadd.f32 %v1805_v48, %v1804_v45  ;;  %v1869_v50 = vpop.f32.mrb[31].mxu1 }
 0x133   :  { %v2500_v51 = vadd.f32 %v1867_v46, %v1803_v43  ;;  %v1870_v52 = vadd.f32 %v1869_v50, %v1868_v47 }
 0x135   :  { %v2502_v54 = vadd.f32 %v1870_v52, %v1806_v49 }
 0x136   :  { %v1887_v56 = vpop.f32.mrb[32].mxu0 }
 0x137   :  { %v1951_v57 = vpop.f32.mrb[32].mxu1  ;;  %v1888_v58 = vpop.f32.mrb[33].mxu0 }
 0x138   :  { %v1889_v59 = vadd.f32 %v1888_v58, %v1887_v56  ;;  %v1952_v60 = vpop.f32.mrb[33].mxu1  ;;  %v1890_v61 = vpop.f32.mrb[34].mxu0 }
 0x139   :  { %v1953_v62 = vadd.f32 %v1952_v60, %v1951_v57  ;;  %v1954_v63 = vpop.f32.mrb[34].mxu1  ;;  %v1891_v0 = vpop.f32.mrb[35].mxu0 }
 0x13a   :  { %v1178_v1 = vadd.f32 %v1889_v59, %v2472_v11  ;;  %v1892_v2 = vadd.f32 %v1891_v0, %v1890_v61  ;;  %v1955_v4 = vpop.f32.mrb[35].mxu1 }
 0x13b   :  { %v1956_v6 = vadd.f32 %v1955_v4, %v1954_v63 }
 0x13c   :  { %v1275_v7 = vadd.f32 %v1953_v62, %v1178_v1  ;;  %v1181_v8 = vadd.f32 %v1892_v2, %v2474_v13 }
 0x13e   :  { %v1278_v9 = vadd.f32 %v1956_v6, %v1181_v8  ;;  %v1893_v10 = vpop.f32.mrb[36].mxu0  ;;  %v1490_v12 = vmul.f32 %v1275_v7, %v1275_v7 }
 0x13f   :  { %v1957_v14 = vpop.f32.mrb[36].mxu1  ;;  %v1894_v15 = vpop.f32.mrb[37].mxu0 }
 0x140   :  { %v1699_v16 = vpack.c.bf16 %v1278_v9, %v1275_v7  ;;  %v1468_v17 = vadd.f32 %v1278_v9, %v1275_v7  ;;  %v1491_v18 = vmul.f32 %v1278_v9, %v1278_v9  ;;  %v1895_v20 = vadd.f32 %v1894_v15, %v1893_v10  ;;  %v1958_v22 = vpop.f32.mrb[37].mxu1  ;;  %v1896_v23 = vpop.f32.mrb[38].mxu0 }
 0x141   :  { %v1959_v24 = vadd.f32 %v1958_v22, %v1957_v14  ;;  %v1960_v26 = vpop.f32.mrb[38].mxu1  ;;  %v1897_v11 = vpop.f32.mrb[39].mxu0 }
 0x142   :  { %1700 = vst [vmem:[%s2553_s3] sm:$0xff] %v1699_v16   ;;  %v1506_v28 = vadd.f32 %v1491_v18, %v1490_v12  ;;  %v1186_v13 = vadd.f32 %v1895_v20, %v2476_v25  ;;  %v1898_v29 = vadd.f32 %v1897_v11, %v1896_v23  ;;  %v1961_v30 = vpop.f32.mrb[39].mxu1 }
 0x143   :  { %v1962_v31 = vadd.f32 %v1961_v30, %v1960_v26 }
 0x144   :  { %v1283_v32 = vadd.f32 %v1959_v24, %v1186_v13  ;;  %v1189_v33 = vadd.f32 %v1898_v29, %v2478_v27 }
 0x146   :  { %v1469_v34 = vadd.f32 %v1468_v17, %v1283_v32  ;;  %v1492_v36 = vmul.f32 %v1283_v32, %v1283_v32  ;;  %v1286_v38 = vadd.f32 %v1962_v31, %v1189_v33  ;;  %v1899_v40 = vpop.f32.mrb[40].mxu0 }
 0x147   :  { %v1963_v42 = vpop.f32.mrb[40].mxu1  ;;  %v1900_v43 = vpop.f32.mrb[41].mxu0 }
 0x148   :  { %v1507_v44 = vadd.f32 %v1506_v28, %v1492_v36  ;;  %v1704_v45 = vpack.c.bf16 %v1286_v38, %v1283_v32  ;;  %v1470_v46 = vadd.f32 %v1469_v34, %v1286_v38  ;;  %v1493_v47 = vmul.f32 %v1286_v38, %v1286_v38  ;;  %v1964_v48 = vpop.f32.mrb[41].mxu1  ;;  %v1902_v49 = vpop.f32.mrb[42].mxu0 }
 0x149   :  { %v1901_v50 = vadd.f32 %v1900_v43, %v1899_v40  ;;  %v1965_v25 = vadd.f32 %v1964_v48, %v1963_v42  ;;  %v1966_v52 = vpop.f32.mrb[42].mxu1  ;;  %v1903_v56 = vpop.f32.mrb[43].mxu0 }
 0x14a   :  { %1736 = vst [vmem:[%s2553_s3 + $0x8] sm:$0xff] %v1704_v45   ;;  %v1508_v27 = vadd.f32 %v1507_v44, %v1493_v47  ;;  %v1904_v57 = vadd.f32 %v1903_v56, %v1902_v49  ;;  %v1967_v58 = vpop.f32.mrb[43].mxu1 }
 0x14b   :  { %v1194_v59 = vadd.f32 %v1901_v50, %v2480_v39  ;;  %v1968_v60 = vadd.f32 %v1967_v58, %v1966_v52 }
 0x14c   :  { %v1197_v61 = vadd.f32 %v1904_v57, %v2482_v41 }
 0x14d   :  { %v1291_v62 = vadd.f32 %v1965_v25, %v1194_v59 }
 0x14e   :  { %v1294_v63 = vadd.f32 %v1968_v60, %v1197_v61  ;;  %v1905_v0 = vpop.f32.mrb[44].mxu0 }
 0x14f   :  { %v1471_v1 = vadd.f32 %v1470_v46, %v1291_v62  ;;  %v1494_v2 = vmul.f32 %v1291_v62, %v1291_v62  ;;  %v1969_v4 = vpop.f32.mrb[44].mxu1  ;;  %v1906_v6 = vpop.f32.mrb[45].mxu0 }
 0x150   :  { %v1709_v7 = vpack.c.bf16 %v1294_v63, %v1291_v62  ;;  %v1495_v8 = vmul.f32 %v1294_v63, %v1294_v63  ;;  %v1907_v9 = vadd.f32 %v1906_v6, %v1905_v0  ;;  %v1970_v10 = vpop.f32.mrb[45].mxu1  ;;  %v1908_v12 = vpop.f32.mrb[46].mxu0 }
 0x151   :  { %v1509_v14 = vadd.f32 %v1508_v27, %v1494_v2  ;;  %v1472_v15 = vadd.f32 %v1471_v1, %v1294_v63  ;;  %v1971_v16 = vadd.f32 %v1970_v10, %v1969_v4  ;;  %v1972_v17 = vpop.f32.mrb[46].mxu1  ;;  %v1909_v39 = vpop.f32.mrb[47].mxu0 }
 0x152   :  { %1737 = vst [vmem:[%s2553_s3 + $0x10] sm:$0xff] %v1709_v7   ;;  %v1202_v41 = vadd.f32 %v1907_v9, %v2484_v53  ;;  %v1910_v18 = vadd.f32 %v1909_v39, %v1908_v12  ;;  %v1973_v20 = vpop.f32.mrb[47].mxu1 }
 0x153   :  { %v1510_v22 = vadd.f32 %v1509_v14, %v1495_v8  ;;  %v1974_v23 = vadd.f32 %v1973_v20, %v1972_v17 }
 0x154   :  { %v1299_v24 = vadd.f32 %v1971_v16, %v1202_v41  ;;  %v1205_v26 = vadd.f32 %v1910_v18, %v2486_v55 }
 0x156   :  { %v1473_v11 = vadd.f32 %v1472_v15, %v1299_v24  ;;  %v1496_v28 = vmul.f32 %v1299_v24, %v1299_v24  ;;  %v1302_v13 = vadd.f32 %v1974_v23, %v1205_v26  ;;  %v1911_v29 = vpop.f32.mrb[48].mxu0 }
 0x157   :  { %v1975_v30 = vpop.f32.mrb[48].mxu1  ;;  %v1912_v31 = vpop.f32.mrb[49].mxu0 }
 0x158   :  { %v1511_v32 = vadd.f32 %v1510_v22, %v1496_v28  ;;  %v1714_v33 = vpack.c.bf16 %v1302_v13, %v1299_v24  ;;  %v1474_v34 = vadd.f32 %v1473_v11, %v1302_v13  ;;  %v1497_v36 = vmul.f32 %v1302_v13, %v1302_v13  ;;  %v1976_v38 = vpop.f32.mrb[49].mxu1  ;;  %v1914_v40 = vpop.f32.mrb[50].mxu0 }
 0x159   :  { %v1913_v53 = vadd.f32 %v1912_v31, %v1911_v29  ;;  %v1977_v42 = vadd.f32 %v1976_v38, %v1975_v30  ;;  %v1978_v43 = vpop.f32.mrb[50].mxu1  ;;  %v1915_v44 = vpop.f32.mrb[51].mxu0 }
 0x15a   :  { %1738 = vst [vmem:[%s2553_s3 + $0x18] sm:$0xff] %v1714_v33   ;;  %v1512_v55 = vadd.f32 %v1511_v32, %v1497_v36  ;;  %v1916_v45 = vadd.f32 %v1915_v44, %v1914_v40  ;;  %v1979_v46 = vpop.f32.mrb[51].mxu1 }
 0x15b   :  { %v1210_v47 = vadd.f32 %v1913_v53, %v2488_v3  ;;  %v1980_v48 = vadd.f32 %v1979_v46, %v1978_v43 }
 0x15c   :  { %v1213_v49 = vadd.f32 %v1916_v45, %v2490_v5 }
 0x15d   :  { %v1307_v50 = vadd.f32 %v1977_v42, %v1210_v47 }
 0x15e   :  { %v1310_v25 = vadd.f32 %v1980_v48, %v1213_v49  ;;  %v1917_v52 = vpop.f32.mrb[52].mxu0 }
 0x15f   :  { %v1475_v56 = vadd.f32 %v1474_v34, %v1307_v50  ;;  %v1498_v27 = vmul.f32 %v1307_v50, %v1307_v50  ;;  %v1981_v57 = vpop.f32.mrb[52].mxu1  ;;  %v1918_v58 = vpop.f32.mrb[53].mxu0 }
 0x160   :  { %v1719_v59 = vpack.c.bf16 %v1310_v25, %v1307_v50  ;;  %v1499_v60 = vmul.f32 %v1310_v25, %v1310_v25  ;;  %v1919_v61 = vadd.f32 %v1918_v58, %v1917_v52  ;;  %v1982_v62 = vpop.f32.mrb[53].mxu1  ;;  %v1920_v63 = vpop.f32.mrb[54].mxu0 }
 0x161   :  { %v1513_v0 = vadd.f32 %v1512_v55, %v1498_v27  ;;  %v1476_v1 = vadd.f32 %v1475_v56, %v1310_v25  ;;  %v1983_v2 = vadd.f32 %v1982_v62, %v1981_v57  ;;  %v1984_v4 = vpop.f32.mrb[54].mxu1  ;;  %v1921_v3 = vpop.f32.mrb[55].mxu0 }
 0x162   :  { %1739 = vst [vmem:[%s2553_s3 + $0x20] sm:$0xff] %v1719_v59   ;;  %v1218_v5 = vadd.f32 %v1919_v61, %v2492_v19  ;;  %v1922_v6 = vadd.f32 %v1921_v3, %v1920_v63  ;;  %v1985_v7 = vpop.f32.mrb[55].mxu1 }
 0x163   :  { %v1514_v8 = vadd.f32 %v1513_v0, %v1499_v60  ;;  %v1986_v9 = vadd.f32 %v1985_v7, %v1984_v4 }
 0x164   :  { %v1315_v10 = vadd.f32 %v1983_v2, %v1218_v5  ;;  %v1221_v12 = vadd.f32 %v1922_v6, %v2494_v21 }
 0x166   :  { %v1477_v14 = vadd.f32 %v1476_v1, %v1315_v10  ;;  %v1500_v15 = vmul.f32 %v1315_v10, %v1315_v10  ;;  %v1318_v16 = vadd.f32 %v1986_v9, %v1221_v12  ;;  %v1923_v17 = vpop.f32.mrb[56].mxu0 }
 0x167   :  { %v1987_v39 = vpop.f32.mrb[56].mxu1  ;;  %v1924_v41 = vpop.f32.mrb[57].mxu0 }
 0x168   :  { %v1515_v18 = vadd.f32 %v1514_v8, %v1500_v15  ;;  %v1724_v20 = vpack.c.bf16 %v1318_v16, %v1315_v10  ;;  %v1478_v22 = vadd.f32 %v1477_v14, %v1318_v16  ;;  %v1501_v23 = vmul.f32 %v1318_v16, %v1318_v16  ;;  %v1988_v24 = vpop.f32.mrb[57].mxu1  ;;  %v1926_v26 = vpop.f32.mrb[58].mxu0 }
 0x169   :  { %v1925_v19 = vadd.f32 %v1924_v41, %v1923_v17  ;;  %v1989_v11 = vadd.f32 %v1988_v24, %v1987_v39  ;;  %v1990_v28 = vpop.f32.mrb[58].mxu1  ;;  %v1927_v13 = vpop.f32.mrb[59].mxu0 }
 0x16a   :  { %1740 = vst [vmem:[%s2553_s3 + $0x28] sm:$0xff] %v1724_v20   ;;  %v1516_v21 = vadd.f32 %v1515_v18, %v1501_v23  ;;  %v1928_v29 = vadd.f32 %v1927_v13, %v1926_v26  ;;  %v1991_v30 = vpop.f32.mrb[59].mxu1 }
 0x16b   :  { %v1226_v31 = vadd.f32 %v1925_v19, %v2496_v35  ;;  %v1992_v32 = vadd.f32 %v1991_v30, %v1990_v28 }
 0x16c   :  { %v1229_v33 = vadd.f32 %v1928_v29, %v2498_v37 }
 0x16d   :  { %v1323_v34 = vadd.f32 %v1989_v11, %v1226_v31 }
 0x16e   :  { %v1326_v36 = vadd.f32 %v1992_v32, %v1229_v33  ;;  %v1929_v38 = vpop.f32.mrb[60].mxu0 }
 0x16f   :  { %v1479_v40 = vadd.f32 %v1478_v22, %v1323_v34  ;;  %v1502_v53 = vmul.f32 %v1323_v34, %v1323_v34  ;;  %v1993_v42 = vpop.f32.mrb[60].mxu1  ;;  %v1930_v43 = vpop.f32.mrb[61].mxu0 }
 0x170   :  { %v1729_v44 = vpack.c.bf16 %v1326_v36, %v1323_v34  ;;  %v1503_v55 = vmul.f32 %v1326_v36, %v1326_v36  ;;  %v1931_v45 = vadd.f32 %v1930_v43, %v1929_v38  ;;  %v1994_v46 = vpop.f32.mrb[61].mxu1  ;;  %v1932_v47 = vpop.f32.mrb[62].mxu0 }
 0x171   :  { %v1517_v48 = vadd.f32 %v1516_v21, %v1502_v53  ;;  %v1480_v49 = vadd.f32 %v1479_v40, %v1326_v36  ;;  %v1995_v50 = vadd.f32 %v1994_v46, %v1993_v42  ;;  %v1996_v25 = vpop.f32.mrb[62].mxu1  ;;  %v1933_v35 = vpop.f32.mrb[63].mxu0 }
 0x172   :  { %1741 = vst [vmem:[%s2553_s3 + $0x30] sm:$0xff] %v1729_v44   ;;  %v1234_v37 = vadd.f32 %v1931_v45, %v2500_v51  ;;  %v1934_v52 = vadd.f32 %v1933_v35, %v1932_v47  ;;  %v1997_v56 = vpop.f32.mrb[63].mxu1 }
 0x173   :  { %v1518_v27 = vadd.f32 %v1517_v48, %v1503_v55  ;;  %v1998_v57 = vadd.f32 %v1997_v56, %v1996_v25 }
 0x174   :  { %v1331_v58 = vadd.f32 %v1995_v50, %v1234_v37  ;;  %v1237_v59 = vadd.f32 %v1934_v52, %v2502_v54 }
 0x176   :  { %v1481_v60 = vadd.f32 %v1480_v49, %v1331_v58  ;;  %v1504_v61 = vmul.f32 %v1331_v58, %v1331_v58  ;;  %v1334_v62 = vadd.f32 %v1998_v57, %v1237_v59 }
 0x178   :  { %v1519_v63 = vadd.f32 %v1518_v27, %v1504_v61  ;;  %v1734_v0 = vpack.c.bf16 %v1334_v62, %v1331_v58  ;;  %v1482_v1 = vadd.f32 %v1481_v60, %v1334_v62  ;;  %v1505_v2 = vmul.f32 %v1334_v62, %v1334_v62 }
 0x17a   :  { %1742 = vst [vmem:[%s2553_s3 + $0x38] sm:$0xff] %v1734_v0   ;;  %v1483_v4 = vrot.slane %v1482_v1, 4  ;;  %v1520_v51 = vadd.f32 %v1519_v63, %v1505_v2 }
 0x17c   :  { %v1484_v3 = vadd.f32 %v1483_v4, %v1482_v1  ;;  %v1521_v5 = vrot.slane %v1520_v51, 4 }
 0x17e   :  { %v1485_v6 = vrot.slane %v1484_v3, 2  ;;  %v1522_v7 = vadd.f32 %v1521_v5, %v1520_v51 }
 0x180   :  { %v1486_v8 = vadd.f32 %v1485_v6, %v1484_v3  ;;  %v1523_v9 = vrot.slane %v1522_v7, 2 }
 0x182   :  { %v1487_v54 = vrot.slane %v1486_v8, 1  ;;  %v1524_v10 = vadd.f32 %v1523_v9, %v1522_v7 }
 0x184   :  { %v1488_v12 = vadd.f32 %v1487_v54, %v1486_v8  ;;  %v1525_v14 = vrot.slane %v1524_v10, 1 }
 0x186   :  { %1489 = vst [vmem:[%s2554_s4] sm:$0x1] %v1488_v12  ;;  %v1526_v15 = vadd.f32 %v1525_v14, %v1524_v10 }
 0x188   :  { %1527 = vst [vmem:[%s2554_s4 + $0x1] sm:$0x1] %v1526_v15 }

// kernel: _lambda_.7
= control target key start
LH: loop header
LB: loop body
LE: loop exit
PB: predicated region body
PF: predicated region fallthrough
CT: control target
= control target key end

     0   :  { %s1612_s15 = smov 0   ;;  %s1614_s16 = smov 0   ;;  %s1764_s0 = inlined_call_operand.vmem [shape: bf16[16,2048], index: 0, kind: input, shape index: {}]   ;;  %s1765_s1 = inlined_call_operand.vmem [shape: bf16[2048,128], index: 1, kind: input, shape index: {}]   ;;  %s1766_s2 = inlined_call_operand.vmem [shape: f32[1,128], index: 2, kind: input, shape index: {}]   ;;  %s1767_s3 = inlined_call_operand.vmem [shape: bf16[16,128], index: 3, kind: output, shape index: {0}]   ;;  %s1768_s4 = inlined_call_operand.vmem [shape: f32[1,2,128], index: 4, kind: output, shape index: {1}]  }
   0x1   :  { %s1616_s17 = smov 0   ;;  %s1618_s18 = smov 0  }
   0x2   :  { %s1620_s19 = smov 0  }
   0x3 LB: > { %s27_s2 = sadd.s32 1, %s1580_s18  ;;  %p50_p1 = scmp.ne.s32.totalorder %s1572_s16, %s1568_s15  ;;  %s1584_s19 = sphi %s1620_s19, %s15_s19   ;;  %s1580_s18 = sphi %s1618_s18, %s1772_s18   ;;  %s1576_s17 = sphi %s1616_s17, %s1771_s17   ;;  %s1572_s16 = sphi %s1614_s16, %s1770_s16   ;;  %s1568_s15 = sphi %s1612_s15, %s1769_s15  }
   0x4   : > { %p28_p0 = scmp.ge.s32.totalorder %s27_s2, 2  ;;  %p51_p2 = scmp.eq.s32.totalorder %s1584_s19, 0 }
   0x5   : > { %s43_s21 = sadd.s32 1, %s1572_s16  ;;  %p1256_p5 = scmp.ge.s32.totalorder %s1584_s19, 2 }
   0x6   : > { %s1774_s2 = smov (%p28_p0, %s27_s2), 0  ;;  %p52_p3 = por %p51_p2, %p50_p1 }
   0x7   : > { %s39_s20 = ssub.s32 %s1580_s18, %s1774_s2  ;;  %192 = sbr.rel (%p1256_p5) target bundleno = 22 (0x16), region = 20 }
   0x8   : > { %p41_p4 = scmp.eq.s32.totalorder %s39_s20, 0 }
   0xa   : > { %s1647_s22 = scalar_select %p41_p4, %s1572_s16, %s43_s21  }
   0xe   : > { %195 = sbr.rel (!%p52_p3) target bundleno = 22 (0x16), region = 24  ;;  %s197_s23 = sand.u32 (%p52_p3), 1, %s1572_s16  }
   0xf   : > { %s1345_s24 = sshll.u32 (%p52_p3), %s1580_s18, 5  ;;  %s1257_s25 = sshll.u32 (%p52_p3), %s197_s23, 6 }
  0x10   : > { %s205_s28 = scalar_lea.vmem (%p52_p3), %s1764_s0, %s1345_s24  ;;  %s199_s29 = scalar_lea.vmem (%p52_p3), [#allocation3], %s1257_s25 }
  0x11   : > { %v218_v0 = vld [vmem:[%s205_s28] sm:$0xff] (%p52_p3)  ;;  %v220_v1 = vld [vmem:[%s205_s28 + $0x8] sm:$0xff] (%p52_p3)  ;;  %v222_v2 = vld [vmem:[%s205_s28 + $0x10] sm:$0xff] (%p52_p3) }
  0x12   : > { %219 = vst [vmem:[%s199_s29] sm:$0xff] (%p52_p3), %v218_v0  ;;  %221 = vst [vmem:[%s199_s29 + $0x8] sm:$0xff] (%p52_p3), %v220_v1  ;;  %v224_v3 = vld [vmem:[%s205_s28 + $0x18] sm:$0xff] (%p52_p3)  ;;  %v226_v4 = vld [vmem:[%s205_s28 + $0x40] sm:$0xff] (%p52_p3) }
  0x13   : > { %223 = vst [vmem:[%s199_s29 + $0x10] sm:$0xff] (%p52_p3), %v222_v2  ;;  %v228_v5 = vld [vmem:[%s205_s28 + $0x48] sm:$0xff] (%p52_p3)  ;;  %225 = vst [vmem:[%s199_s29 + $0x18] sm:$0xff] (%p52_p3), %v224_v3  ;;  %v230_v6 = vld [vmem:[%s205_s28 + $0x50] sm:$0xff] (%p52_p3) }
  0x14   : > { %227 = vst [vmem:[%s199_s29 + $0x20] sm:$0xff] (%p52_p3), %v226_v4  ;;  %229 = vst [vmem:[%s199_s29 + $0x28] sm:$0xff] (%p52_p3), %v228_v5  ;;  %v232_v7 = vld [vmem:[%s205_s28 + $0x58] sm:$0xff] (%p52_p3) }
  0x15   : > { %231 = vst [vmem:[%s199_s29 + $0x30] sm:$0xff] %v230_v6  ;;  %233 = vst [vmem:[%s199_s29 + $0x38] sm:$0xff] %v232_v7 }
  0x16 PF: > { %p1260_p6 = scmp.ge.s32.totalorder %s1584_s19, 1  ;;  %p250_p7 = scmp.lt.s32.totalorder %s1584_s19, 3 }
  0x18   : > { %p251_p8 = pnand %p1260_p6, %p250_p7 }
  0x19   : > { %s257_s30 = sand.u32 (!%p251_p8), 1, %s1568_s15   ;;  %s1262_s5 = sshll.u32 (!%p251_p8), %s1576_s17, 7 }
  0x1a   : > { %254 = sbr.rel (%p251_p8) target bundleno = 354 (0x162), region = 51  ;;  %s1261_s6 = sshll.u32 (!%p251_p8), %s257_s30, 6 }
  0x1b   : > { %p306_p9 = scmp.lt.s32.totalorder (!%p251_p8), %s1262_s5, 255  ;;  %s1664_s11 = scalar_lea.vmem (!%p251_p8), [#allocation3], %s1261_s6 }
  0x1c   : > { %p1264_p10 = scmp.ne.s32.totalorder (!%p251_p8), %s1576_s17, 0 }
  0x21   : > { %s1776_s5 = smov (!%p306_p9, %s1262_s5), 255  ;;  %337 = sbr.rel (%p1264_p10) target bundleno = 40 (0x28), region = 59 }
  0x22   : > { %s1263_s7 = sshll.u32 %s1776_s5, 2  ;;  %v1586_v8 = vmov (!%p1264_p10), 0.0  }
  0x23   : > { %s1662_s10 = scalar_lea.vmem %s1765_s1, %s1263_s7  ;;  %338 = vst [vmem:[#allocation2] sm:$0xff] (!%p1264_p10), %v1586_v8  ;;  %339 = vst [vmem:[#allocation2 + $0x8] sm:$0xff] (!%p1264_p10), %v1586_v8 }
  0x28 PF: > { %v1482_v9 = vld [vmem:[%s1662_s10 + $0x40] sm:$0xff]   ;;  %v1486_v13 = vld [vmem:[%s1662_s10 + $0x48] sm:$0xff]   ;;  %v1490_v17 = vld [vmem:[%s1662_s10 + $0x50] sm:$0xff]   ;;  %p1337_p11 = scmp.ne.s32.totalorder %s1576_s17, 1 }
  0x29   : > { %v1483_v10 = vld [vmem:[%s1662_s10 + $0xc0] sm:$0xff]   ;;  %1353 = vmatprep.subr.bf16.mxu0 %v1482_v9  ;;  %v1487_v14 = vld [vmem:[%s1662_s10 + $0xc8] sm:$0xff]   ;;  %v1491_v18 = vld [vmem:[%s1662_s10 + $0xd0] sm:$0xff]  }
  0x2a   : > { %v1484_v11 = vld [vmem:[%s1662_s10] sm:$0xff]   ;;  %1375 = vmatprep.subr.bf16.mxu1 %v1483_v10  ;;  %v1488_v15 = vld [vmem:[%s1662_s10 + $0x8] sm:$0xff]   ;;  %v1492_v19 = vld [vmem:[%s1662_s10 + $0x10] sm:$0xff]  }
  0x2b   : > { %v1485_v12 = vld [vmem:[%s1662_s10 + $0x80] sm:$0xff]   ;;  %1354 = vmatpush3.bf16.msra.mxu0 %v1484_v11  ;;  %v1489_v16 = vld [vmem:[%s1662_s10 + $0x88] sm:$0xff]   ;;  %v1493_v20 = vld [vmem:[%s1662_s10 + $0x90] sm:$0xff]  }
  0x2c   : > { %1376 = vmatpush3.bf16.msra.mxu1 %v1485_v12  ;;  %1355 = vmatprep.subr.bf16.mxu0 %v1486_v13  ;;  %v1494_v21 = vld [vmem:[%s1662_s10 + $0x58] sm:$0xff]   ;;  %v1498_v25 = vld [vmem:[%s1662_s10 + $0x60] sm:$0xff]   ;;  %v1502_v29 = vld [vmem:[%s1662_s10 + $0x68] sm:$0xff]  }
  0x2d   : > { %1377 = vmatprep.subr.bf16.mxu1 %v1487_v14  ;;  %v1495_v22 = vld [vmem:[%s1662_s10 + $0xd8] sm:$0xff]   ;;  %v1499_v26 = vld [vmem:[%s1662_s10 + $0xe0] sm:$0xff]   ;;  %v1503_v30 = vld [vmem:[%s1662_s10 + $0xe8] sm:$0xff]  }
  0x2e   : > { %v1496_v23 = vld [vmem:[%s1662_s10 + $0x18] sm:$0xff]   ;;  %v1500_v27 = vld [vmem:[%s1662_s10 + $0x20] sm:$0xff]   ;;  %v1504_v31 = vld [vmem:[%s1662_s10 + $0x28] sm:$0xff]  }
  0x2f   : > { %1356 = vmatpush3.bf16.msra.mxu0 %v1488_v15  ;;  %v1497_v24 = vld [vmem:[%s1662_s10 + $0x98] sm:$0xff]   ;;  %v1501_v28 = vld [vmem:[%s1662_s10 + $0xa0] sm:$0xff]   ;;  %v1505_v32 = vld [vmem:[%s1662_s10 + $0xa8] sm:$0xff]  }
  0x30   : > { %1378 = vmatpush3.bf16.msra.mxu1 %v1489_v16  ;;  %1357 = vmatprep.subr.bf16.mxu0 %v1490_v17  ;;  %v1506_v33 = vld [vmem:[%s1662_s10 + $0x70] sm:$0xff]   ;;  %v1510_v37 = vld [vmem:[%s1662_s10 + $0x78] sm:$0xff]   ;;  %v1514_v49 = vld [vmem:[%s1662_s10 + $0x140] sm:$0xff]  }
  0x31   : > { %1379 = vmatprep.subr.bf16.mxu1 %v1491_v18  ;;  %v1507_v34 = vld [vmem:[%s1662_s10 + $0xf0] sm:$0xff]   ;;  %v1511_v38 = vld [vmem:[%s1662_s10 + $0xf8] sm:$0xff]   ;;  %v1515_v50 = vld [vmem:[%s1662_s10 + $0x1c0] sm:$0xff]  }
  0x32   : > { %v1508_v35 = vld [vmem:[%s1662_s10 + $0x30] sm:$0xff]   ;;  %v1512_v39 = vld [vmem:[%s1662_s10 + $0x38] sm:$0xff]   ;;  %v1516_v51 = vld [vmem:[%s1662_s10 + $0x100] sm:$0xff]  }
  0x33   : > { %1358 = vmatpush3.bf16.msra.mxu0 %v1492_v19  ;;  %v1509_v36 = vld [vmem:[%s1662_s10 + $0xb0] sm:$0xff]   ;;  %v1513_v40 = vld [vmem:[%s1662_s10 + $0xb8] sm:$0xff]   ;;  %v1517_v52 = vld [vmem:[%s1662_s10 + $0x180] sm:$0xff]  }
  0x34   : > { %1380 = vmatpush3.bf16.msra.mxu1 %v1493_v20  ;;  %1359 = vmatprep.subr.bf16.mxu0 %v1494_v21  ;;  %v342_v41 = vld [vmem:[%s1664_s11] sm:$0xff]  ;;  %v343_v43 = vld [vmem:[%s1664_s11 + $0x8] sm:$0xff]  ;;  %v1518_v53 = vld [vmem:[%s1662_s10 + $0x148] sm:$0xff]  }
  0x35   : > { %1381 = vmatprep.subr.bf16.mxu1 %v1495_v22  ;;  %v346_v42 = vld [vmem:[%s1664_s11 + $0x20] sm:$0xff]  ;;  %v347_v46 = vld [vmem:[%s1664_s11 + $0x28] sm:$0xff]  ;;  %v1519_v54 = vld [vmem:[%s1662_s10 + $0x1c8] sm:$0xff]  }
  0x36   : > { %v1265_v44 = vcombine.low %v342_v41, %v346_v42  ;;  %v1266_v45 = vcombine.high %v342_v41, %v346_v42  ;;  %v1267_v47 = vcombine.low %v343_v43, %v347_v46  ;;  %v1268_v48 = vcombine.high %v343_v43, %v347_v46  ;;  %v1520_v55 = vld [vmem:[%s1662_s10 + $0x108] sm:$0xff]   ;;  %v1522_v57 = vld [vmem:[%s1662_s10 + $0x150] sm:$0xff]   ;;  %v1526_v61 = vld [vmem:[%s1662_s10 + $0x158] sm:$0xff]  }
  0x37   : > { %1360 = vmatpush3.bf16.msra.mxu0 %v1496_v23  ;;  %v1521_v56 = vld [vmem:[%s1662_s10 + $0x188] sm:$0xff]   ;;  %v1523_v58 = vld [vmem:[%s1662_s10 + $0x1d0] sm:$0xff]   ;;  %v1527_v62 = vld [vmem:[%s1662_s10 + $0x1d8] sm:$0xff]  }
  0x38   : > { %1382 = vmatpush3.bf16.msra.mxu1 %v1497_v24  ;;  %1361 = vmatprep.subr.bf16.mxu0 %v1498_v25  ;;  %v1524_v59 = vld [vmem:[%s1662_s10 + $0x110] sm:$0xff]   ;;  %v1528_v63 = vld [vmem:[%s1662_s10 + $0x118] sm:$0xff]   ;;  %v1530_v1 = vld [vmem:[%s1662_s10 + $0x160] sm:$0xff]  }
  0x39   : > { %1383 = vmatprep.subr.bf16.mxu1 %v1499_v26  ;;  %934 = vmatprep.mubr.bf16.mxu0 %v1266_v45  ;;  %v1525_v60 = vld [vmem:[%s1662_s10 + $0x190] sm:$0xff]   ;;  %v1529_v0 = vld [vmem:[%s1662_s10 + $0x198] sm:$0xff]   ;;  %v1531_v2 = vld [vmem:[%s1662_s10 + $0x1e0] sm:$0xff]  }
  0x3a   : > { %975 = vmatprep.mubr.bf16.mxu1 %v1268_v48  ;;  %v1532_v3 = vld [vmem:[%s1662_s10 + $0x120] sm:$0xff]   ;;  %v1534_v5 = vld [vmem:[%s1662_s10 + $0x168] sm:$0xff]   ;;  %v1538_v9 = vld [vmem:[%s1662_s10 + $0x170] sm:$0xff]  }
  0x3b   : > { %1362 = vmatpush3.bf16.msra.mxu0 %v1500_v27  ;;  %v1533_v4 = vld [vmem:[%s1662_s10 + $0x1a0] sm:$0xff]   ;;  %v1535_v6 = vld [vmem:[%s1662_s10 + $0x1e8] sm:$0xff]   ;;  %v1539_v10 = vld [vmem:[%s1662_s10 + $0x1f0] sm:$0xff]  }
  0x3c   : > { %1384 = vmatpush3.bf16.msra.mxu1 %v1501_v28  ;;  %1363 = vmatprep.subr.bf16.mxu0 %v1502_v29  ;;  %v1536_v7 = vld [vmem:[%s1662_s10 + $0x128] sm:$0xff]   ;;  %v1540_v11 = vld [vmem:[%s1662_s10 + $0x130] sm:$0xff]   ;;  %v1542_v13 = vld [vmem:[%s1662_s10 + $0x178] sm:$0xff]  }
  0x3d   : > { %1385 = vmatprep.subr.bf16.mxu1 %v1503_v30  ;;  %v1537_v8 = vld [vmem:[%s1662_s10 + $0x1a8] sm:$0xff]   ;;  %v1541_v12 = vld [vmem:[%s1662_s10 + $0x1b0] sm:$0xff]   ;;  %v1543_v14 = vld [vmem:[%s1662_s10 + $0x1f8] sm:$0xff]  }
  0x3e   : > { %v1544_v15 = vld [vmem:[%s1662_s10 + $0x138] sm:$0xff]   ;;  %v344_v17 = vld [vmem:[%s1664_s11 + $0x10] sm:$0xff]  ;;  %v345_v21 = vld [vmem:[%s1664_s11 + $0x18] sm:$0xff] }
  0x3f   : > { %1364 = vmatpush3.bf16.msra.mxu0 %v1504_v31  ;;  %v1545_v16 = vld [vmem:[%s1662_s10 + $0x1b8] sm:$0xff]   ;;  %v348_v18 = vld [vmem:[%s1664_s11 + $0x30] sm:$0xff]  ;;  %v349_v22 = vld [vmem:[%s1664_s11 + $0x38] sm:$0xff] }
  0x40   : > { %1386 = vmatpush3.bf16.msra.mxu1 %v1505_v32  ;;  %1365 = vmatprep.subr.bf16.mxu0 %v1506_v33  ;;  %v1269_v19 = vcombine.low %v344_v17, %v348_v18  ;;  %v1270_v20 = vcombine.high %v344_v17, %v348_v18  ;;  %v1271_v23 = vcombine.low %v345_v21, %v349_v22 }
  0x41   : > { %1387 = vmatprep.subr.bf16.mxu1 %v1507_v34  ;;  %v1272_v24 = vcombine.high %v345_v21, %v349_v22 }
  0x43   : > { %1366 = vmatpush3.bf16.msra.mxu0 %v1508_v35 }
  0x44   : > { %1388 = vmatpush3.bf16.msra.mxu1 %v1509_v36  ;;  %1367 = vmatprep.subr.bf16.mxu0 %v1510_v37 }
  0x45   : > { %1389 = vmatprep.subr.bf16.mxu1 %v1511_v38 }
  0x47   : > { %1368 = vmatpush3.bf16.msra.mxu0 %v1512_v39 }
  0x48   : > { %1390 = vmatpush3.bf16.msra.mxu1 %v1513_v40  ;;  %1397 = vmatprep.subr.bf16.mxu0 %v1514_v49 }
  0x49   : > { %1419 = vmatprep.subr.bf16.mxu1 %v1515_v50 }
  0x4a   : > { %935 = vmatmul.mubr.bf16.vlgmr.msra.gmra.mrb[0].mxu0 %v1265_v44 }
  0x4b   : > { %976 = vmatmul.mubr.bf16.vlgmr.msra.gmra.mrb[0].mxu1 %v1267_v47  ;;  %1398 = vmatpush3.bf16.msra.mxu0 %v1516_v51  ;;  %v340_v51 = vld [vmem:[#allocation2] sm:$0xff] }
  0x4c   : > { %1420 = vmatpush3.bf16.msra.mxu1 %v1517_v52  ;;  %1399 = vmatprep.subr.bf16.mxu0 %v1518_v53 }
  0x4d   : > { %1421 = vmatprep.subr.bf16.mxu1 %v1519_v54  ;;  %1016 = vmatprep.mubr.bf16.mxu0 %v1270_v20 }
  0x4e   : > { %1057 = vmatprep.mubr.bf16.mxu1 %v1272_v24 }
  0x4f   : > { %1400 = vmatpush3.bf16.msra.mxu0 %v1520_v55  ;;  %v341_v55 = vld [vmem:[#allocation2 + $0x8] sm:$0xff] }
  0x50   : > { %1422 = vmatpush3.bf16.msra.mxu1 %v1521_v56  ;;  %1401 = vmatprep.subr.bf16.mxu0 %v1522_v57 }
  0x51   : > { %1423 = vmatprep.subr.bf16.mxu1 %v1523_v58 }
  0x53   : > { %1402 = vmatpush3.bf16.msra.mxu0 %v1524_v59 }
  0x54   : > { %1424 = vmatpush3.bf16.msra.mxu1 %v1525_v60  ;;  %1403 = vmatprep.subr.bf16.mxu0 %v1526_v61 }
  0x55   : > { %1425 = vmatprep.subr.bf16.mxu1 %v1527_v62 }
  0x57   : > { %1404 = vmatpush3.bf16.msra.mxu0 %v1528_v63 }
  0x58   : > { %1426 = vmatpush3.bf16.msra.mxu1 %v1529_v0  ;;  %1405 = vmatprep.subr.bf16.mxu0 %v1530_v1 }
  0x59   : > { %1427 = vmatprep.subr.bf16.mxu1 %v1531_v2 }
  0x5b   : > { %1406 = vmatpush3.bf16.msra.mxu0 %v1532_v3 }
  0x5c   : > { %1428 = vmatpush3.bf16.msra.mxu1 %v1533_v4  ;;  %1407 = vmatprep.subr.bf16.mxu0 %v1534_v5 }
  0x5d   : > { %1429 = vmatprep.subr.bf16.mxu1 %v1535_v6 }
  0x5f   : > { %1408 = vmatpush3.bf16.msra.mxu0 %v1536_v7 }
  0x60   : > { %1430 = vmatpush3.bf16.msra.mxu1 %v1537_v8  ;;  %1409 = vmatprep.subr.bf16.mxu0 %v1538_v9 }
  0x61   : > { %1431 = vmatprep.subr.bf16.mxu1 %v1539_v10 }
  0x63   : > { %1410 = vmatpush3.bf16.msra.mxu0 %v1540_v11 }
  0x64   : > { %1432 = vmatpush3.bf16.msra.mxu1 %v1541_v12  ;;  %1411 = vmatprep.subr.bf16.mxu0 %v1542_v13 }
  0x65   : > { %1433 = vmatprep.subr.bf16.mxu1 %v1543_v14 }
  0x67   : > { %1412 = vmatpush3.bf16.msra.mxu0 %v1544_v15 }
  0x68   : > { %1434 = vmatpush3.bf16.msra.mxu1 %v1545_v16 }
  0x6a   : > { %1017 = vmatmul.mubr.bf16.vlgmr.msra.gmra.mrb[4].mxu0 %v1269_v19 }
  0x6b   : > { %1058 = vmatmul.mubr.bf16.vlgmr.msra.gmra.mrb[4].mxu1 %v1271_v23 }
 0x11d   : > { %v1369_v25 = vpop.f32.mrb[0].mxu0 }
 0x11e   : > { %v1391_v26 = vpop.f32.mrb[0].mxu1  ;;  %v1370_v27 = vpop.f32.mrb[1].mxu0 }
 0x11f   : > { %v1371_v28 = vadd.f32 %v1370_v27, %v1369_v25  ;;  %v1392_v29 = vpop.f32.mrb[1].mxu1  ;;  %v1372_v30 = vpop.f32.mrb[2].mxu0 }
 0x120   : > { %v1393_v31 = vadd.f32 %v1392_v29, %v1391_v26  ;;  %v1394_v32 = vpop.f32.mrb[2].mxu1  ;;  %v1373_v33 = vpop.f32.mrb[3].mxu0 }
 0x121   : > { %v1374_v34 = vadd.f32 %v1373_v33, %v1372_v30  ;;  %v1395_v35 = vpop.f32.mrb[3].mxu1 }
 0x122   : > { %v978_v36 = vadd.f32 %v1393_v31, %v1371_v28  ;;  %v1396_v37 = vadd.f32 %v1395_v35, %v1394_v32 }
 0x124   : > { %v981_v38 = vadd.f32 %v1396_v37, %v1374_v34 }
 0x13d   : > { %v1413_v39 = vpop.f32.mrb[4].mxu0 }
 0x13e   : > { %v1435_v40 = vpop.f32.mrb[4].mxu1  ;;  %v1414_v41 = vpop.f32.mrb[5].mxu0 }
 0x13f   : > { %v1415_v42 = vadd.f32 %v1414_v41, %v1413_v39  ;;  %v1436_v43 = vpop.f32.mrb[5].mxu1  ;;  %v1416_v44 = vpop.f32.mrb[6].mxu0 }
 0x140   : > { %v1437_v45 = vadd.f32 %v1436_v43, %v1435_v40  ;;  %v1438_v46 = vpop.f32.mrb[6].mxu1  ;;  %v1417_v47 = vpop.f32.mrb[7].mxu0 }
 0x141   : > { %v1019_v48 = vadd.f32 %v1415_v42, %v978_v36  ;;  %v1418_v49 = vadd.f32 %v1417_v47, %v1416_v44  ;;  %v1439_v50 = vpop.f32.mrb[7].mxu1 }
 0x142   : > { %v1440_v52 = vadd.f32 %v1439_v50, %v1438_v46 }
 0x143   : > { %v1060_v53 = vadd.f32 %v1437_v45, %v1019_v48  ;;  %v1022_v54 = vadd.f32 %v1418_v49, %v981_v38  ;;  %1073 = sbr.rel (%p1337_p11) target bundleno = 354 (0x162), region = 63 }
 0x145   : > { %v1066_v56 = vadd.f32 %v1060_v53, %v340_v51  ;;  %v1063_v57 = vadd.f32 %v1440_v52, %v1022_v54 }
 0x147   : > { %1068 = vst [vmem:[#allocation2] sm:$0xff] %v1066_v56  ;;  %v1067_v58 = vadd.f32 %v1063_v57, %v341_v55 }
 0x149   : > { %1069 = vst [vmem:[#allocation2 + $0x8] sm:$0xff] %v1067_v58 }
 0x14e   : > { %v1074_v59 = vld [vmem:[#allocation2] sm:$0xff] }
 0x14f   : > { %v1094_v63 = vmul.f32 %v1074_v59, %v1074_v59 }
 0x150   : > { %v1075_v60 = vld [vmem:[#allocation2 + $0x8] sm:$0xff] }
 0x151   : > { %v1351_v61 = vpack.c.bf16 %v1075_v60, %v1074_v59  ;;  %v1086_v62 = vadd.f32 %v1075_v60, %v1074_v59  ;;  %v1095_v0 = vmul.f32 %v1075_v60, %v1075_v60 }
 0x153   : > { %1352 = vst [vmem:[%s1767_s3] sm:$0xff] %v1351_v61   ;;  %v1087_v1 = vrot.slane %v1086_v62, 4  ;;  %v1096_v2 = vadd.f32 %v1095_v0, %v1094_v63 }
 0x155   : > { %v1088_v3 = vadd.f32 %v1087_v1, %v1086_v62  ;;  %v1097_v4 = vrot.slane %v1096_v2, 4 }
 0x157   : > { %v1089_v5 = vrot.slane %v1088_v3, 2  ;;  %v1098_v6 = vadd.f32 %v1097_v4, %v1096_v2 }
 0x159   : > { %v1090_v7 = vadd.f32 %v1089_v5, %v1088_v3  ;;  %v1099_v8 = vrot.slane %v1098_v6, 2 }
 0x15b   : > { %v1091_v9 = vrot.slane %v1090_v7, 1  ;;  %v1100_v10 = vadd.f32 %v1099_v8, %v1098_v6 }
 0x15d   : > { %v1092_v11 = vadd.f32 %v1091_v9, %v1090_v7  ;;  %v1101_v12 = vrot.slane %v1100_v10, 1 }
 0x15f   : > { %1093 = vst [vmem:[%s1768_s4] sm:$0x1] %v1092_v11  ;;  %v1102_v13 = vadd.f32 %v1101_v12, %v1100_v10 }
 0x161   : > { %1103 = vst [vmem:[%s1768_s4 + $0x1] sm:$0x1] %v1102_v13 }
 0x162 PF: > { %s15_s19 = sadd.s32 1, %s1584_s19   ;;  %s1769_s15 = smov %s1572_s16 }
 0x163   : > { %p12_p12 = scmp.ge.s32.totalorder %s15_s19, 4   ;;  %s1770_s16 = smov %s1647_s22 }
 0x164   : > { %s1771_s17 = smov %s1580_s18  ;;  %s1772_s18 = smov %s1774_s2 }
 0x165   :  { %14 = sbr.rel (!%p12_p12) target bundleno = 3 (0x3), region = 116 }

// kernel: _lambda_.8
= control target key start
LH: loop header
LB: loop body
LE: loop exit
PB: predicated region body
PF: predicated region fallthrough
CT: control target
= control target key end

     0   :  { %s1612_s15 = smov 0   ;;  %s1614_s16 = smov 0   ;;  %s1764_s0 = inlined_call_operand.vmem [shape: bf16[16,4096], index: 0, kind: input, shape index: {}]   ;;  %s1765_s1 = inlined_call_operand.vmem [shape: bf16[4096,128], index: 1, kind: input, shape index: {}]   ;;  %s1766_s2 = inlined_call_operand.vmem [shape: f32[1,128], index: 2, kind: input, shape index: {}]   ;;  %s1767_s3 = inlined_call_operand.vmem [shape: bf16[16,128], index: 3, kind: output, shape index: {0}]   ;;  %s1768_s4 = inlined_call_operand.vmem [shape: f32[1,2,128], index: 4, kind: output, shape index: {1}]  }
   0x1   :  { %s1616_s17 = smov 0   ;;  %s1618_s18 = smov 0  }
   0x2   :  { %s1620_s19 = smov 0  }
   0x3 LB: > { %s27_s2 = sadd.s32 1, %s1580_s18  ;;  %p50_p1 = scmp.ne.s32.totalorder %s1572_s16, %s1568_s15  ;;  %s1584_s19 = sphi %s1620_s19, %s15_s19   ;;  %s1580_s18 = sphi %s1618_s18, %s1772_s18   ;;  %s1576_s17 = sphi %s1616_s17, %s1771_s17   ;;  %s1572_s16 = sphi %s1614_s16, %s1770_s16   ;;  %s1568_s15 = sphi %s1612_s15, %s1769_s15  }
   0x4   : > { %p28_p0 = scmp.ge.s32.totalorder %s27_s2, 4  ;;  %p51_p2 = scmp.eq.s32.totalorder %s1584_s19, 0 }
   0x5   : > { %s43_s21 = sadd.s32 1, %s1572_s16  ;;  %p1256_p5 = scmp.ge.s32.totalorder %s1584_s19, 4 }
   0x6   : > { %s1774_s2 = smov (%p28_p0, %s27_s2), 0  ;;  %p52_p3 = por %p51_p2, %p50_p1 }
   0x7   : > { %s39_s20 = ssub.s32 %s1580_s18, %s1774_s2  ;;  %192 = sbr.rel (%p1256_p5) target bundleno = 22 (0x16), region = 20 }
   0x8   : > { %p41_p4 = scmp.eq.s32.totalorder %s39_s20, 0 }
   0xa   : > { %s1647_s22 = scalar_select %p41_p4, %s1572_s16, %s43_s21  }
   0xe   : > { %195 = sbr.rel (!%p52_p3) target bundleno = 22 (0x16), region = 24  ;;  %s197_s23 = sand.u32 (%p52_p3), 1, %s1572_s16  }
   0xf   : > { %s1345_s24 = sshll.u32 (%p52_p3), %s1580_s18, 5  ;;  %s1257_s25 = sshll.u32 (%p52_p3), %s197_s23, 6 }
  0x10   : > { %s205_s28 = scalar_lea.vmem (%p52_p3), %s1764_s0, %s1345_s24  ;;  %s199_s29 = scalar_lea.vmem (%p52_p3), [#allocation3], %s1257_s25 }
  0x11   : > { %v218_v0 = vld [vmem:[%s205_s28] sm:$0xff] (%p52_p3)  ;;  %v220_v1 = vld [vmem:[%s205_s28 + $0x8] sm:$0xff] (%p52_p3)  ;;  %v222_v2 = vld [vmem:[%s205_s28 + $0x10] sm:$0xff] (%p52_p3) }
  0x12   : > { %219 = vst [vmem:[%s199_s29] sm:$0xff] (%p52_p3), %v218_v0  ;;  %221 = vst [vmem:[%s199_s29 + $0x8] sm:$0xff] (%p52_p3), %v220_v1  ;;  %v224_v3 = vld [vmem:[%s205_s28 + $0x18] sm:$0xff] (%p52_p3)  ;;  %v226_v4 = vld [vmem:[%s205_s28 + $0x80] sm:$0xff] (%p52_p3) }
  0x13   : > { %223 = vst [vmem:[%s199_s29 + $0x10] sm:$0xff] (%p52_p3), %v222_v2  ;;  %v228_v5 = vld [vmem:[%s205_s28 + $0x88] sm:$0xff] (%p52_p3)  ;;  %225 = vst [vmem:[%s199_s29 + $0x18] sm:$0xff] (%p52_p3), %v224_v3  ;;  %v230_v6 = vld [vmem:[%s205_s28 + $0x90] sm:$0xff] (%p52_p3) }
  0x14   : > { %227 = vst [vmem:[%s199_s29 + $0x20] sm:$0xff] (%p52_p3), %v226_v4  ;;  %229 = vst [vmem:[%s199_s29 + $0x28] sm:$0xff] (%p52_p3), %v228_v5  ;;  %v232_v7 = vld [vmem:[%s205_s28 + $0x98] sm:$0xff] (%p52_p3) }
  0x15   : > { %231 = vst [vmem:[%s199_s29 + $0x30] sm:$0xff] %v230_v6  ;;  %233 = vst [vmem:[%s199_s29 + $0x38] sm:$0xff] %v232_v7 }
  0x16 PF: > { %p1260_p6 = scmp.ge.s32.totalorder %s1584_s19, 1  ;;  %p250_p7 = scmp.lt.s32.totalorder %s1584_s19, 5 }
  0x18   : > { %p251_p8 = pnand %p1260_p6, %p250_p7 }
  0x19   : > { %s257_s30 = sand.u32 (!%p251_p8), 1, %s1568_s15   ;;  %s1262_s5 = sshll.u32 (!%p251_p8), %s1576_s17, 7 }
  0x1a   : > { %254 = sbr.rel (%p251_p8) target bundleno = 354 (0x162), region = 51  ;;  %s1261_s6 = sshll.u32 (!%p251_p8), %s257_s30, 6 }
  0x1b   : > { %p306_p9 = scmp.lt.s32.totalorder (!%p251_p8), %s1262_s5, 511  ;;  %s1664_s11 = scalar_lea.vmem (!%p251_p8), [#allocation3], %s1261_s6 }
  0x1c   : > { %p1264_p10 = scmp.ne.s32.totalorder (!%p251_p8), %s1576_s17, 0 }
  0x21   : > { %s1776_s5 = smov (!%p306_p9, %s1262_s5), 511  ;;  %337 = sbr.rel (%p1264_p10) target bundleno = 40 (0x28), region = 59 }
  0x22   : > { %s1263_s7 = sshll.u32 %s1776_s5, 2  ;;  %v1586_v8 = vmov (!%p1264_p10), 0.0  }
  0x23   : > { %s1662_s10 = scalar_lea.vmem %s1765_s1, %s1263_s7  ;;  %338 = vst [vmem:[#allocation2] sm:$0xff] (!%p1264_p10), %v1586_v8  ;;  %339 = vst [vmem:[#allocation2 + $0x8] sm:$0xff] (!%p1264_p10), %v1586_v8 }
  0x28 PF: > { %v1482_v9 = vld [vmem:[%s1662_s10 + $0x40] sm:$0xff]   ;;  %v1486_v13 = vld [vmem:[%s1662_s10 + $0x48] sm:$0xff]   ;;  %v1490_v17 = vld [vmem:[%s1662_s10 + $0x50] sm:$0xff]   ;;  %p1337_p11 = scmp.ne.s32.totalorder %s1576_s17, 3 }
  0x29   : > { %v1483_v10 = vld [vmem:[%s1662_s10 + $0xc0] sm:$0xff]   ;;  %1353 = vmatprep.subr.bf16.mxu0 %v1482_v9  ;;  %v1487_v14 = vld [vmem:[%s1662_s10 + $0xc8] sm:$0xff]   ;;  %v1491_v18 = vld [vmem:[%s1662_s10 + $0xd0] sm:$0xff]  }
  0x2a   : > { %v1484_v11 = vld [vmem:[%s1662_s10] sm:$0xff]   ;;  %1375 = vmatprep.subr.bf16.mxu1 %v1483_v10  ;;  %v1488_v15 = vld [vmem:[%s1662_s10 + $0x8] sm:$0xff]   ;;  %v1492_v19 = vld [vmem:[%s1662_s10 + $0x10] sm:$0xff]  }
  0x2b   : > { %v1485_v12 = vld [vmem:[%s1662_s10 + $0x80] sm:$0xff]   ;;  %1354 = vmatpush3.bf16.msra.mxu0 %v1484_v11  ;;  %v1489_v16 = vld [vmem:[%s1662_s10 + $0x88] sm:$0xff]   ;;  %v1493_v20 = vld [vmem:[%s1662_s10 + $0x90] sm:$0xff]  }
  0x2c   : > { %1376 = vmatpush3.bf16.msra.mxu1 %v1485_v12  ;;  %1355 = vmatprep.subr.bf16.mxu0 %v1486_v13  ;;  %v1494_v21 = vld [vmem:[%s1662_s10 + $0x58] sm:$0xff]   ;;  %v1498_v25 = vld [vmem:[%s1662_s10 + $0x60] sm:$0xff]   ;;  %v1502_v29 = vld [vmem:[%s1662_s10 + $0x68] sm:$0xff]  }
  0x2d   : > { %1377 = vmatprep.subr.bf16.mxu1 %v1487_v14  ;;  %v1495_v22 = vld [vmem:[%s1662_s10 + $0xd8] sm:$0xff]   ;;  %v1499_v26 = vld [vmem:[%s1662_s10 + $0xe0] sm:$0xff]   ;;  %v1503_v30 = vld [vmem:[%s1662_s10 + $0xe8] sm:$0xff]  }
  0x2e   : > { %v1496_v23 = vld [vmem:[%s1662_s10 + $0x18] sm:$0xff]   ;;  %v1500_v27 = vld [vmem:[%s1662_s10 + $0x20] sm:$0xff]   ;;  %v1504_v31 = vld [vmem:[%s1662_s10 + $0x28] sm:$0xff]  }
  0x2f   : > { %1356 = vmatpush3.bf16.msra.mxu0 %v1488_v15  ;;  %v1497_v24 = vld [vmem:[%s1662_s10 + $0x98] sm:$0xff]   ;;  %v1501_v28 = vld [vmem:[%s1662_s10 + $0xa0] sm:$0xff]   ;;  %v1505_v32 = vld [vmem:[%s1662_s10 + $0xa8] sm:$0xff]  }
  0x30   : > { %1378 = vmatpush3.bf16.msra.mxu1 %v1489_v16  ;;  %1357 = vmatprep.subr.bf16.mxu0 %v1490_v17  ;;  %v1506_v33 = vld [vmem:[%s1662_s10 + $0x70] sm:$0xff]   ;;  %v1510_v37 = vld [vmem:[%s1662_s10 + $0x78] sm:$0xff]   ;;  %v1514_v49 = vld [vmem:[%s1662_s10 + $0x140] sm:$0xff]  }
  0x31   : > { %1379 = vmatprep.subr.bf16.mxu1 %v1491_v18  ;;  %v1507_v34 = vld [vmem:[%s1662_s10 + $0xf0] sm:$0xff]   ;;  %v1511_v38 = vld [vmem:[%s1662_s10 + $0xf8] sm:$0xff]   ;;  %v1515_v50 = vld [vmem:[%s1662_s10 + $0x1c0] sm:$0xff]  }
  0x32   : > { %v1508_v35 = vld [vmem:[%s1662_s10 + $0x30] sm:$0xff]   ;;  %v1512_v39 = vld [vmem:[%s1662_s10 + $0x38] sm:$0xff]   ;;  %v1516_v51 = vld [vmem:[%s1662_s10 + $0x100] sm:$0xff]  }
  0x33   : > { %1358 = vmatpush3.bf16.msra.mxu0 %v1492_v19  ;;  %v1509_v36 = vld [vmem:[%s1662_s10 + $0xb0] sm:$0xff]   ;;  %v1513_v40 = vld [vmem:[%s1662_s10 + $0xb8] sm:$0xff]   ;;  %v1517_v52 = vld [vmem:[%s1662_s10 + $0x180] sm:$0xff]  }
  0x34   : > { %1380 = vmatpush3.bf16.msra.mxu1 %v1493_v20  ;;  %1359 = vmatprep.subr.bf16.mxu0 %v1494_v21  ;;  %v342_v41 = vld [vmem:[%s1664_s11] sm:$0xff]  ;;  %v343_v43 = vld [vmem:[%s1664_s11 + $0x8] sm:$0xff]  ;;  %v1518_v53 = vld [vmem:[%s1662_s10 + $0x148] sm:$0xff]  }
  0x35   : > { %1381 = vmatprep.subr.bf16.mxu1 %v1495_v22  ;;  %v346_v42 = vld [vmem:[%s1664_s11 + $0x20] sm:$0xff]  ;;  %v347_v46 = vld [vmem:[%s1664_s11 + $0x28] sm:$0xff]  ;;  %v1519_v54 = vld [vmem:[%s1662_s10 + $0x1c8] sm:$0xff]  }
  0x36   : > { %v1265_v44 = vcombine.low %v342_v41, %v346_v42  ;;  %v1266_v45 = vcombine.high %v342_v41, %v346_v42  ;;  %v1267_v47 = vcombine.low %v343_v43, %v347_v46  ;;  %v1268_v48 = vcombine.high %v343_v43, %v347_v46  ;;  %v1520_v55 = vld [vmem:[%s1662_s10 + $0x108] sm:$0xff]   ;;  %v1522_v57 = vld [vmem:[%s1662_s10 + $0x150] sm:$0xff]   ;;  %v1526_v61 = vld [vmem:[%s1662_s10 + $0x158] sm:$0xff]  }
  0x37   : > { %1360 = vmatpush3.bf16.msra.mxu0 %v1496_v23  ;;  %v1521_v56 = vld [vmem:[%s1662_s10 + $0x188] sm:$0xff]   ;;  %v1523_v58 = vld [vmem:[%s1662_s10 + $0x1d0] sm:$0xff]   ;;  %v1527_v62 = vld [vmem:[%s1662_s10 + $0x1d8] sm:$0xff]  }
  0x38   : > { %1382 = vmatpush3.bf16.msra.mxu1 %v1497_v24  ;;  %1361 = vmatprep.subr.bf16.mxu0 %v1498_v25  ;;  %v1524_v59 = vld [vmem:[%s1662_s10 + $0x110] sm:$0xff]   ;;  %v1528_v63 = vld [vmem:[%s1662_s10 + $0x118] sm:$0xff]   ;;  %v1530_v1 = vld [vmem:[%s1662_s10 + $0x160] sm:$0xff]  }
  0x39   : > { %1383 = vmatprep.subr.bf16.mxu1 %v1499_v26  ;;  %934 = vmatprep.mubr.bf16.mxu0 %v1266_v45  ;;  %v1525_v60 = vld [vmem:[%s1662_s10 + $0x190] sm:$0xff]   ;;  %v1529_v0 = vld [vmem:[%s1662_s10 + $0x198] sm:$0xff]   ;;  %v1531_v2 = vld [vmem:[%s1662_s10 + $0x1e0] sm:$0xff]  }
  0x3a   : > { %975 = vmatprep.mubr.bf16.mxu1 %v1268_v48  ;;  %v1532_v3 = vld [vmem:[%s1662_s10 + $0x120] sm:$0xff]   ;;  %v1534_v5 = vld [vmem:[%s1662_s10 + $0x168] sm:$0xff]   ;;  %v1538_v9 = vld [vmem:[%s1662_s10 + $0x170] sm:$0xff]  }
  0x3b   : > { %1362 = vmatpush3.bf16.msra.mxu0 %v1500_v27  ;;  %v1533_v4 = vld [vmem:[%s1662_s10 + $0x1a0] sm:$0xff]   ;;  %v1535_v6 = vld [vmem:[%s1662_s10 + $0x1e8] sm:$0xff]   ;;  %v1539_v10 = vld [vmem:[%s1662_s10 + $0x1f0] sm:$0xff]  }
  0x3c   : > { %1384 = vmatpush3.bf16.msra.mxu1 %v1501_v28  ;;  %1363 = vmatprep.subr.bf16.mxu0 %v1502_v29  ;;  %v1536_v7 = vld [vmem:[%s1662_s10 + $0x128] sm:$0xff]   ;;  %v1540_v11 = vld [vmem:[%s1662_s10 + $0x130] sm:$0xff]   ;;  %v1542_v13 = vld [vmem:[%s1662_s10 + $0x178] sm:$0xff]  }
  0x3d   : > { %1385 = vmatprep.subr.bf16.mxu1 %v1503_v30  ;;  %v1537_v8 = vld [vmem:[%s1662_s10 + $0x1a8] sm:$0xff]   ;;  %v1541_v12 = vld [vmem:[%s1662_s10 + $0x1b0] sm:$0xff]   ;;  %v1543_v14 = vld [vmem:[%s1662_s10 + $0x1f8] sm:$0xff]  }
  0x3e   : > { %v1544_v15 = vld [vmem:[%s1662_s10 + $0x138] sm:$0xff]   ;;  %v344_v17 = vld [vmem:[%s1664_s11 + $0x10] sm:$0xff]  ;;  %v345_v21 = vld [vmem:[%s1664_s11 + $0x18] sm:$0xff] }
  0x3f   : > { %1364 = vmatpush3.bf16.msra.mxu0 %v1504_v31  ;;  %v1545_v16 = vld [vmem:[%s1662_s10 + $0x1b8] sm:$0xff]   ;;  %v348_v18 = vld [vmem:[%s1664_s11 + $0x30] sm:$0xff]  ;;  %v349_v22 = vld [vmem:[%s1664_s11 + $0x38] sm:$0xff] }
  0x40   : > { %1386 = vmatpush3.bf16.msra.mxu1 %v1505_v32  ;;  %1365 = vmatprep.subr.bf16.mxu0 %v1506_v33  ;;  %v1269_v19 = vcombine.low %v344_v17, %v348_v18  ;;  %v1270_v20 = vcombine.high %v344_v17, %v348_v18  ;;  %v1271_v23 = vcombine.low %v345_v21, %v349_v22 }
  0x41   : > { %1387 = vmatprep.subr.bf16.mxu1 %v1507_v34  ;;  %v1272_v24 = vcombine.high %v345_v21, %v349_v22 }
  0x43   : > { %1366 = vmatpush3.bf16.msra.mxu0 %v1508_v35 }
  0x44   : > { %1388 = vmatpush3.bf16.msra.mxu1 %v1509_v36  ;;  %1367 = vmatprep.subr.bf16.mxu0 %v1510_v37 }
  0x45   : > { %1389 = vmatprep.subr.bf16.mxu1 %v1511_v38 }
  0x47   : > { %1368 = vmatpush3.bf16.msra.mxu0 %v1512_v39 }
  0x48   : > { %1390 = vmatpush3.bf16.msra.mxu1 %v1513_v40  ;;  %1397 = vmatprep.subr.bf16.mxu0 %v1514_v49 }
  0x49   : > { %1419 = vmatprep.subr.bf16.mxu1 %v1515_v50 }
  0x4a   : > { %935 = vmatmul.mubr.bf16.vlgmr.msra.gmra.mrb[0].mxu0 %v1265_v44 }
  0x4b   : > { %976 = vmatmul.mubr.bf16.vlgmr.msra.gmra.mrb[0].mxu1 %v1267_v47  ;;  %1398 = vmatpush3.bf16.msra.mxu0 %v1516_v51  ;;  %v340_v51 = vld [vmem:[#allocation2] sm:$0xff] }
  0x4c   : > { %1420 = vmatpush3.bf16.msra.mxu1 %v1517_v52  ;;  %1399 = vmatprep.subr.bf16.mxu0 %v1518_v53 }
  0x4d   : > { %1421 = vmatprep.subr.bf16.mxu1 %v1519_v54  ;;  %1016 = vmatprep.mubr.bf16.mxu0 %v1270_v20 }
  0x4e   : > { %1057 = vmatprep.mubr.bf16.mxu1 %v1272_v24 }
  0x4f   : > { %1400 = vmatpush3.bf16.msra.mxu0 %v1520_v55  ;;  %v341_v55 = vld [vmem:[#allocation2 + $0x8] sm:$0xff] }
  0x50   : > { %1422 = vmatpush3.bf16.msra.mxu1 %v1521_v56  ;;  %1401 = vmatprep.subr.bf16.mxu0 %v1522_v57 }
  0x51   : > { %1423 = vmatprep.subr.bf16.mxu1 %v1523_v58 }
  0x53   : > { %1402 = vmatpush3.bf16.msra.mxu0 %v1524_v59 }
  0x54   : > { %1424 = vmatpush3.bf16.msra.mxu1 %v1525_v60  ;;  %1403 = vmatprep.subr.bf16.mxu0 %v1526_v61 }
  0x55   : > { %1425 = vmatprep.subr.bf16.mxu1 %v1527_v62 }
  0x57   : > { %1404 = vmatpush3.bf16.msra.mxu0 %v1528_v63 }
  0x58   : > { %1426 = vmatpush3.bf16.msra.mxu1 %v1529_v0  ;;  %1405 = vmatprep.subr.bf16.mxu0 %v1530_v1 }
  0x59   : > { %1427 = vmatprep.subr.bf16.mxu1 %v1531_v2 }
  0x5b   : > { %1406 = vmatpush3.bf16.msra.mxu0 %v1532_v3 }
  0x5c   : > { %1428 = vmatpush3.bf16.msra.mxu1 %v1533_v4  ;;  %1407 = vmatprep.subr.bf16.mxu0 %v1534_v5 }
  0x5d   : > { %1429 = vmatprep.subr.bf16.mxu1 %v1535_v6 }
  0x5f   : > { %1408 = vmatpush3.bf16.msra.mxu0 %v1536_v7 }
  0x60   : > { %1430 = vmatpush3.bf16.msra.mxu1 %v1537_v8  ;;  %1409 = vmatprep.subr.bf16.mxu0 %v1538_v9 }
  0x61   : > { %1431 = vmatprep.subr.bf16.mxu1 %v1539_v10 }
  0x63   : > { %1410 = vmatpush3.bf16.msra.mxu0 %v1540_v11 }
  0x64   : > { %1432 = vmatpush3.bf16.msra.mxu1 %v1541_v12  ;;  %1411 = vmatprep.subr.bf16.mxu0 %v1542_v13 }
  0x65   : > { %1433 = vmatprep.subr.bf16.mxu1 %v1543_v14 }
  0x67   : > { %1412 = vmatpush3.bf16.msra.mxu0 %v1544_v15 }
  0x68   : > { %1434 = vmatpush3.bf16.msra.mxu1 %v1545_v16 }
  0x6a   : > { %1017 = vmatmul.mubr.bf16.vlgmr.msra.gmra.mrb[4].mxu0 %v1269_v19 }
  0x6b   : > { %1058 = vmatmul.mubr.bf16.vlgmr.msra.gmra.mrb[4].mxu1 %v1271_v23 }
 0x11d   : > { %v1369_v25 = vpop.f32.mrb[0].mxu0 }
 0x11e   : > { %v1391_v26 = vpop.f32.mrb[0].mxu1  ;;  %v1370_v27 = vpop.f32.mrb[1].mxu0 }
 0x11f   : > { %v1371_v28 = vadd.f32 %v1370_v27, %v1369_v25  ;;  %v1392_v29 = vpop.f32.mrb[1].mxu1  ;;  %v1372_v30 = vpop.f32.mrb[2].mxu0 }
 0x120   : > { %v1393_v31 = vadd.f32 %v1392_v29, %v1391_v26  ;;  %v1394_v32 = vpop.f32.mrb[2].mxu1  ;;  %v1373_v33 = vpop.f32.mrb[3].mxu0 }
 0x121   : > { %v1374_v34 = vadd.f32 %v1373_v33, %v1372_v30  ;;  %v1395_v35 = vpop.f32.mrb[3].mxu1 }
 0x122   : > { %v978_v36 = vadd.f32 %v1393_v31, %v1371_v28  ;;  %v1396_v37 = vadd.f32 %v1395_v35, %v1394_v32 }
 0x124   : > { %v981_v38 = vadd.f32 %v1396_v37, %v1374_v34 }
 0x13d   : > { %v1413_v39 = vpop.f32.mrb[4].mxu0 }
 0x13e   : > { %v1435_v40 = vpop.f32.mrb[4].mxu1  ;;  %v1414_v41 = vpop.f32.mrb[5].mxu0 }
 0x13f   : > { %v1415_v42 = vadd.f32 %v1414_v41, %v1413_v39  ;;  %v1436_v43 = vpop.f32.mrb[5].mxu1  ;;  %v1416_v44 = vpop.f32.mrb[6].mxu0 }
 0x140   : > { %v1437_v45 = vadd.f32 %v1436_v43, %v1435_v40  ;;  %v1438_v46 = vpop.f32.mrb[6].mxu1  ;;  %v1417_v47 = vpop.f32.mrb[7].mxu0 }
 0x141   : > { %v1019_v48 = vadd.f32 %v1415_v42, %v978_v36  ;;  %v1418_v49 = vadd.f32 %v1417_v47, %v1416_v44  ;;  %v1439_v50 = vpop.f32.mrb[7].mxu1 }
 0x142   : > { %v1440_v52 = vadd.f32 %v1439_v50, %v1438_v46 }
 0x143   : > { %v1060_v53 = vadd.f32 %v1437_v45, %v1019_v48  ;;  %v1022_v54 = vadd.f32 %v1418_v49, %v981_v38  ;;  %1073 = sbr.rel (%p1337_p11) target bundleno = 354 (0x162), region = 63 }
 0x145   : > { %v1066_v56 = vadd.f32 %v1060_v53, %v340_v51  ;;  %v1063_v57 = vadd.f32 %v1440_v52, %v1022_v54 }
 0x147   : > { %1068 = vst [vmem:[#allocation2] sm:$0xff] %v1066_v56  ;;  %v1067_v58 = vadd.f32 %v1063_v57, %v341_v55 }
 0x149   : > { %1069 = vst [vmem:[#allocation2 + $0x8] sm:$0xff] %v1067_v58 }
 0x14e   : > { %v1074_v59 = vld [vmem:[#allocation2] sm:$0xff] }
 0x14f   : > { %v1094_v63 = vmul.f32 %v1074_v59, %v1074_v59 }
 0x150   : > { %v1075_v60 = vld [vmem:[#allocation2 + $0x8] sm:$0xff] }
 0x151   : > { %v1351_v61 = vpack.c.bf16 %v1075_v60, %v1074_v59  ;;  %v1086_v62 = vadd.f32 %v1075_v60, %v1074_v59  ;;  %v1095_v0 = vmul.f32 %v1075_v60, %v1075_v60 }
 0x153   : > { %1352 = vst [vmem:[%s1767_s3] sm:$0xff] %v1351_v61   ;;  %v1087_v1 = vrot.slane %v1086_v62, 4  ;;  %v1096_v2 = vadd.f32 %v1095_v0, %v1094_v63 }
 0x155   : > { %v1088_v3 = vadd.f32 %v1087_v1, %v1086_v62  ;;  %v1097_v4 = vrot.slane %v1096_v2, 4 }
 0x157   : > { %v1089_v5 = vrot.slane %v1088_v3, 2  ;;  %v1098_v6 = vadd.f32 %v1097_v4, %v1096_v2 }
 0x159   : > { %v1090_v7 = vadd.f32 %v1089_v5, %v1088_v3  ;;  %v1099_v8 = vrot.slane %v1098_v6, 2 }
 0x15b   : > { %v1091_v9 = vrot.slane %v1090_v7, 1  ;;  %v1100_v10 = vadd.f32 %v1099_v8, %v1098_v6 }
 0x15d   : > { %v1092_v11 = vadd.f32 %v1091_v9, %v1090_v7  ;;  %v1101_v12 = vrot.slane %v1100_v10, 1 }
 0x15f   : > { %1093 = vst [vmem:[%s1768_s4] sm:$0x1] %v1092_v11  ;;  %v1102_v13 = vadd.f32 %v1101_v12, %v1100_v10 }
 0x161   : > { %1103 = vst [vmem:[%s1768_s4 + $0x1] sm:$0x1] %v1102_v13 }
 0x162 PF: > { %s15_s19 = sadd.s32 1, %s1584_s19   ;;  %s1769_s15 = smov %s1572_s16 }
 0x163   : > { %p12_p12 = scmp.ge.s32.totalorder %s15_s19, 6   ;;  %s1770_s16 = smov %s1647_s22 }
 0x164   : > { %s1771_s17 = smov %s1580_s18  ;;  %s1772_s18 = smov %s1774_s2 }
 0x165   :  { %14 = sbr.rel (!%p12_p12) target bundleno = 3 (0x3), region = 116 }

// kernel: _lambda_.9
= control target key start
LH: loop header
LB: loop body
LE: loop exit
PB: predicated region body
PF: predicated region fallthrough
CT: control target
= control target key end

     0   :  { %s1497_s12 = smov 0   ;;  %s1499_s13 = smov 0   ;;  %s1649_s0 = inlined_call_operand.vmem [shape: bf16[16,8192], index: 0, kind: input, shape index: {}]   ;;  %s1650_s1 = inlined_call_operand.vmem [shape: bf16[8192,128], index: 1, kind: input, shape index: {}]   ;;  %s1651_s2 = inlined_call_operand.vmem [shape: f32[1,128], index: 2, kind: input, shape index: {}]   ;;  %s1652_s3 = inlined_call_operand.vmem [shape: f32[16,128], index: 3, kind: output, shape index: {}]  }
   0x1   :  { %s1501_s14 = smov 0   ;;  %s1503_s15 = smov 0  }
   0x2   :  { %s1505_s16 = smov 0  }
   0x3 LB: > { %s25_s17 = sadd.s32 1, %s1470_s15  ;;  %p48_p1 = scmp.ne.s32.totalorder %s1462_s13, %s1458_s12  ;;  %s1474_s16 = sphi %s1505_s16, %s13_s16   ;;  %s1470_s15 = sphi %s1503_s15, %s1656_s15   ;;  %s1466_s14 = sphi %s1501_s14, %s1655_s14   ;;  %s1462_s13 = sphi %s1499_s13, %s1654_s13   ;;  %s1458_s12 = sphi %s1497_s12, %s1653_s12  }
   0x4   : > { %p26_p0 = scmp.ge.s32.totalorder %s25_s17, 8  ;;  %p49_p2 = scmp.eq.s32.totalorder %s1474_s16, 0 }
   0x5   : > { %s41_s19 = sadd.s32 1, %s1462_s13  ;;  %p1155_p5 = scmp.ge.s32.totalorder %s1474_s16, 8 }
   0x6   : > { %s1658_s17 = smov (%p26_p0, %s25_s17), 0  ;;  %p50_p3 = por %p49_p2, %p48_p1 }
   0x7   : > { %s37_s18 = ssub.s32 %s1470_s15, %s1658_s17  ;;  %162 = sbr.rel (%p1155_p5) target bundleno = 22 (0x16), region = 20 }
   0x8   : > { %p39_p4 = scmp.eq.s32.totalorder %s37_s18, 0 }
   0xa   : > { %s1532_s20 = scalar_select %p39_p4, %s1462_s13, %s41_s19  }
   0xe   : > { %165 = sbr.rel (!%p50_p3) target bundleno = 22 (0x16), region = 24  ;;  %s167_s21 = sand.u32 (%p50_p3), 1, %s1462_s13  }
   0xf   : > { %s1242_s22 = sshll.u32 (%p50_p3), %s1470_s15, 5  ;;  %s1156_s23 = sshll.u32 (%p50_p3), %s167_s21, 6 }
  0x10   : > { %s175_s26 = scalar_lea.vmem (%p50_p3), %s1649_s0, %s1242_s22  ;;  %s169_s27 = scalar_lea.vmem (%p50_p3), [#allocation3], %s1156_s23 }
  0x11   : > { %v188_v0 = vld [vmem:[%s175_s26] sm:$0xff] (%p50_p3)  ;;  %v190_v1 = vld [vmem:[%s175_s26 + $0x8] sm:$0xff] (%p50_p3)  ;;  %v192_v2 = vld [vmem:[%s175_s26 + $0x10] sm:$0xff] (%p50_p3) }
  0x12   : > { %189 = vst [vmem:[%s169_s27] sm:$0xff] (%p50_p3), %v188_v0  ;;  %191 = vst [vmem:[%s169_s27 + $0x8] sm:$0xff] (%p50_p3), %v190_v1  ;;  %v194_v3 = vld [vmem:[%s175_s26 + $0x18] sm:$0xff] (%p50_p3)  ;;  %v196_v4 = vld [vmem:[%s175_s26 + $0x100] sm:$0xff] (%p50_p3) }
  0x13   : > { %193 = vst [vmem:[%s169_s27 + $0x10] sm:$0xff] (%p50_p3), %v192_v2  ;;  %v198_v5 = vld [vmem:[%s175_s26 + $0x108] sm:$0xff] (%p50_p3)  ;;  %195 = vst [vmem:[%s169_s27 + $0x18] sm:$0xff] (%p50_p3), %v194_v3  ;;  %v200_v6 = vld [vmem:[%s175_s26 + $0x110] sm:$0xff] (%p50_p3) }
  0x14   : > { %197 = vst [vmem:[%s169_s27 + $0x20] sm:$0xff] (%p50_p3), %v196_v4  ;;  %199 = vst [vmem:[%s169_s27 + $0x28] sm:$0xff] (%p50_p3), %v198_v5  ;;  %v202_v7 = vld [vmem:[%s175_s26 + $0x118] sm:$0xff] (%p50_p3) }
  0x15   : > { %201 = vst [vmem:[%s169_s27 + $0x30] sm:$0xff] %v200_v6  ;;  %203 = vst [vmem:[%s169_s27 + $0x38] sm:$0xff] %v202_v7 }
  0x16 PF: > { %p1159_p6 = scmp.ge.s32.totalorder %s1474_s16, 1  ;;  %p220_p7 = scmp.lt.s32.totalorder %s1474_s16, 9 }
  0x18   : > { %p221_p8 = pnand %p1159_p6, %p220_p7 }
  0x19   : > { %s227_s28 = sand.u32 (!%p221_p8), 1, %s1458_s12   ;;  %s1161_s29 = sshll.u32 (!%p221_p8), %s1466_s14, 7 }
  0x1a   : > { %224 = sbr.rel (%p221_p8) target bundleno = 340 (0x154), region = 51  ;;  %s1160_s30 = sshll.u32 (!%p221_p8), %s227_s28, 6 }
  0x1b   : > { %p267_p9 = scmp.lt.s32.totalorder (!%p221_p8), %s1161_s29, 1023  ;;  %s1549_s8 = scalar_lea.vmem (!%p221_p8), [#allocation3], %s1160_s30 }
  0x1c   : > { %p1163_p10 = scmp.ne.s32.totalorder (!%p221_p8), %s1466_s14, 0 }
  0x21   : > { %s1660_s29 = smov (!%p267_p9, %s1161_s29), 1023  ;;  %291 = sbr.rel (%p1163_p10) target bundleno = 40 (0x28), region = 59 }
  0x22   : > { %s1162_s4 = sshll.u32 %s1660_s29, 2  ;;  %v1476_v8 = vmov (!%p1163_p10), 0.0  }
  0x23   : > { %s1547_s7 = scalar_lea.vmem %s1650_s1, %s1162_s4  ;;  %292 = vst [vmem:[#allocation2] sm:$0xff] (!%p1163_p10), %v1476_v8  ;;  %293 = vst [vmem:[#allocation2 + $0x8] sm:$0xff] (!%p1163_p10), %v1476_v8 }
  0x28 PF: > { %v1372_v9 = vld [vmem:[%s1547_s7 + $0x40] sm:$0xff]   ;;  %v1376_v13 = vld [vmem:[%s1547_s7 + $0x48] sm:$0xff]   ;;  %v1380_v17 = vld [vmem:[%s1547_s7 + $0x50] sm:$0xff]   ;;  %p1236_p11 = scmp.ne.s32.totalorder %s1466_s14, 7 }
  0x29   : > { %v1373_v10 = vld [vmem:[%s1547_s7 + $0xc0] sm:$0xff]   ;;  %1243 = vmatprep.subr.bf16.mxu0 %v1372_v9  ;;  %v1377_v14 = vld [vmem:[%s1547_s7 + $0xc8] sm:$0xff]   ;;  %v1381_v18 = vld [vmem:[%s1547_s7 + $0xd0] sm:$0xff]  }
  0x2a   : > { %v1374_v11 = vld [vmem:[%s1547_s7] sm:$0xff]   ;;  %1265 = vmatprep.subr.bf16.mxu1 %v1373_v10  ;;  %v1378_v15 = vld [vmem:[%s1547_s7 + $0x8] sm:$0xff]   ;;  %v1382_v19 = vld [vmem:[%s1547_s7 + $0x10] sm:$0xff]  }
  0x2b   : > { %v1375_v12 = vld [vmem:[%s1547_s7 + $0x80] sm:$0xff]   ;;  %1244 = vmatpush3.bf16.msra.mxu0 %v1374_v11  ;;  %v1379_v16 = vld [vmem:[%s1547_s7 + $0x88] sm:$0xff]   ;;  %v1383_v20 = vld [vmem:[%s1547_s7 + $0x90] sm:$0xff]  }
  0x2c   : > { %1266 = vmatpush3.bf16.msra.mxu1 %v1375_v12  ;;  %1245 = vmatprep.subr.bf16.mxu0 %v1376_v13  ;;  %v1384_v21 = vld [vmem:[%s1547_s7 + $0x58] sm:$0xff]   ;;  %v1388_v25 = vld [vmem:[%s1547_s7 + $0x60] sm:$0xff]   ;;  %v1392_v29 = vld [vmem:[%s1547_s7 + $0x68] sm:$0xff]  }
  0x2d   : > { %1267 = vmatprep.subr.bf16.mxu1 %v1377_v14  ;;  %v1385_v22 = vld [vmem:[%s1547_s7 + $0xd8] sm:$0xff]   ;;  %v1389_v26 = vld [vmem:[%s1547_s7 + $0xe0] sm:$0xff]   ;;  %v1393_v30 = vld [vmem:[%s1547_s7 + $0xe8] sm:$0xff]  }
  0x2e   : > { %v1386_v23 = vld [vmem:[%s1547_s7 + $0x18] sm:$0xff]   ;;  %v1390_v27 = vld [vmem:[%s1547_s7 + $0x20] sm:$0xff]   ;;  %v1394_v31 = vld [vmem:[%s1547_s7 + $0x28] sm:$0xff]  }
  0x2f   : > { %1246 = vmatpush3.bf16.msra.mxu0 %v1378_v15  ;;  %v1387_v24 = vld [vmem:[%s1547_s7 + $0x98] sm:$0xff]   ;;  %v1391_v28 = vld [vmem:[%s1547_s7 + $0xa0] sm:$0xff]   ;;  %v1395_v32 = vld [vmem:[%s1547_s7 + $0xa8] sm:$0xff]  }
  0x30   : > { %1268 = vmatpush3.bf16.msra.mxu1 %v1379_v16  ;;  %1247 = vmatprep.subr.bf16.mxu0 %v1380_v17  ;;  %v1396_v33 = vld [vmem:[%s1547_s7 + $0x70] sm:$0xff]   ;;  %v1400_v37 = vld [vmem:[%s1547_s7 + $0x78] sm:$0xff]   ;;  %v1404_v49 = vld [vmem:[%s1547_s7 + $0x140] sm:$0xff]  }
  0x31   : > { %1269 = vmatprep.subr.bf16.mxu1 %v1381_v18  ;;  %v1397_v34 = vld [vmem:[%s1547_s7 + $0xf0] sm:$0xff]   ;;  %v1401_v38 = vld [vmem:[%s1547_s7 + $0xf8] sm:$0xff]   ;;  %v1405_v50 = vld [vmem:[%s1547_s7 + $0x1c0] sm:$0xff]  }
  0x32   : > { %v1398_v35 = vld [vmem:[%s1547_s7 + $0x30] sm:$0xff]   ;;  %v1402_v39 = vld [vmem:[%s1547_s7 + $0x38] sm:$0xff]   ;;  %v1406_v51 = vld [vmem:[%s1547_s7 + $0x100] sm:$0xff]  }
  0x33   : > { %1248 = vmatpush3.bf16.msra.mxu0 %v1382_v19  ;;  %v1399_v36 = vld [vmem:[%s1547_s7 + $0xb0] sm:$0xff]   ;;  %v1403_v40 = vld [vmem:[%s1547_s7 + $0xb8] sm:$0xff]   ;;  %v1407_v52 = vld [vmem:[%s1547_s7 + $0x180] sm:$0xff]  }
  0x34   : > { %1270 = vmatpush3.bf16.msra.mxu1 %v1383_v20  ;;  %1249 = vmatprep.subr.bf16.mxu0 %v1384_v21  ;;  %v296_v41 = vld [vmem:[%s1549_s8] sm:$0xff]  ;;  %v297_v43 = vld [vmem:[%s1549_s8 + $0x8] sm:$0xff]  ;;  %v1408_v53 = vld [vmem:[%s1547_s7 + $0x148] sm:$0xff]  }
  0x35   : > { %1271 = vmatprep.subr.bf16.mxu1 %v1385_v22  ;;  %v300_v42 = vld [vmem:[%s1549_s8 + $0x20] sm:$0xff]  ;;  %v301_v46 = vld [vmem:[%s1549_s8 + $0x28] sm:$0xff]  ;;  %v1409_v54 = vld [vmem:[%s1547_s7 + $0x1c8] sm:$0xff]  }
  0x36   : > { %v1164_v44 = vcombine.low %v296_v41, %v300_v42  ;;  %v1165_v45 = vcombine.high %v296_v41, %v300_v42  ;;  %v1166_v47 = vcombine.low %v297_v43, %v301_v46  ;;  %v1167_v48 = vcombine.high %v297_v43, %v301_v46  ;;  %v1410_v55 = vld [vmem:[%s1547_s7 + $0x108] sm:$0xff]   ;;  %v1412_v57 = vld [vmem:[%s1547_s7 + $0x150] sm:$0xff]   ;;  %v1416_v61 = vld [vmem:[%s1547_s7 + $0x158] sm:$0xff]  }
  0x37   : > { %1250 = vmatpush3.bf16.msra.mxu0 %v1386_v23  ;;  %v1411_v56 = vld [vmem:[%s1547_s7 + $0x188] sm:$0xff]   ;;  %v1413_v58 = vld [vmem:[%s1547_s7 + $0x1d0] sm:$0xff]   ;;  %v1417_v62 = vld [vmem:[%s1547_s7 + $0x1d8] sm:$0xff]  }
  0x38   : > { %1272 = vmatpush3.bf16.msra.mxu1 %v1387_v24  ;;  %1251 = vmatprep.subr.bf16.mxu0 %v1388_v25  ;;  %v1414_v59 = vld [vmem:[%s1547_s7 + $0x110] sm:$0xff]   ;;  %v1418_v63 = vld [vmem:[%s1547_s7 + $0x118] sm:$0xff]   ;;  %v1420_v1 = vld [vmem:[%s1547_s7 + $0x160] sm:$0xff]  }
  0x39   : > { %1273 = vmatprep.subr.bf16.mxu1 %v1389_v26  ;;  %888 = vmatprep.mubr.bf16.mxu0 %v1165_v45  ;;  %v1415_v60 = vld [vmem:[%s1547_s7 + $0x190] sm:$0xff]   ;;  %v1419_v0 = vld [vmem:[%s1547_s7 + $0x198] sm:$0xff]   ;;  %v1421_v2 = vld [vmem:[%s1547_s7 + $0x1e0] sm:$0xff]  }
  0x3a   : > { %929 = vmatprep.mubr.bf16.mxu1 %v1167_v48  ;;  %v1422_v3 = vld [vmem:[%s1547_s7 + $0x120] sm:$0xff]   ;;  %v1424_v5 = vld [vmem:[%s1547_s7 + $0x168] sm:$0xff]   ;;  %v1428_v9 = vld [vmem:[%s1547_s7 + $0x170] sm:$0xff]  }
  0x3b   : > { %1252 = vmatpush3.bf16.msra.mxu0 %v1390_v27  ;;  %v1423_v4 = vld [vmem:[%s1547_s7 + $0x1a0] sm:$0xff]   ;;  %v1425_v6 = vld [vmem:[%s1547_s7 + $0x1e8] sm:$0xff]   ;;  %v1429_v10 = vld [vmem:[%s1547_s7 + $0x1f0] sm:$0xff]  }
  0x3c   : > { %1274 = vmatpush3.bf16.msra.mxu1 %v1391_v28  ;;  %1253 = vmatprep.subr.bf16.mxu0 %v1392_v29  ;;  %v1426_v7 = vld [vmem:[%s1547_s7 + $0x128] sm:$0xff]   ;;  %v1430_v11 = vld [vmem:[%s1547_s7 + $0x130] sm:$0xff]   ;;  %v1432_v13 = vld [vmem:[%s1547_s7 + $0x178] sm:$0xff]  }
  0x3d   : > { %1275 = vmatprep.subr.bf16.mxu1 %v1393_v30  ;;  %v1427_v8 = vld [vmem:[%s1547_s7 + $0x1a8] sm:$0xff]   ;;  %v1431_v12 = vld [vmem:[%s1547_s7 + $0x1b0] sm:$0xff]   ;;  %v1433_v14 = vld [vmem:[%s1547_s7 + $0x1f8] sm:$0xff]  }
  0x3e   : > { %v1434_v15 = vld [vmem:[%s1547_s7 + $0x138] sm:$0xff]   ;;  %v298_v17 = vld [vmem:[%s1549_s8 + $0x10] sm:$0xff]  ;;  %v299_v21 = vld [vmem:[%s1549_s8 + $0x18] sm:$0xff] }
  0x3f   : > { %1254 = vmatpush3.bf16.msra.mxu0 %v1394_v31  ;;  %v1435_v16 = vld [vmem:[%s1547_s7 + $0x1b8] sm:$0xff]   ;;  %v302_v18 = vld [vmem:[%s1549_s8 + $0x30] sm:$0xff]  ;;  %v303_v22 = vld [vmem:[%s1549_s8 + $0x38] sm:$0xff] }
  0x40   : > { %1276 = vmatpush3.bf16.msra.mxu1 %v1395_v32  ;;  %1255 = vmatprep.subr.bf16.mxu0 %v1396_v33  ;;  %v1168_v19 = vcombine.low %v298_v17, %v302_v18  ;;  %v1169_v20 = vcombine.high %v298_v17, %v302_v18  ;;  %v1170_v23 = vcombine.low %v299_v21, %v303_v22 }
  0x41   : > { %1277 = vmatprep.subr.bf16.mxu1 %v1397_v34  ;;  %v1171_v24 = vcombine.high %v299_v21, %v303_v22 }
  0x43   : > { %1256 = vmatpush3.bf16.msra.mxu0 %v1398_v35 }
  0x44   : > { %1278 = vmatpush3.bf16.msra.mxu1 %v1399_v36  ;;  %1257 = vmatprep.subr.bf16.mxu0 %v1400_v37 }
  0x45   : > { %1279 = vmatprep.subr.bf16.mxu1 %v1401_v38 }
  0x47   : > { %1258 = vmatpush3.bf16.msra.mxu0 %v1402_v39 }
  0x48   : > { %1280 = vmatpush3.bf16.msra.mxu1 %v1403_v40  ;;  %1287 = vmatprep.subr.bf16.mxu0 %v1404_v49 }
  0x49   : > { %1309 = vmatprep.subr.bf16.mxu1 %v1405_v50 }
  0x4a   : > { %889 = vmatmul.mubr.bf16.vlgmr.msra.gmra.mrb[0].mxu0 %v1164_v44 }
  0x4b   : > { %930 = vmatmul.mubr.bf16.vlgmr.msra.gmra.mrb[0].mxu1 %v1166_v47  ;;  %1288 = vmatpush3.bf16.msra.mxu0 %v1406_v51  ;;  %v294_v51 = vld [vmem:[#allocation2] sm:$0xff] }
  0x4c   : > { %1310 = vmatpush3.bf16.msra.mxu1 %v1407_v52  ;;  %1289 = vmatprep.subr.bf16.mxu0 %v1408_v53 }
  0x4d   : > { %1311 = vmatprep.subr.bf16.mxu1 %v1409_v54  ;;  %970 = vmatprep.mubr.bf16.mxu0 %v1169_v20 }
  0x4e   : > { %1011 = vmatprep.mubr.bf16.mxu1 %v1171_v24 }
  0x4f   : > { %1290 = vmatpush3.bf16.msra.mxu0 %v1410_v55  ;;  %v295_v55 = vld [vmem:[#allocation2 + $0x8] sm:$0xff] }
  0x50   : > { %1312 = vmatpush3.bf16.msra.mxu1 %v1411_v56  ;;  %1291 = vmatprep.subr.bf16.mxu0 %v1412_v57 }
  0x51   : > { %1313 = vmatprep.subr.bf16.mxu1 %v1413_v58 }
  0x53   : > { %1292 = vmatpush3.bf16.msra.mxu0 %v1414_v59 }
  0x54   : > { %1314 = vmatpush3.bf16.msra.mxu1 %v1415_v60  ;;  %1293 = vmatprep.subr.bf16.mxu0 %v1416_v61  ;;  %v1237_v60 = vld [vmem:[%s1651_s2] ss:$0 sm:$0xff] (!%p1236_p11) }
  0x55   : > { %1315 = vmatprep.subr.bf16.mxu1 %v1417_v62 }
  0x57   : > { %1294 = vmatpush3.bf16.msra.mxu0 %v1418_v63 }
  0x58   : > { %1316 = vmatpush3.bf16.msra.mxu1 %v1419_v0  ;;  %1295 = vmatprep.subr.bf16.mxu0 %v1420_v1 }
  0x59   : > { %1317 = vmatprep.subr.bf16.mxu1 %v1421_v2 }
  0x5b   : > { %1296 = vmatpush3.bf16.msra.mxu0 %v1422_v3 }
  0x5c   : > { %1318 = vmatpush3.bf16.msra.mxu1 %v1423_v4  ;;  %1297 = vmatprep.subr.bf16.mxu0 %v1424_v5 }
  0x5d   : > { %1319 = vmatprep.subr.bf16.mxu1 %v1425_v6 }
  0x5f   : > { %1298 = vmatpush3.bf16.msra.mxu0 %v1426_v7 }
  0x60   : > { %1320 = vmatpush3.bf16.msra.mxu1 %v1427_v8  ;;  %1299 = vmatprep.subr.bf16.mxu0 %v1428_v9 }
  0x61   : > { %1321 = vmatprep.subr.bf16.mxu1 %v1429_v10 }
  0x63   : > { %1300 = vmatpush3.bf16.msra.mxu0 %v1430_v11 }
  0x64   : > { %1322 = vmatpush3.bf16.msra.mxu1 %v1431_v12  ;;  %1301 = vmatprep.subr.bf16.mxu0 %v1432_v13 }
  0x65   : > { %1323 = vmatprep.subr.bf16.mxu1 %v1433_v14 }
  0x67   : > { %1302 = vmatpush3.bf16.msra.mxu0 %v1434_v15 }
  0x68   : > { %1324 = vmatpush3.bf16.msra.mxu1 %v1435_v16 }
  0x6a   : > { %971 = vmatmul.mubr.bf16.vlgmr.msra.gmra.mrb[4].mxu0 %v1168_v19 }
  0x6b   : > { %1012 = vmatmul.mubr.bf16.vlgmr.msra.gmra.mrb[4].mxu1 %v1170_v23 }
 0x11d   : > { %v1259_v25 = vpop.f32.mrb[0].mxu0 }
 0x11e   : > { %v1281_v26 = vpop.f32.mrb[0].mxu1  ;;  %v1260_v27 = vpop.f32.mrb[1].mxu0 }
 0x11f   : > { %v1261_v28 = vadd.f32 %v1260_v27, %v1259_v25  ;;  %v1282_v29 = vpop.f32.mrb[1].mxu1  ;;  %v1262_v30 = vpop.f32.mrb[2].mxu0 }
 0x120   : > { %v1283_v31 = vadd.f32 %v1282_v29, %v1281_v26  ;;  %v1284_v32 = vpop.f32.mrb[2].mxu1  ;;  %v1263_v33 = vpop.f32.mrb[3].mxu0 }
 0x121   : > { %v1264_v34 = vadd.f32 %v1263_v33, %v1262_v30  ;;  %v1285_v35 = vpop.f32.mrb[3].mxu1 }
 0x122   : > { %v932_v36 = vadd.f32 %v1283_v31, %v1261_v28  ;;  %v1286_v37 = vadd.f32 %v1285_v35, %v1284_v32 }
 0x124   : > { %v935_v38 = vadd.f32 %v1286_v37, %v1264_v34 }
 0x13d   : > { %v1303_v39 = vpop.f32.mrb[4].mxu0 }
 0x13e   : > { %v1325_v40 = vpop.f32.mrb[4].mxu1  ;;  %v1304_v41 = vpop.f32.mrb[5].mxu0 }
 0x13f   : > { %v1305_v42 = vadd.f32 %v1304_v41, %v1303_v39  ;;  %v1326_v43 = vpop.f32.mrb[5].mxu1  ;;  %v1306_v44 = vpop.f32.mrb[6].mxu0 }
 0x140   : > { %v1327_v45 = vadd.f32 %v1326_v43, %v1325_v40  ;;  %v1328_v46 = vpop.f32.mrb[6].mxu1  ;;  %v1307_v47 = vpop.f32.mrb[7].mxu0 }
 0x141   : > { %v973_v48 = vadd.f32 %v1305_v42, %v932_v36  ;;  %v1308_v49 = vadd.f32 %v1307_v47, %v1306_v44  ;;  %v1329_v50 = vpop.f32.mrb[7].mxu1 }
 0x142   : > { %v1330_v52 = vadd.f32 %v1329_v50, %v1328_v46 }
 0x143   : > { %v1014_v53 = vadd.f32 %v1327_v45, %v973_v48  ;;  %v976_v54 = vadd.f32 %v1308_v49, %v935_v38  ;;  %1027 = sbr.rel (%p1236_p11) target bundleno = 340 (0x154), region = 63 }
 0x145   : > { %v1020_v56 = vadd.f32 %v1014_v53, %v294_v51  ;;  %v1017_v57 = vadd.f32 %v1330_v52, %v976_v54 }
 0x147   : > { %1022 = vst [vmem:[#allocation2] sm:$0xff] %v1020_v56  ;;  %v1021_v58 = vadd.f32 %v1017_v57, %v295_v55 }
 0x149   : > { %1023 = vst [vmem:[#allocation2 + $0x8] sm:$0xff] %v1021_v58 }
 0x14e   : > { %v1028_v59 = vld [vmem:[#allocation2] sm:$0xff] }
 0x14f   : > { %v1037_v62 = vadd.f32 %v1237_v60, %v1028_v59 }
 0x150   : > { %v1029_v61 = vld [vmem:[#allocation2 + $0x8] sm:$0xff] }
 0x151   : > { %v1038_v63 = vadd.f32 %v1237_v60, %v1029_v61  ;;  %1039 = vst [vmem:[%s1652_s3] sm:$0xff] %v1037_v62 }
 0x153   : > { %1040 = vst [vmem:[%s1652_s3 + $0x8] sm:$0xff] %v1038_v63 }
 0x154 PF: > { %s13_s16 = sadd.s32 1, %s1474_s16   ;;  %s1653_s12 = smov %s1462_s13 }
 0x155   : > { %p10_p12 = scmp.ge.s32.totalorder %s13_s16, 10   ;;  %s1654_s13 = smov %s1532_s20 }
 0x156   : > { %s1655_s14 = smov %s1470_s15  ;;  %s1656_s15 = smov %s1658_s17 }
 0x157   :  { %12 = sbr.rel (!%p10_p12) target bundleno = 3 (0x3), region = 104 }

</bundles_post_ra>
